<compile_context>
chip_gen: v5e
topology: v5e:2x2
jax: 0.10.0
libtpu: 0.0.40
codegen_flags: <defaults>
</compile_context>

<pallas_src>
import functools

import jax
import jax.numpy as jnp
from jax import lax
from jax.experimental import pallas as pl
from jax.experimental.pallas import tpu as pltpu


def _round_up(x, m):
    return (x + m - 1) // m * m


def _pick_tm(m):
    """Row-tile: multiple of 8, <= 512, and <= ceil(M/2) so gm >= 2 when possible."""
    half = _round_up(max(1, (m + 1) // 2), 8)
    return max(8, min(512, half))


# ----------------------------------------------------------------------------
# Pallas kernel: single-pass matmul + bias + (optional) ReLU
#   A: (TM, K) bf16,  W: (K, NP) bf16 (VMEM-resident),  bias: (1, NP) f32
# ----------------------------------------------------------------------------
def _matmul_bias_kernel(a_ref, w_ref, b_ref, o_ref, *, apply_relu):
    acc = jnp.dot(a_ref[...], w_ref[...], preferred_element_type=jnp.float32)
    out = acc + b_ref[...]                     # f32 epilogue (v5e-safe)
    if apply_relu:
        out = jnp.maximum(out, 0.0)
    o_ref[...] = out.astype(o_ref.dtype)


def matmul_bias(a, wm, bias2d, *, apply_relu, out_dtype):
    """a: (M, K) bf16, wm: (K, NP) bf16, bias2d: (1, NP) f32 -> (M, NP) out_dtype."""
    M, K = a.shape
    K2, NP = wm.shape
    assert K == K2 and NP % 128 == 0

    TM = _pick_tm(M)
    MP = _round_up(M, TM)
    if MP != M:                                # rare: only when M not /8
        a = jnp.pad(a, ((0, MP - M), (0, 0)))
    gm = MP // TM

    out_isize = jnp.dtype(out_dtype).itemsize
    kernel = functools.partial(_matmul_bias_kernel, apply_relu=apply_relu)
    out = pl.pallas_call(
        kernel,
        out_shape=jax.ShapeDtypeStruct((MP, NP), out_dtype),
        grid=(gm,),
        in_specs=[
            pl.BlockSpec((TM, K), lambda i: (i, 0)),
            pl.BlockSpec((K, NP), lambda i: (0, 0)),     # weight stays resident
            pl.BlockSpec((1, NP), lambda i: (0, 0)),
        ],
        out_specs=pl.BlockSpec((TM, NP), lambda i: (i, 0)),
        compiler_params=pltpu.CompilerParams(
            dimension_semantics=("parallel",),
            vmem_limit_bytes=32 * 1024 * 1024,
        ),
        cost_estimate=pl.CostEstimate(
            flops=2 * MP * K * NP,
            transcendentals=0,
            bytes_accessed=MP * K * 2 + K * NP * 2 + NP * 4 + MP * NP * out_isize,
        ),
    )(a.astype(jnp.bfloat16), wm, bias2d)
    return out[:M]


# ----------------------------------------------------------------------------
# Pallas kernel: single-input MaxPool2d(2, 2)
#   input block  (TR, 2, Wh, 2*C)  -- contiguous view of (B, H, W, C)
#   output block (TR, Wh, C)
# ----------------------------------------------------------------------------
def _pool_kernel(x_ref, o_ref, *, C):
    x = x_ref[...]                                   # (TR, 2, Wh, 2C)
    v = jnp.maximum(x[:, 0], x[:, 1])                # vertical 2-row max
    o_ref[...] = jnp.maximum(v[..., :C], v[..., C:])  # horizontal 2-col max


def maxpool2x2_nhwc(x):
    """x: (B, H, W, C) -> (B, H//2, W//2, C), kernel=2, stride=2."""
    B, H, W, C = x.shape
    assert H % 2 == 0 and W % 2 == 0, "MaxPool2d(2,2) needs even H and W"
    Hh, Wh = H // 2, W // 2
    R = B * Hh
    xr = x.reshape(R, 2, Wh, 2 * C)                  # contiguous, free

    bytes_per_row = 2 * Wh * 2 * C * x.dtype.itemsize
    row_cap = max(1, (4 << 20) // max(1, bytes_per_row))   # ~4 MiB input blocks
    TR = min(R, row_cap)
    RP = _round_up(R, TR)
    if RP != R:
        xr = jnp.pad(xr, ((0, RP - R), (0, 0), (0, 0), (0, 0)))

    isz = x.dtype.itemsize
    out = pl.pallas_call(
        functools.partial(_pool_kernel, C=C),
        out_shape=jax.ShapeDtypeStruct((RP, Wh, C), x.dtype),
        grid=(RP // TR,),
        in_specs=[pl.BlockSpec((TR, 2, Wh, 2 * C), lambda i: (i, 0, 0, 0))],
        out_specs=pl.BlockSpec((TR, Wh, C), lambda i: (i, 0, 0)),
        compiler_params=pltpu.CompilerParams(
            dimension_semantics=("parallel",),
            vmem_limit_bytes=32 * 1024 * 1024,
        ),
        cost_estimate=pl.CostEstimate(
            flops=3 * RP * Wh * C,
            transcendentals=0,
            bytes_accessed=(RP * 2 * Wh * 2 * C + RP * Wh * C) * isz,
        ),
    )(xr)
    return out[:R].reshape(B, Hh, Wh, C)


# ----------------------------------------------------------------------------
# Conv2d (stride=1, padding=k//2) = patch extraction (XLA glue, bf16, NHWC) +
# single-pass Pallas matmul/bias/ReLU with resident bf16 weights, f32 epilogue.
# ----------------------------------------------------------------------------
def conv2d_nhwc(x, layer, *, relu, out_dtype):
    """x: (B, H, W, Cin) bf16; layer: packed dict from _pack_conv."""
    B, H, W, C = x.shape
    kh, kw, N = layer["kh"], layer["kw"], layer["N"]
    pad = kh // 2
    if pad:
        xp = jnp.pad(x, ((0, 0), (pad, pad), (pad, pad), (0, 0)))
        cols = [xp[:, di:di + H, dj:dj + W, :]
                for di in range(kh) for dj in range(kw)]
        # flattened K index = c*(kh*kw) + di*kw + dj  (matches PyTorch flatten)
        a = jnp.stack(cols, axis=-1).reshape(B * H * W, C * kh * kw)
    else:
        a = x.reshape(B * H * W, C)
    out = matmul_bias(a, layer["wm"], layer["b"], apply_relu=relu,
                      out_dtype=out_dtype)
    return out[:, :N].reshape(B, H, W, N)


# ----------------------------------------------------------------------------
# Parameter init (deterministic, kaiming_normal fan_in, zero bias) + plan build
# ----------------------------------------------------------------------------
_COLUMN_CFGS = {
    "column1": dict(out_c=[16, 32, 16, 8], k=[9, 7, 7, 7]),
    "column2": dict(out_c=[20, 40, 20, 10], k=[7, 5, 5, 5]),
    "column3": dict(out_c=[24, 48, 24, 12], k=[5, 3, 3, 3]),
}


def init_params(key, num_channels=3):
    params = {}
    for name, cfg in _COLUMN_CFGS.items():
        in_cs = [num_channels] + cfg["out_c"][:-1]
        layers = []
        for cin, cout, kk in zip(in_cs, cfg["out_c"], cfg["k"]):
            key, sub = jax.random.split(key)
            std = (2.0 / (cin * kk * kk)) ** 0.5
            wgt = std * jax.random.normal(sub, (cout, cin, kk, kk), jnp.float32)
            layers.append((wgt, jnp.zeros((cout,), jnp.float32)))
        params[name] = layers
    key, sub = jax.random.split(key)
    std = (2.0 / 30.0) ** 0.5
    params["conv_x"] = (
        std * jax.random.normal(sub, (1, 30, 1, 1), jnp.float32),
        jnp.zeros((1,), jnp.float32),
    )
    return params


def _pack_conv(w, b):
    """Precompute lane-padded transposed bf16 weight matrix + padded f32 bias."""
    Cout, Cin, kh, kw = w.shape
    assert kh == kw and kh % 2 == 1, "MCNN uses square odd kernels"
    K = Cin * kh * kw
    NP = _round_up(Cout, 128)
    wm = jnp.pad(w.reshape(Cout, K).T.astype(jnp.bfloat16), ((0, 0), (0, NP - Cout)))
    bp = jnp.pad(b.astype(jnp.float32), (0, NP - Cout)).reshape(1, NP)
    return dict(wm=wm, b=bp, kh=kh, kw=kw, N=Cout)


def _embed_center(w, ksize):
    """Zero-embed a kxk kernel (padding=k//2) into ksize x ksize (padding=ksize//2)."""
    o = (ksize - w.shape[-1]) // 2
    return jnp.pad(w, ((0, 0), (0, 0), (o, o), (o, o)))


def prepare_plan(params):
    plan = {}
    # Fused first layer: three shared-input convs -> one 9x9 conv, Cout = 16+20+24.
    w1 = jnp.concatenate([_embed_center(params[c][0][0], 9)
                          for c in ("column1", "column2", "column3")], axis=0)
    b1 = jnp.concatenate([params[c][0][1]
                          for c in ("column1", "column2", "column3")], axis=0)
    plan["layer1"] = _pack_conv(w1, b1)
    for name in ("column1", "column2", "column3"):
        plan[name] = [_pack_conv(w, b) for (w, b) in params[name][1:]]
    plan["conv_x"] = _pack_conv(*params["conv_x"])
    return plan


# ----------------------------------------------------------------------------
# Forward pass (same structure as MCNN.forward); NHWC bf16 internally, NCHW API.
# ----------------------------------------------------------------------------
def _column_tail(x, layers):
    x = maxpool2x2_nhwc(conv2d_nhwc(x, layers[0], relu=True, out_dtype=jnp.bfloat16))
    x = conv2d_nhwc(x, layers[1], relu=True, out_dtype=jnp.bfloat16)
    x = conv2d_nhwc(x, layers[2], relu=True, out_dtype=jnp.bfloat16)
    return x


def mcnn_forward(plan, x_nchw):
    x = jnp.transpose(x_nchw, (0, 2, 3, 1)).astype(jnp.bfloat16)   # one relayout
    y1 = conv2d_nhwc(x, plan["layer1"], relu=True, out_dtype=jnp.bfloat16)
    p1 = maxpool2x2_nhwc(y1)                                       # (B,Hh,Wh,60)
    a = _column_tail(p1[..., :16], plan["column1"])
    b = _column_tail(p1[..., 16:36], plan["column2"])
    c = _column_tail(p1[..., 36:60], plan["column3"])
    d = jnp.concatenate([a, b, c], axis=-1)                        # 8+10+12 = 30 ch
    d = conv2d_nhwc(d, plan["conv_x"], relu=False, out_dtype=jnp.float32)
    return jnp.transpose(d, (0, 3, 1, 2))                          # back to NCHW


# ----------------------------------------------------------------------------
# Pure-JAX reference with the same bf16-operand / f32-accumulation numerics.
# ----------------------------------------------------------------------------
def _ref_conv2d(x, w, b, *, relu):
    pad = w.shape[-1] // 2
    out = lax.conv_general_dilated(
        x.astype(jnp.bfloat16), w.astype(jnp.bfloat16),
        window_strides=(1, 1), padding=[(pad, pad), (pad, pad)],
        dimension_numbers=("NCHW", "OIHW", "NCHW"),
        preferred_element_type=jnp.float32,
    ) + b.reshape(1, -1, 1, 1)
    return jnp.maximum(out, 0.0) if relu else out


def _ref_pool(x):
    return lax.reduce_window(x, -jnp.inf, lax.max,
                             (1, 1, 2, 2), (1, 1, 2, 2), "VALID")


def _ref_column(x, layers):
    w, b = layers[0]
    x = _ref_pool(_ref_conv2d(x, w, b, relu=True))
    w, b = layers[1]
    x = _ref_pool(_ref_conv2d(x, w, b, relu=True))
    w, b = layers[2]
    x = _ref_conv2d(x, w, b, relu=True)
    w, b = layers[3]
    x = _ref_conv2d(x, w, b, relu=True)
    return x


def mcnn_reference(params, x):
    a = _ref_column(x, params["column1"])
    b = _ref_column(x, params["column2"])
    c = _ref_column(x, params["column3"])
    d = jnp.concatenate([a, b, c], axis=1)
    w, bias = params["conv_x"]
    return _ref_conv2d(d, w, bias, relu=False)


# ----------------------------------------------------------------------------
if __name__ == "__main__":
    key = jax.random.PRNGKey(0)
    pkey, xkey = jax.random.split(key)
    params = init_params(pkey, num_channels=3)
    plan = prepare_plan(params)                       # weights packed once

    x = jax.random.normal(xkey, (2, 3, 16, 16), jnp.float32)   # NCHW

    forward = jax.jit(functools.partial(mcnn_forward, plan))   # plan = jit constants
    out = jax.block_until_ready(forward(x))
    assert out.shape == (2, 1, 4, 4), out.shape               # two 2x2 pools: 16 -> 4

    ref = jax.block_until_ready(mcnn_reference(params, x))
    assert jnp.all(jnp.isfinite(out))
    assert jnp.allclose(out, ref, rtol=2e-2, atol=2e-2), (
        float(jnp.max(jnp.abs(out - ref))))

    print("KERNEL_OK")
</pallas_src>

<mosaic_0001>
module attributes {stable_mosaic.version = 11 : i64} {
  func.func @_matmul_bias_kernel(%arg0: i32, %arg1: memref<256x243xbf16, #tpu.memory_space<vmem>>, %arg2: memref<243x128xbf16, #tpu.memory_space<vmem>>, %arg3: memref<1x128xf32, #tpu.memory_space<vmem>>, %arg4: memref<256x128xbf16, #tpu.memory_space<vmem>>) attributes {dimension_semantics = [#tpu.dimension_semantics<parallel>], iteration_bounds = array<i64: 2>, scalar_prefetch = 0 : i64, scratch_operands = 0 : i64, tpu.core_type = #tpu.core_type<tc>, window_params = [{transform_indices = @transform_0, window_bounds = array<i64: 256, 243>}, {pipeline_mode = #tpu.pipeline_mode<synchronous>, transform_indices = @transform_1, window_bounds = array<i64: 243, 128>}, {pipeline_mode = #tpu.pipeline_mode<synchronous>, transform_indices = @transform_2, window_bounds = array<i64: 1, 128>}, {transform_indices = @transform_3, window_bounds = array<i64: 256, 128>}]} {
    %c0 = arith.constant 0 : index
    %c0_0 = arith.constant 0 : index
    %0 = vector.load %arg1[%c0, %c0_0] : memref<256x243xbf16, #tpu.memory_space<vmem>>, vector<256x243xbf16>
    %c0_1 = arith.constant 0 : index
    %c0_2 = arith.constant 0 : index
    %1 = vector.load %arg2[%c0_1, %c0_2] : memref<243x128xbf16, #tpu.memory_space<vmem>>, vector<243x128xbf16>
    %cst = arith.constant dense<0.000000e+00> : vector<256x128xf32>
    %2 = tpu.matmul %0, %1, %cst {dimension_numbers = #tpu.dot_dimension_numbers<[1], [0], [0], [1], [0, 0, 1, 1], [], []>} : vector<256x243xbf16>, vector<243x128xbf16>, vector<256x128xf32> -> vector<256x128xf32>
    %c0_3 = arith.constant 0 : index
    %c0_4 = arith.constant 0 : index
    %3 = vector.load %arg3[%c0_3, %c0_4] : memref<1x128xf32, #tpu.memory_space<vmem>>, vector<1x128xf32>
    %4 = vector.broadcast %3 : vector<1x128xf32> to vector<256x128xf32>
    %5 = arith.addf %2, %4 : vector<256x128xf32>
    %cst_5 = arith.constant 0.000000e+00 : f32
    %6 = vector.broadcast %cst_5 : f32 to vector<256x128xf32>
    %7 = arith.maximumf %5, %6 : vector<256x128xf32>
    %8 = arith.truncf %7 : vector<256x128xf32> to vector<256x128xbf16>
    %c0_6 = arith.constant 0 : index
    %c0_7 = arith.constant 0 : index
    %9 = vector.load %arg4[%c0_6, %c0_7] : memref<256x128xbf16, #tpu.memory_space<vmem>>, vector<256x128xbf16>
    tpu.vector_store %arg4[%c0_6, %c0_7], %8 {strides = array<i32>} : memref<256x128xbf16, #tpu.memory_space<vmem>>, vector<256x128xbf16>,
    return
  }
  func.func @transform_0(%arg0: i32) -> (i32, i32) {
    %c0_i32 = arith.constant 0 : i32
    %c0_i32_0 = arith.constant 0 : i32
    return %arg0, %c0_i32 : i32, i32
  }
  func.func @transform_1(%arg0: i32) -> (i32, i32) {
    %c0_i32 = arith.constant 0 : i32
    %c0_i32_0 = arith.constant 0 : i32
    %c0_i32_1 = arith.constant 0 : i32
    return %c0_i32, %c0_i32_0 : i32, i32
  }
  func.func @transform_2(%arg0: i32) -> (i32, i32) {
    %c0_i32 = arith.constant 0 : i32
    %c0_i32_0 = arith.constant 0 : i32
    %c0_i32_1 = arith.constant 0 : i32
    return %c0_i32, %c0_i32_0 : i32, i32
  }
  func.func @transform_3(%arg0: i32) -> (i32, i32) {
    %c0_i32 = arith.constant 0 : i32
    %c0_i32_0 = arith.constant 0 : i32
    return %arg0, %c0_i32 : i32, i32
  }
}

module attributes {stable_mosaic.version = 11 : i64} {
  func.func @_pool_kernel(%arg0: i32, %arg1: memref<16x2x8x120xbf16, #tpu.memory_space<vmem>>, %arg2: memref<16x8x60xbf16, #tpu.memory_space<vmem>>) attributes {dimension_semantics = [#tpu.dimension_semantics<parallel>], iteration_bounds = array<i64: 1>, scalar_prefetch = 0 : i64, scratch_operands = 0 : i64, tpu.core_type = #tpu.core_type<tc>, window_params = [{transform_indices = @transform_0, window_bounds = array<i64: 16, 2, 8, 120>}, {transform_indices = @transform_1, window_bounds = array<i64: 16, 8, 60>}]} {
    %c0 = arith.constant 0 : index
    %c0_0 = arith.constant 0 : index
    %c0_1 = arith.constant 0 : index
    %c0_2 = arith.constant 0 : index
    %0 = vector.load %arg1[%c0, %c0_0, %c0_1, %c0_2] : memref<16x2x8x120xbf16, #tpu.memory_space<vmem>>, vector<16x2x8x120xbf16>
    %1 = vector.extract_strided_slice %0 {offsets = [0, 0, 0, 0], sizes = [16, 1, 8, 120], strides = [1, 1, 1, 1]} : vector<16x2x8x120xbf16> to vector<16x1x8x120xbf16>
    %2 = vector.shape_cast %1 : vector<16x1x8x120xbf16> to vector<16x8x120xbf16>
    %3 = vector.extract_strided_slice %0 {offsets = [0, 1, 0, 0], sizes = [16, 1, 8, 120], strides = [1, 1, 1, 1]} : vector<16x2x8x120xbf16> to vector<16x1x8x120xbf16>
    %4 = vector.shape_cast %3 : vector<16x1x8x120xbf16> to vector<16x8x120xbf16>
    %5 = arith.maximumf %2, %4 : vector<16x8x120xbf16>
    %6 = vector.extract_strided_slice %5 {offsets = [0, 0, 0], sizes = [16, 8, 60], strides = [1, 1, 1]} : vector<16x8x120xbf16> to vector<16x8x60xbf16>
    %7 = vector.extract_strided_slice %5 {offsets = [0, 0, 60], sizes = [16, 8, 60], strides = [1, 1, 1]} : vector<16x8x120xbf16> to vector<16x8x60xbf16>
    %8 = arith.maximumf %6, %7 : vector<16x8x60xbf16>
    %c0_3 = arith.constant 0 : index
    %c0_4 = arith.constant 0 : index
    %c0_5 = arith.constant 0 : index
    %9 = vector.load %arg2[%c0_3, %c0_4, %c0_5] : memref<16x8x60xbf16, #tpu.memory_space<vmem>>, vector<16x8x60xbf16>
    tpu.vector_store %arg2[%c0_3, %c0_4, %c0_5], %8 {strides = array<i32>} : memref<16x8x60xbf16, #tpu.memory_space<vmem>>, vector<16x8x60xbf16>,
    return
  }
  func.func @transform_0(%arg0: i32) -> (i32, i32, i32, i32) {
    %c0_i32 = arith.constant 0 : i32
    %c0_i32_0 = arith.constant 0 : i32
    %c0_i32_1 = arith.constant 0 : i32
    %c0_i32_2 = arith.constant 0 : i32
    return %arg0, %c0_i32, %c0_i32_0, %c0_i32_1 : i32, i32, i32, i32
  }
  func.func @transform_1(%arg0: i32) -> (i32, i32, i32) {
    %c0_i32 = arith.constant 0 : i32
    %c0_i32_0 = arith.constant 0 : i32
    %c0_i32_1 = arith.constant 0 : i32
    return %arg0, %c0_i32, %c0_i32_0 : i32, i32, i32
  }
}

module attributes {stable_mosaic.version = 11 : i64} {
  func.func @_matmul_bias_kernel(%arg0: i32, %arg1: memref<64x216xbf16, #tpu.memory_space<vmem>>, %arg2: memref<216x128xbf16, #tpu.memory_space<vmem>>, %arg3: memref<1x128xf32, #tpu.memory_space<vmem>>, %arg4: memref<64x128xbf16, #tpu.memory_space<vmem>>) attributes {dimension_semantics = [#tpu.dimension_semantics<parallel>], iteration_bounds = array<i64: 2>, scalar_prefetch = 0 : i64, scratch_operands = 0 : i64, tpu.core_type = #tpu.core_type<tc>, window_params = [{transform_indices = @transform_0, window_bounds = array<i64: 64, 216>}, {pipeline_mode = #tpu.pipeline_mode<synchronous>, transform_indices = @transform_1, window_bounds = array<i64: 216, 128>}, {pipeline_mode = #tpu.pipeline_mode<synchronous>, transform_indices = @transform_2, window_bounds = array<i64: 1, 128>}, {transform_indices = @transform_3, window_bounds = array<i64: 64, 128>}]} {
    %c0 = arith.constant 0 : index
    %c0_0 = arith.constant 0 : index
    %0 = vector.load %arg1[%c0, %c0_0] : memref<64x216xbf16, #tpu.memory_space<vmem>>, vector<64x216xbf16>
    %c0_1 = arith.constant 0 : index
    %c0_2 = arith.constant 0 : index
    %1 = vector.load %arg2[%c0_1, %c0_2] : memref<216x128xbf16, #tpu.memory_space<vmem>>, vector<216x128xbf16>
    %cst = arith.constant dense<0.000000e+00> : vector<64x128xf32>
    %2 = tpu.matmul %0, %1, %cst {dimension_numbers = #tpu.dot_dimension_numbers<[1], [0], [0], [1], [0, 0, 1, 1], [], []>} : vector<64x216xbf16>, vector<216x128xbf16>, vector<64x128xf32> -> vector<64x128xf32>
    %c0_3 = arith.constant 0 : index
    %c0_4 = arith.constant 0 : index
    %3 = vector.load %arg3[%c0_3, %c0_4] : memref<1x128xf32, #tpu.memory_space<vmem>>, vector<1x128xf32>
    %4 = vector.broadcast %3 : vector<1x128xf32> to vector<64x128xf32>
    %5 = arith.addf %2, %4 : vector<64x128xf32>
    %cst_5 = arith.constant 0.000000e+00 : f32
    %6 = vector.broadcast %cst_5 : f32 to vector<64x128xf32>
    %7 = arith.maximumf %5, %6 : vector<64x128xf32>
    %8 = arith.truncf %7 : vector<64x128xf32> to vector<64x128xbf16>
    %c0_6 = arith.constant 0 : index
    %c0_7 = arith.constant 0 : index
    %9 = vector.load %arg4[%c0_6, %c0_7] : memref<64x128xbf16, #tpu.memory_space<vmem>>, vector<64x128xbf16>
    tpu.vector_store %arg4[%c0_6, %c0_7], %8 {strides = array<i32>} : memref<64x128xbf16, #tpu.memory_space<vmem>>, vector<64x128xbf16>,
    return
  }
  func.func @transform_0(%arg0: i32) -> (i32, i32) {
    %c0_i32 = arith.constant 0 : i32
    %c0_i32_0 = arith.constant 0 : i32
    return %arg0, %c0_i32 : i32, i32
  }
  func.func @transform_1(%arg0: i32) -> (i32, i32) {
    %c0_i32 = arith.constant 0 : i32
    %c0_i32_0 = arith.constant 0 : i32
    %c0_i32_1 = arith.constant 0 : i32
    return %c0_i32, %c0_i32_0 : i32, i32
  }
  func.func @transform_2(%arg0: i32) -> (i32, i32) {
    %c0_i32 = arith.constant 0 : i32
    %c0_i32_0 = arith.constant 0 : i32
    %c0_i32_1 = arith.constant 0 : i32
    return %c0_i32, %c0_i32_0 : i32, i32
  }
  func.func @transform_3(%arg0: i32) -> (i32, i32) {
    %c0_i32 = arith.constant 0 : i32
    %c0_i32_0 = arith.constant 0 : i32
    return %arg0, %c0_i32 : i32, i32
  }
}

module attributes {stable_mosaic.version = 11 : i64} {
  func.func @_pool_kernel(%arg0: i32, %arg1: memref<8x2x4x96xbf16, #tpu.memory_space<vmem>>, %arg2: memref<8x4x48xbf16, #tpu.memory_space<vmem>>) attributes {dimension_semantics = [#tpu.dimension_semantics<parallel>], iteration_bounds = array<i64: 1>, scalar_prefetch = 0 : i64, scratch_operands = 0 : i64, tpu.core_type = #tpu.core_type<tc>, window_params = [{transform_indices = @transform_0, window_bounds = array<i64: 8, 2, 4, 96>}, {transform_indices = @transform_1, window_bounds = array<i64: 8, 4, 48>}]} {
    %c0 = arith.constant 0 : index
    %c0_0 = arith.constant 0 : index
    %c0_1 = arith.constant 0 : index
    %c0_2 = arith.constant 0 : index
    %0 = vector.load %arg1[%c0, %c0_0, %c0_1, %c0_2] : memref<8x2x4x96xbf16, #tpu.memory_space<vmem>>, vector<8x2x4x96xbf16>
    %1 = vector.extract_strided_slice %0 {offsets = [0, 0, 0, 0], sizes = [8, 1, 4, 96], strides = [1, 1, 1, 1]} : vector<8x2x4x96xbf16> to vector<8x1x4x96xbf16>
    %2 = vector.shape_cast %1 : vector<8x1x4x96xbf16> to vector<8x4x96xbf16>
    %3 = vector.extract_strided_slice %0 {offsets = [0, 1, 0, 0], sizes = [8, 1, 4, 96], strides = [1, 1, 1, 1]} : vector<8x2x4x96xbf16> to vector<8x1x4x96xbf16>
    %4 = vector.shape_cast %3 : vector<8x1x4x96xbf16> to vector<8x4x96xbf16>
    %5 = arith.maximumf %2, %4 : vector<8x4x96xbf16>
    %6 = vector.extract_strided_slice %5 {offsets = [0, 0, 0], sizes = [8, 4, 48], strides = [1, 1, 1]} : vector<8x4x96xbf16> to vector<8x4x48xbf16>
    %7 = vector.extract_strided_slice %5 {offsets = [0, 0, 48], sizes = [8, 4, 48], strides = [1, 1, 1]} : vector<8x4x96xbf16> to vector<8x4x48xbf16>
    %8 = arith.maximumf %6, %7 : vector<8x4x48xbf16>
    %c0_3 = arith.constant 0 : index
    %c0_4 = arith.constant 0 : index
    %c0_5 = arith.constant 0 : index
    %9 = vector.load %arg2[%c0_3, %c0_4, %c0_5] : memref<8x4x48xbf16, #tpu.memory_space<vmem>>, vector<8x4x48xbf16>
    tpu.vector_store %arg2[%c0_3, %c0_4, %c0_5], %8 {strides = array<i32>} : memref<8x4x48xbf16, #tpu.memory_space<vmem>>, vector<8x4x48xbf16>,
    return
  }
  func.func @transform_0(%arg0: i32) -> (i32, i32, i32, i32) {
    %c0_i32 = arith.constant 0 : i32
    %c0_i32_0 = arith.constant 0 : i32
    %c0_i32_1 = arith.constant 0 : i32
    %c0_i32_2 = arith.constant 0 : i32
    return %arg0, %c0_i32, %c0_i32_0, %c0_i32_1 : i32, i32, i32, i32
  }
  func.func @transform_1(%arg0: i32) -> (i32, i32, i32) {
    %c0_i32 = arith.constant 0 : i32
    %c0_i32_0 = arith.constant 0 : i32
    %c0_i32_1 = arith.constant 0 : i32
    return %arg0, %c0_i32, %c0_i32_0 : i32, i32, i32
  }
}

module attributes {stable_mosaic.version = 11 : i64} {
  func.func @_matmul_bias_kernel(%arg0: i32, %arg1: memref<16x432xbf16, #tpu.memory_space<vmem>>, %arg2: memref<432x128xbf16, #tpu.memory_space<vmem>>, %arg3: memref<1x128xf32, #tpu.memory_space<vmem>>, %arg4: memref<16x128xbf16, #tpu.memory_space<vmem>>) attributes {dimension_semantics = [#tpu.dimension_semantics<parallel>], iteration_bounds = array<i64: 2>, scalar_prefetch = 0 : i64, scratch_operands = 0 : i64, tpu.core_type = #tpu.core_type<tc>, window_params = [{transform_indices = @transform_0, window_bounds = array<i64: 16, 432>}, {pipeline_mode = #tpu.pipeline_mode<synchronous>, transform_indices = @transform_1, window_bounds = array<i64: 432, 128>}, {pipeline_mode = #tpu.pipeline_mode<synchronous>, transform_indices = @transform_2, window_bounds = array<i64: 1, 128>}, {transform_indices = @transform_3, window_bounds = array<i64: 16, 128>}]} {
    %c0 = arith.constant 0 : index
    %c0_0 = arith.constant 0 : index
    %0 = vector.load %arg1[%c0, %c0_0] : memref<16x432xbf16, #tpu.memory_space<vmem>>, vector<16x432xbf16>
    %c0_1 = arith.constant 0 : index
    %c0_2 = arith.constant 0 : index
    %1 = vector.load %arg2[%c0_1, %c0_2] : memref<432x128xbf16, #tpu.memory_space<vmem>>, vector<432x128xbf16>
    %cst = arith.constant dense<0.000000e+00> : vector<16x128xf32>
    %2 = tpu.matmul %0, %1, %cst {dimension_numbers = #tpu.dot_dimension_numbers<[1], [0], [0], [1], [0, 0, 1, 1], [], []>} : vector<16x432xbf16>, vector<432x128xbf16>, vector<16x128xf32> -> vector<16x128xf32>
    %c0_3 = arith.constant 0 : index
    %c0_4 = arith.constant 0 : index
    %3 = vector.load %arg3[%c0_3, %c0_4] : memref<1x128xf32, #tpu.memory_space<vmem>>, vector<1x128xf32>
    %4 = vector.broadcast %3 : vector<1x128xf32> to vector<16x128xf32>
    %5 = arith.addf %2, %4 : vector<16x128xf32>
    %cst_5 = arith.constant 0.000000e+00 : f32
    %6 = vector.broadcast %cst_5 : f32 to vector<16x128xf32>
    %7 = arith.maximumf %5, %6 : vector<16x128xf32>
    %8 = arith.truncf %7 : vector<16x128xf32> to vector<16x128xbf16>
    %c0_6 = arith.constant 0 : index
    %c0_7 = arith.constant 0 : index
    %9 = vector.load %arg4[%c0_6, %c0_7] : memref<16x128xbf16, #tpu.memory_space<vmem>>, vector<16x128xbf16>
    tpu.vector_store %arg4[%c0_6, %c0_7], %8 {strides = array<i32>} : memref<16x128xbf16, #tpu.memory_space<vmem>>, vector<16x128xbf16>,
    return
  }
  func.func @transform_0(%arg0: i32) -> (i32, i32) {
    %c0_i32 = arith.constant 0 : i32
    %c0_i32_0 = arith.constant 0 : i32
    return %arg0, %c0_i32 : i32, i32
  }
  func.func @transform_1(%arg0: i32) -> (i32, i32) {
    %c0_i32 = arith.constant 0 : i32
    %c0_i32_0 = arith.constant 0 : i32
    %c0_i32_1 = arith.constant 0 : i32
    return %c0_i32, %c0_i32_0 : i32, i32
  }
  func.func @transform_2(%arg0: i32) -> (i32, i32) {
    %c0_i32 = arith.constant 0 : i32
    %c0_i32_0 = arith.constant 0 : i32
    %c0_i32_1 = arith.constant 0 : i32
    return %c0_i32, %c0_i32_0 : i32, i32
  }
  func.func @transform_3(%arg0: i32) -> (i32, i32) {
    %c0_i32 = arith.constant 0 : i32
    %c0_i32_0 = arith.constant 0 : i32
    return %arg0, %c0_i32 : i32, i32
  }
}

module attributes {stable_mosaic.version = 11 : i64} {
  func.func @_matmul_bias_kernel(%arg0: i32, %arg1: memref<16x216xbf16, #tpu.memory_space<vmem>>, %arg2: memref<216x128xbf16, #tpu.memory_space<vmem>>, %arg3: memref<1x128xf32, #tpu.memory_space<vmem>>, %arg4: memref<16x128xbf16, #tpu.memory_space<vmem>>) attributes {dimension_semantics = [#tpu.dimension_semantics<parallel>], iteration_bounds = array<i64: 2>, scalar_prefetch = 0 : i64, scratch_operands = 0 : i64, tpu.core_type = #tpu.core_type<tc>, window_params = [{transform_indices = @transform_0, window_bounds = array<i64: 16, 216>}, {pipeline_mode = #tpu.pipeline_mode<synchronous>, transform_indices = @transform_1, window_bounds = array<i64: 216, 128>}, {pipeline_mode = #tpu.pipeline_mode<synchronous>, transform_indices = @transform_2, window_bounds = array<i64: 1, 128>}, {transform_indices = @transform_3, window_bounds = array<i64: 16, 128>}]} {
    %c0 = arith.constant 0 : index
    %c0_0 = arith.constant 0 : index
    %0 = vector.load %arg1[%c0, %c0_0] : memref<16x216xbf16, #tpu.memory_space<vmem>>, vector<16x216xbf16>
    %c0_1 = arith.constant 0 : index
    %c0_2 = arith.constant 0 : index
    %1 = vector.load %arg2[%c0_1, %c0_2] : memref<216x128xbf16, #tpu.memory_space<vmem>>, vector<216x128xbf16>
    %cst = arith.constant dense<0.000000e+00> : vector<16x128xf32>
    %2 = tpu.matmul %0, %1, %cst {dimension_numbers = #tpu.dot_dimension_numbers<[1], [0], [0], [1], [0, 0, 1, 1], [], []>} : vector<16x216xbf16>, vector<216x128xbf16>, vector<16x128xf32> -> vector<16x128xf32>
    %c0_3 = arith.constant 0 : index
    %c0_4 = arith.constant 0 : index
    %3 = vector.load %arg3[%c0_3, %c0_4] : memref<1x128xf32, #tpu.memory_space<vmem>>, vector<1x128xf32>
    %4 = vector.broadcast %3 : vector<1x128xf32> to vector<16x128xf32>
    %5 = arith.addf %2, %4 : vector<16x128xf32>
    %cst_5 = arith.constant 0.000000e+00 : f32
    %6 = vector.broadcast %cst_5 : f32 to vector<16x128xf32>
    %7 = arith.maximumf %5, %6 : vector<16x128xf32>
    %8 = arith.truncf %7 : vector<16x128xf32> to vector<16x128xbf16>
    %c0_6 = arith.constant 0 : index
    %c0_7 = arith.constant 0 : index
    %9 = vector.load %arg4[%c0_6, %c0_7] : memref<16x128xbf16, #tpu.memory_space<vmem>>, vector<16x128xbf16>
    tpu.vector_store %arg4[%c0_6, %c0_7], %8 {strides = array<i32>} : memref<16x128xbf16, #tpu.memory_space<vmem>>, vector<16x128xbf16>,
    return
  }
  func.func @transform_0(%arg0: i32) -> (i32, i32) {
    %c0_i32 = arith.constant 0 : i32
    %c0_i32_0 = arith.constant 0 : i32
    return %arg0, %c0_i32 : i32, i32
  }
  func.func @transform_1(%arg0: i32) -> (i32, i32) {
    %c0_i32 = arith.constant 0 : i32
    %c0_i32_0 = arith.constant 0 : i32
    %c0_i32_1 = arith.constant 0 : i32
    return %c0_i32, %c0_i32_0 : i32, i32
  }
  func.func @transform_2(%arg0: i32) -> (i32, i32) {
    %c0_i32 = arith.constant 0 : i32
    %c0_i32_0 = arith.constant 0 : i32
    %c0_i32_1 = arith.constant 0 : i32
    return %c0_i32, %c0_i32_0 : i32, i32
  }
  func.func @transform_3(%arg0: i32) -> (i32, i32) {
    %c0_i32 = arith.constant 0 : i32
    %c0_i32_0 = arith.constant 0 : i32
    return %arg0, %c0_i32 : i32, i32
  }
}

module attributes {stable_mosaic.version = 11 : i64} {
  func.func @_matmul_bias_kernel(%arg0: i32, %arg1: memref<64x500xbf16, #tpu.memory_space<vmem>>, %arg2: memref<500x128xbf16, #tpu.memory_space<vmem>>, %arg3: memref<1x128xf32, #tpu.memory_space<vmem>>, %arg4: memref<64x128xbf16, #tpu.memory_space<vmem>>) attributes {dimension_semantics = [#tpu.dimension_semantics<parallel>], iteration_bounds = array<i64: 2>, scalar_prefetch = 0 : i64, scratch_operands = 0 : i64, tpu.core_type = #tpu.core_type<tc>, window_params = [{transform_indices = @transform_0, window_bounds = array<i64: 64, 500>}, {pipeline_mode = #tpu.pipeline_mode<synchronous>, transform_indices = @transform_1, window_bounds = array<i64: 500, 128>}, {pipeline_mode = #tpu.pipeline_mode<synchronous>, transform_indices = @transform_2, window_bounds = array<i64: 1, 128>}, {transform_indices = @transform_3, window_bounds = array<i64: 64, 128>}]} {
    %c0 = arith.constant 0 : index
    %c0_0 = arith.constant 0 : index
    %0 = vector.load %arg1[%c0, %c0_0] : memref<64x500xbf16, #tpu.memory_space<vmem>>, vector<64x500xbf16>
    %c0_1 = arith.constant 0 : index
    %c0_2 = arith.constant 0 : index
    %1 = vector.load %arg2[%c0_1, %c0_2] : memref<500x128xbf16, #tpu.memory_space<vmem>>, vector<500x128xbf16>
    %cst = arith.constant dense<0.000000e+00> : vector<64x128xf32>
    %2 = tpu.matmul %0, %1, %cst {dimension_numbers = #tpu.dot_dimension_numbers<[1], [0], [0], [1], [0, 0, 1, 1], [], []>} : vector<64x500xbf16>, vector<500x128xbf16>, vector<64x128xf32> -> vector<64x128xf32>
    %c0_3 = arith.constant 0 : index
    %c0_4 = arith.constant 0 : index
    %3 = vector.load %arg3[%c0_3, %c0_4] : memref<1x128xf32, #tpu.memory_space<vmem>>, vector<1x128xf32>
    %4 = vector.broadcast %3 : vector<1x128xf32> to vector<64x128xf32>
    %5 = arith.addf %2, %4 : vector<64x128xf32>
    %cst_5 = arith.constant 0.000000e+00 : f32
    %6 = vector.broadcast %cst_5 : f32 to vector<64x128xf32>
    %7 = arith.maximumf %5, %6 : vector<64x128xf32>
    %8 = arith.truncf %7 : vector<64x128xf32> to vector<64x128xbf16>
    %c0_6 = arith.constant 0 : index
    %c0_7 = arith.constant 0 : index
    %9 = vector.load %arg4[%c0_6, %c0_7] : memref<64x128xbf16, #tpu.memory_space<vmem>>, vector<64x128xbf16>
    tpu.vector_store %arg4[%c0_6, %c0_7], %8 {strides = array<i32>} : memref<64x128xbf16, #tpu.memory_space<vmem>>, vector<64x128xbf16>,
    return
  }
  func.func @transform_0(%arg0: i32) -> (i32, i32) {
    %c0_i32 = arith.constant 0 : i32
    %c0_i32_0 = arith.constant 0 : i32
    return %arg0, %c0_i32 : i32, i32
  }
  func.func @transform_1(%arg0: i32) -> (i32, i32) {
    %c0_i32 = arith.constant 0 : i32
    %c0_i32_0 = arith.constant 0 : i32
    %c0_i32_1 = arith.constant 0 : i32
    return %c0_i32, %c0_i32_0 : i32, i32
  }
  func.func @transform_2(%arg0: i32) -> (i32, i32) {
    %c0_i32 = arith.constant 0 : i32
    %c0_i32_0 = arith.constant 0 : i32
    %c0_i32_1 = arith.constant 0 : i32
    return %c0_i32, %c0_i32_0 : i32, i32
  }
  func.func @transform_3(%arg0: i32) -> (i32, i32) {
    %c0_i32 = arith.constant 0 : i32
    %c0_i32_0 = arith.constant 0 : i32
    return %arg0, %c0_i32 : i32, i32
  }
}

module attributes {stable_mosaic.version = 11 : i64} {
  func.func @_pool_kernel(%arg0: i32, %arg1: memref<8x2x4x80xbf16, #tpu.memory_space<vmem>>, %arg2: memref<8x4x40xbf16, #tpu.memory_space<vmem>>) attributes {dimension_semantics = [#tpu.dimension_semantics<parallel>], iteration_bounds = array<i64: 1>, scalar_prefetch = 0 : i64, scratch_operands = 0 : i64, tpu.core_type = #tpu.core_type<tc>, window_params = [{transform_indices = @transform_0, window_bounds = array<i64: 8, 2, 4, 80>}, {transform_indices = @transform_1, window_bounds = array<i64: 8, 4, 40>}]} {
    %c0 = arith.constant 0 : index
    %c0_0 = arith.constant 0 : index
    %c0_1 = arith.constant 0 : index
    %c0_2 = arith.constant 0 : index
    %0 = vector.load %arg1[%c0, %c0_0, %c0_1, %c0_2] : memref<8x2x4x80xbf16, #tpu.memory_space<vmem>>, vector<8x2x4x80xbf16>
    %1 = vector.extract_strided_slice %0 {offsets = [0, 0, 0, 0], sizes = [8, 1, 4, 80], strides = [1, 1, 1, 1]} : vector<8x2x4x80xbf16> to vector<8x1x4x80xbf16>
    %2 = vector.shape_cast %1 : vector<8x1x4x80xbf16> to vector<8x4x80xbf16>
    %3 = vector.extract_strided_slice %0 {offsets = [0, 1, 0, 0], sizes = [8, 1, 4, 80], strides = [1, 1, 1, 1]} : vector<8x2x4x80xbf16> to vector<8x1x4x80xbf16>
    %4 = vector.shape_cast %3 : vector<8x1x4x80xbf16> to vector<8x4x80xbf16>
    %5 = arith.maximumf %2, %4 : vector<8x4x80xbf16>
    %6 = vector.extract_strided_slice %5 {offsets = [0, 0, 0], sizes = [8, 4, 40], strides = [1, 1, 1]} : vector<8x4x80xbf16> to vector<8x4x40xbf16>
    %7 = vector.extract_strided_slice %5 {offsets = [0, 0, 40], sizes = [8, 4, 40], strides = [1, 1, 1]} : vector<8x4x80xbf16> to vector<8x4x40xbf16>
    %8 = arith.maximumf %6, %7 : vector<8x4x40xbf16>
    %c0_3 = arith.constant 0 : index
    %c0_4 = arith.constant 0 : index
    %c0_5 = arith.constant 0 : index
    %9 = vector.load %arg2[%c0_3, %c0_4, %c0_5] : memref<8x4x40xbf16, #tpu.memory_space<vmem>>, vector<8x4x40xbf16>
    tpu.vector_store %arg2[%c0_3, %c0_4, %c0_5], %8 {strides = array<i32>} : memref<8x4x40xbf16, #tpu.memory_space<vmem>>, vector<8x4x40xbf16>,
    return
  }
  func.func @transform_0(%arg0: i32) -> (i32, i32, i32, i32) {
    %c0_i32 = arith.constant 0 : i32
    %c0_i32_0 = arith.constant 0 : i32
    %c0_i32_1 = arith.constant 0 : i32
    %c0_i32_2 = arith.constant 0 : i32
    return %arg0, %c0_i32, %c0_i32_0, %c0_i32_1 : i32, i32, i32, i32
  }
  func.func @transform_1(%arg0: i32) -> (i32, i32, i32) {
    %c0_i32 = arith.constant 0 : i32
    %c0_i32_0 = arith.constant 0 : i32
    %c0_i32_1 = arith.constant 0 : i32
    return %arg0, %c0_i32, %c0_i32_0 : i32, i32, i32
  }
}

module attributes {stable_mosaic.version = 11 : i64} {
  func.func @_matmul_bias_kernel(%arg0: i32, %arg1: memref<16x1000xbf16, #tpu.memory_space<vmem>>, %arg2: memref<1000x128xbf16, #tpu.memory_space<vmem>>, %arg3: memref<1x128xf32, #tpu.memory_space<vmem>>, %arg4: memref<16x128xbf16, #tpu.memory_space<vmem>>) attributes {dimension_semantics = [#tpu.dimension_semantics<parallel>], iteration_bounds = array<i64: 2>, scalar_prefetch = 0 : i64, scratch_operands = 0 : i64, tpu.core_type = #tpu.core_type<tc>, window_params = [{transform_indices = @transform_0, window_bounds = array<i64: 16, 1000>}, {pipeline_mode = #tpu.pipeline_mode<synchronous>, transform_indices = @transform_1, window_bounds = array<i64: 1000, 128>}, {pipeline_mode = #tpu.pipeline_mode<synchronous>, transform_indices = @transform_2, window_bounds = array<i64: 1, 128>}, {transform_indices = @transform_3, window_bounds = array<i64: 16, 128>}]} {
    %c0 = arith.constant 0 : index
    %c0_0 = arith.constant 0 : index
    %0 = vector.load %arg1[%c0, %c0_0] : memref<16x1000xbf16, #tpu.memory_space<vmem>>, vector<16x1000xbf16>
    %c0_1 = arith.constant 0 : index
    %c0_2 = arith.constant 0 : index
    %1 = vector.load %arg2[%c0_1, %c0_2] : memref<1000x128xbf16, #tpu.memory_space<vmem>>, vector<1000x128xbf16>
    %cst = arith.constant dense<0.000000e+00> : vector<16x128xf32>
    %2 = tpu.matmul %0, %1, %cst {dimension_numbers = #tpu.dot_dimension_numbers<[1], [0], [0], [1], [0, 0, 1, 1], [], []>} : vector<16x1000xbf16>, vector<1000x128xbf16>, vector<16x128xf32> -> vector<16x128xf32>
    %c0_3 = arith.constant 0 : index
    %c0_4 = arith.constant 0 : index
    %3 = vector.load %arg3[%c0_3, %c0_4] : memref<1x128xf32, #tpu.memory_space<vmem>>, vector<1x128xf32>
    %4 = vector.broadcast %3 : vector<1x128xf32> to vector<16x128xf32>
    %5 = arith.addf %2, %4 : vector<16x128xf32>
    %cst_5 = arith.constant 0.000000e+00 : f32
    %6 = vector.broadcast %cst_5 : f32 to vector<16x128xf32>
    %7 = arith.maximumf %5, %6 : vector<16x128xf32>
    %8 = arith.truncf %7 : vector<16x128xf32> to vector<16x128xbf16>
    %c0_6 = arith.constant 0 : index
    %c0_7 = arith.constant 0 : index
    %9 = vector.load %arg4[%c0_6, %c0_7] : memref<16x128xbf16, #tpu.memory_space<vmem>>, vector<16x128xbf16>
    tpu.vector_store %arg4[%c0_6, %c0_7], %8 {strides = array<i32>} : memref<16x128xbf16, #tpu.memory_space<vmem>>, vector<16x128xbf16>,
    return
  }
  func.func @transform_0(%arg0: i32) -> (i32, i32) {
    %c0_i32 = arith.constant 0 : i32
    %c0_i32_0 = arith.constant 0 : i32
    return %arg0, %c0_i32 : i32, i32
  }
  func.func @transform_1(%arg0: i32) -> (i32, i32) {
    %c0_i32 = arith.constant 0 : i32
    %c0_i32_0 = arith.constant 0 : i32
    %c0_i32_1 = arith.constant 0 : i32
    return %c0_i32, %c0_i32_0 : i32, i32
  }
  func.func @transform_2(%arg0: i32) -> (i32, i32) {
    %c0_i32 = arith.constant 0 : i32
    %c0_i32_0 = arith.constant 0 : i32
    %c0_i32_1 = arith.constant 0 : i32
    return %c0_i32, %c0_i32_0 : i32, i32
  }
  func.func @transform_3(%arg0: i32) -> (i32, i32) {
    %c0_i32 = arith.constant 0 : i32
    %c0_i32_0 = arith.constant 0 : i32
    return %arg0, %c0_i32 : i32, i32
  }
}

module attributes {stable_mosaic.version = 11 : i64} {
  func.func @_matmul_bias_kernel(%arg0: i32, %arg1: memref<16x500xbf16, #tpu.memory_space<vmem>>, %arg2: memref<500x128xbf16, #tpu.memory_space<vmem>>, %arg3: memref<1x128xf32, #tpu.memory_space<vmem>>, %arg4: memref<16x128xbf16, #tpu.memory_space<vmem>>) attributes {dimension_semantics = [#tpu.dimension_semantics<parallel>], iteration_bounds = array<i64: 2>, scalar_prefetch = 0 : i64, scratch_operands = 0 : i64, tpu.core_type = #tpu.core_type<tc>, window_params = [{transform_indices = @transform_0, window_bounds = array<i64: 16, 500>}, {pipeline_mode = #tpu.pipeline_mode<synchronous>, transform_indices = @transform_1, window_bounds = array<i64: 500, 128>}, {pipeline_mode = #tpu.pipeline_mode<synchronous>, transform_indices = @transform_2, window_bounds = array<i64: 1, 128>}, {transform_indices = @transform_3, window_bounds = array<i64: 16, 128>}]} {
    %c0 = arith.constant 0 : index
    %c0_0 = arith.constant 0 : index
    %0 = vector.load %arg1[%c0, %c0_0] : memref<16x500xbf16, #tpu.memory_space<vmem>>, vector<16x500xbf16>
    %c0_1 = arith.constant 0 : index
    %c0_2 = arith.constant 0 : index
    %1 = vector.load %arg2[%c0_1, %c0_2] : memref<500x128xbf16, #tpu.memory_space<vmem>>, vector<500x128xbf16>
    %cst = arith.constant dense<0.000000e+00> : vector<16x128xf32>
    %2 = tpu.matmul %0, %1, %cst {dimension_numbers = #tpu.dot_dimension_numbers<[1], [0], [0], [1], [0, 0, 1, 1], [], []>} : vector<16x500xbf16>, vector<500x128xbf16>, vector<16x128xf32> -> vector<16x128xf32>
    %c0_3 = arith.constant 0 : index
    %c0_4 = arith.constant 0 : index
    %3 = vector.load %arg3[%c0_3, %c0_4] : memref<1x128xf32, #tpu.memory_space<vmem>>, vector<1x128xf32>
    %4 = vector.broadcast %3 : vector<1x128xf32> to vector<16x128xf32>
    %5 = arith.addf %2, %4 : vector<16x128xf32>
    %cst_5 = arith.constant 0.000000e+00 : f32
    %6 = vector.broadcast %cst_5 : f32 to vector<16x128xf32>
    %7 = arith.maximumf %5, %6 : vector<16x128xf32>
    %8 = arith.truncf %7 : vector<16x128xf32> to vector<16x128xbf16>
    %c0_6 = arith.constant 0 : index
    %c0_7 = arith.constant 0 : index
    %9 = vector.load %arg4[%c0_6, %c0_7] : memref<16x128xbf16, #tpu.memory_space<vmem>>, vector<16x128xbf16>
    tpu.vector_store %arg4[%c0_6, %c0_7], %8 {strides = array<i32>} : memref<16x128xbf16, #tpu.memory_space<vmem>>, vector<16x128xbf16>,
    return
  }
  func.func @transform_0(%arg0: i32) -> (i32, i32) {
    %c0_i32 = arith.constant 0 : i32
    %c0_i32_0 = arith.constant 0 : i32
    return %arg0, %c0_i32 : i32, i32
  }
  func.func @transform_1(%arg0: i32) -> (i32, i32) {
    %c0_i32 = arith.constant 0 : i32
    %c0_i32_0 = arith.constant 0 : i32
    %c0_i32_1 = arith.constant 0 : i32
    return %c0_i32, %c0_i32_0 : i32, i32
  }
  func.func @transform_2(%arg0: i32) -> (i32, i32) {
    %c0_i32 = arith.constant 0 : i32
    %c0_i32_0 = arith.constant 0 : i32
    %c0_i32_1 = arith.constant 0 : i32
    return %c0_i32, %c0_i32_0 : i32, i32
  }
  func.func @transform_3(%arg0: i32) -> (i32, i32) {
    %c0_i32 = arith.constant 0 : i32
    %c0_i32_0 = arith.constant 0 : i32
    return %arg0, %c0_i32 : i32, i32
  }
}

module attributes {stable_mosaic.version = 11 : i64} {
  func.func @_matmul_bias_kernel(%arg0: i32, %arg1: memref<64x784xbf16, #tpu.memory_space<vmem>>, %arg2: memref<784x128xbf16, #tpu.memory_space<vmem>>, %arg3: memref<1x128xf32, #tpu.memory_space<vmem>>, %arg4: memref<64x128xbf16, #tpu.memory_space<vmem>>) attributes {dimension_semantics = [#tpu.dimension_semantics<parallel>], iteration_bounds = array<i64: 2>, scalar_prefetch = 0 : i64, scratch_operands = 0 : i64, tpu.core_type = #tpu.core_type<tc>, window_params = [{transform_indices = @transform_0, window_bounds = array<i64: 64, 784>}, {pipeline_mode = #tpu.pipeline_mode<synchronous>, transform_indices = @transform_1, window_bounds = array<i64: 784, 128>}, {pipeline_mode = #tpu.pipeline_mode<synchronous>, transform_indices = @transform_2, window_bounds = array<i64: 1, 128>}, {transform_indices = @transform_3, window_bounds = array<i64: 64, 128>}]} {
    %c0 = arith.constant 0 : index
    %c0_0 = arith.constant 0 : index
    %0 = vector.load %arg1[%c0, %c0_0] : memref<64x784xbf16, #tpu.memory_space<vmem>>, vector<64x784xbf16>
    %c0_1 = arith.constant 0 : index
    %c0_2 = arith.constant 0 : index
    %1 = vector.load %arg2[%c0_1, %c0_2] : memref<784x128xbf16, #tpu.memory_space<vmem>>, vector<784x128xbf16>
    %cst = arith.constant dense<0.000000e+00> : vector<64x128xf32>
    %2 = tpu.matmul %0, %1, %cst {dimension_numbers = #tpu.dot_dimension_numbers<[1], [0], [0], [1], [0, 0, 1, 1], [], []>} : vector<64x784xbf16>, vector<784x128xbf16>, vector<64x128xf32> -> vector<64x128xf32>
    %c0_3 = arith.constant 0 : index
    %c0_4 = arith.constant 0 : index
    %3 = vector.load %arg3[%c0_3, %c0_4] : memref<1x128xf32, #tpu.memory_space<vmem>>, vector<1x128xf32>
    %4 = vector.broadcast %3 : vector<1x128xf32> to vector<64x128xf32>
    %5 = arith.addf %2, %4 : vector<64x128xf32>
    %cst_5 = arith.constant 0.000000e+00 : f32
    %6 = vector.broadcast %cst_5 : f32 to vector<64x128xf32>
    %7 = arith.maximumf %5, %6 : vector<64x128xf32>
    %8 = arith.truncf %7 : vector<64x128xf32> to vector<64x128xbf16>
    %c0_6 = arith.constant 0 : index
    %c0_7 = arith.constant 0 : index
    %9 = vector.load %arg4[%c0_6, %c0_7] : memref<64x128xbf16, #tpu.memory_space<vmem>>, vector<64x128xbf16>
    tpu.vector_store %arg4[%c0_6, %c0_7], %8 {strides = array<i32>} : memref<64x128xbf16, #tpu.memory_space<vmem>>, vector<64x128xbf16>,
    return
  }
  func.func @transform_0(%arg0: i32) -> (i32, i32) {
    %c0_i32 = arith.constant 0 : i32
    %c0_i32_0 = arith.constant 0 : i32
    return %arg0, %c0_i32 : i32, i32
  }
  func.func @transform_1(%arg0: i32) -> (i32, i32) {
    %c0_i32 = arith.constant 0 : i32
    %c0_i32_0 = arith.constant 0 : i32
    %c0_i32_1 = arith.constant 0 : i32
    return %c0_i32, %c0_i32_0 : i32, i32
  }
  func.func @transform_2(%arg0: i32) -> (i32, i32) {
    %c0_i32 = arith.constant 0 : i32
    %c0_i32_0 = arith.constant 0 : i32
    %c0_i32_1 = arith.constant 0 : i32
    return %c0_i32, %c0_i32_0 : i32, i32
  }
  func.func @transform_3(%arg0: i32) -> (i32, i32) {
    %c0_i32 = arith.constant 0 : i32
    %c0_i32_0 = arith.constant 0 : i32
    return %arg0, %c0_i32 : i32, i32
  }
}

module attributes {stable_mosaic.version = 11 : i64} {
  func.func @_pool_kernel(%arg0: i32, %arg1: memref<8x2x4x64xbf16, #tpu.memory_space<vmem>>, %arg2: memref<8x4x32xbf16, #tpu.memory_space<vmem>>) attributes {dimension_semantics = [#tpu.dimension_semantics<parallel>], iteration_bounds = array<i64: 1>, scalar_prefetch = 0 : i64, scratch_operands = 0 : i64, tpu.core_type = #tpu.core_type<tc>, window_params = [{transform_indices = @transform_0, window_bounds = array<i64: 8, 2, 4, 64>}, {transform_indices = @transform_1, window_bounds = array<i64: 8, 4, 32>}]} {
    %c0 = arith.constant 0 : index
    %c0_0 = arith.constant 0 : index
    %c0_1 = arith.constant 0 : index
    %c0_2 = arith.constant 0 : index
    %0 = vector.load %arg1[%c0, %c0_0, %c0_1, %c0_2] : memref<8x2x4x64xbf16, #tpu.memory_space<vmem>>, vector<8x2x4x64xbf16>
    %1 = vector.extract_strided_slice %0 {offsets = [0, 0, 0, 0], sizes = [8, 1, 4, 64], strides = [1, 1, 1, 1]} : vector<8x2x4x64xbf16> to vector<8x1x4x64xbf16>
    %2 = vector.shape_cast %1 : vector<8x1x4x64xbf16> to vector<8x4x64xbf16>
    %3 = vector.extract_strided_slice %0 {offsets = [0, 1, 0, 0], sizes = [8, 1, 4, 64], strides = [1, 1, 1, 1]} : vector<8x2x4x64xbf16> to vector<8x1x4x64xbf16>
    %4 = vector.shape_cast %3 : vector<8x1x4x64xbf16> to vector<8x4x64xbf16>
    %5 = arith.maximumf %2, %4 : vector<8x4x64xbf16>
    %6 = vector.extract_strided_slice %5 {offsets = [0, 0, 0], sizes = [8, 4, 32], strides = [1, 1, 1]} : vector<8x4x64xbf16> to vector<8x4x32xbf16>
    %7 = vector.extract_strided_slice %5 {offsets = [0, 0, 32], sizes = [8, 4, 32], strides = [1, 1, 1]} : vector<8x4x64xbf16> to vector<8x4x32xbf16>
    %8 = arith.maximumf %6, %7 : vector<8x4x32xbf16>
    %c0_3 = arith.constant 0 : index
    %c0_4 = arith.constant 0 : index
    %c0_5 = arith.constant 0 : index
    %9 = vector.load %arg2[%c0_3, %c0_4, %c0_5] : memref<8x4x32xbf16, #tpu.memory_space<vmem>>, vector<8x4x32xbf16>
    tpu.vector_store %arg2[%c0_3, %c0_4, %c0_5], %8 {strides = array<i32>} : memref<8x4x32xbf16, #tpu.memory_space<vmem>>, vector<8x4x32xbf16>,
    return
  }
  func.func @transform_0(%arg0: i32) -> (i32, i32, i32, i32) {
    %c0_i32 = arith.constant 0 : i32
    %c0_i32_0 = arith.constant 0 : i32
    %c0_i32_1 = arith.constant 0 : i32
    %c0_i32_2 = arith.constant 0 : i32
    return %arg0, %c0_i32, %c0_i32_0, %c0_i32_1 : i32, i32, i32, i32
  }
  func.func @transform_1(%arg0: i32) -> (i32, i32, i32) {
    %c0_i32 = arith.constant 0 : i32
    %c0_i32_0 = arith.constant 0 : i32
    %c0_i32_1 = arith.constant 0 : i32
    return %arg0, %c0_i32, %c0_i32_0 : i32, i32, i32
  }
}

module attributes {stable_mosaic.version = 11 : i64} {
  func.func @_matmul_bias_kernel(%arg0: i32, %arg1: memref<16x1568xbf16, #tpu.memory_space<vmem>>, %arg2: memref<1568x128xbf16, #tpu.memory_space<vmem>>, %arg3: memref<1x128xf32, #tpu.memory_space<vmem>>, %arg4: memref<16x128xbf16, #tpu.memory_space<vmem>>) attributes {dimension_semantics = [#tpu.dimension_semantics<parallel>], iteration_bounds = array<i64: 2>, scalar_prefetch = 0 : i64, scratch_operands = 0 : i64, tpu.core_type = #tpu.core_type<tc>, window_params = [{transform_indices = @transform_0, window_bounds = array<i64: 16, 1568>}, {pipeline_mode = #tpu.pipeline_mode<synchronous>, transform_indices = @transform_1, window_bounds = array<i64: 1568, 128>}, {pipeline_mode = #tpu.pipeline_mode<synchronous>, transform_indices = @transform_2, window_bounds = array<i64: 1, 128>}, {transform_indices = @transform_3, window_bounds = array<i64: 16, 128>}]} {
    %c0 = arith.constant 0 : index
    %c0_0 = arith.constant 0 : index
    %0 = vector.load %arg1[%c0, %c0_0] : memref<16x1568xbf16, #tpu.memory_space<vmem>>, vector<16x1568xbf16>
    %c0_1 = arith.constant 0 : index
    %c0_2 = arith.constant 0 : index
    %1 = vector.load %arg2[%c0_1, %c0_2] : memref<1568x128xbf16, #tpu.memory_space<vmem>>, vector<1568x128xbf16>
    %cst = arith.constant dense<0.000000e+00> : vector<16x128xf32>
    %2 = tpu.matmul %0, %1, %cst {dimension_numbers = #tpu.dot_dimension_numbers<[1], [0], [0], [1], [0, 0, 1, 1], [], []>} : vector<16x1568xbf16>, vector<1568x128xbf16>, vector<16x128xf32> -> vector<16x128xf32>
    %c0_3 = arith.constant 0 : index
    %c0_4 = arith.constant 0 : index
    %3 = vector.load %arg3[%c0_3, %c0_4] : memref<1x128xf32, #tpu.memory_space<vmem>>, vector<1x128xf32>
    %4 = vector.broadcast %3 : vector<1x128xf32> to vector<16x128xf32>
    %5 = arith.addf %2, %4 : vector<16x128xf32>
    %cst_5 = arith.constant 0.000000e+00 : f32
    %6 = vector.broadcast %cst_5 : f32 to vector<16x128xf32>
    %7 = arith.maximumf %5, %6 : vector<16x128xf32>
    %8 = arith.truncf %7 : vector<16x128xf32> to vector<16x128xbf16>
    %c0_6 = arith.constant 0 : index
    %c0_7 = arith.constant 0 : index
    %9 = vector.load %arg4[%c0_6, %c0_7] : memref<16x128xbf16, #tpu.memory_space<vmem>>, vector<16x128xbf16>
    tpu.vector_store %arg4[%c0_6, %c0_7], %8 {strides = array<i32>} : memref<16x128xbf16, #tpu.memory_space<vmem>>, vector<16x128xbf16>,
    return
  }
  func.func @transform_0(%arg0: i32) -> (i32, i32) {
    %c0_i32 = arith.constant 0 : i32
    %c0_i32_0 = arith.constant 0 : i32
    return %arg0, %c0_i32 : i32, i32
  }
  func.func @transform_1(%arg0: i32) -> (i32, i32) {
    %c0_i32 = arith.constant 0 : i32
    %c0_i32_0 = arith.constant 0 : i32
    %c0_i32_1 = arith.constant 0 : i32
    return %c0_i32, %c0_i32_0 : i32, i32
  }
  func.func @transform_2(%arg0: i32) -> (i32, i32) {
    %c0_i32 = arith.constant 0 : i32
    %c0_i32_0 = arith.constant 0 : i32
    %c0_i32_1 = arith.constant 0 : i32
    return %c0_i32, %c0_i32_0 : i32, i32
  }
  func.func @transform_3(%arg0: i32) -> (i32, i32) {
    %c0_i32 = arith.constant 0 : i32
    %c0_i32_0 = arith.constant 0 : i32
    return %arg0, %c0_i32 : i32, i32
  }
}

module attributes {stable_mosaic.version = 11 : i64} {
  func.func @_matmul_bias_kernel(%arg0: i32, %arg1: memref<16x784xbf16, #tpu.memory_space<vmem>>, %arg2: memref<784x128xbf16, #tpu.memory_space<vmem>>, %arg3: memref<1x128xf32, #tpu.memory_space<vmem>>, %arg4: memref<16x128xbf16, #tpu.memory_space<vmem>>) attributes {dimension_semantics = [#tpu.dimension_semantics<parallel>], iteration_bounds = array<i64: 2>, scalar_prefetch = 0 : i64, scratch_operands = 0 : i64, tpu.core_type = #tpu.core_type<tc>, window_params = [{transform_indices = @transform_0, window_bounds = array<i64: 16, 784>}, {pipeline_mode = #tpu.pipeline_mode<synchronous>, transform_indices = @transform_1, window_bounds = array<i64: 784, 128>}, {pipeline_mode = #tpu.pipeline_mode<synchronous>, transform_indices = @transform_2, window_bounds = array<i64: 1, 128>}, {transform_indices = @transform_3, window_bounds = array<i64: 16, 128>}]} {
    %c0 = arith.constant 0 : index
    %c0_0 = arith.constant 0 : index
    %0 = vector.load %arg1[%c0, %c0_0] : memref<16x784xbf16, #tpu.memory_space<vmem>>, vector<16x784xbf16>
    %c0_1 = arith.constant 0 : index
    %c0_2 = arith.constant 0 : index
    %1 = vector.load %arg2[%c0_1, %c0_2] : memref<784x128xbf16, #tpu.memory_space<vmem>>, vector<784x128xbf16>
    %cst = arith.constant dense<0.000000e+00> : vector<16x128xf32>
    %2 = tpu.matmul %0, %1, %cst {dimension_numbers = #tpu.dot_dimension_numbers<[1], [0], [0], [1], [0, 0, 1, 1], [], []>} : vector<16x784xbf16>, vector<784x128xbf16>, vector<16x128xf32> -> vector<16x128xf32>
    %c0_3 = arith.constant 0 : index
    %c0_4 = arith.constant 0 : index
    %3 = vector.load %arg3[%c0_3, %c0_4] : memref<1x128xf32, #tpu.memory_space<vmem>>, vector<1x128xf32>
    %4 = vector.broadcast %3 : vector<1x128xf32> to vector<16x128xf32>
    %5 = arith.addf %2, %4 : vector<16x128xf32>
    %cst_5 = arith.constant 0.000000e+00 : f32
    %6 = vector.broadcast %cst_5 : f32 to vector<16x128xf32>
    %7 = arith.maximumf %5, %6 : vector<16x128xf32>
    %8 = arith.truncf %7 : vector<16x128xf32> to vector<16x128xbf16>
    %c0_6 = arith.constant 0 : index
    %c0_7 = arith.constant 0 : index
    %9 = vector.load %arg4[%c0_6, %c0_7] : memref<16x128xbf16, #tpu.memory_space<vmem>>, vector<16x128xbf16>
    tpu.vector_store %arg4[%c0_6, %c0_7], %8 {strides = array<i32>} : memref<16x128xbf16, #tpu.memory_space<vmem>>, vector<16x128xbf16>,
    return
  }
  func.func @transform_0(%arg0: i32) -> (i32, i32) {
    %c0_i32 = arith.constant 0 : i32
    %c0_i32_0 = arith.constant 0 : i32
    return %arg0, %c0_i32 : i32, i32
  }
  func.func @transform_1(%arg0: i32) -> (i32, i32) {
    %c0_i32 = arith.constant 0 : i32
    %c0_i32_0 = arith.constant 0 : i32
    %c0_i32_1 = arith.constant 0 : i32
    return %c0_i32, %c0_i32_0 : i32, i32
  }
  func.func @transform_2(%arg0: i32) -> (i32, i32) {
    %c0_i32 = arith.constant 0 : i32
    %c0_i32_0 = arith.constant 0 : i32
    %c0_i32_1 = arith.constant 0 : i32
    return %c0_i32, %c0_i32_0 : i32, i32
  }
  func.func @transform_3(%arg0: i32) -> (i32, i32) {
    %c0_i32 = arith.constant 0 : i32
    %c0_i32_0 = arith.constant 0 : i32
    return %arg0, %c0_i32 : i32, i32
  }
}

module attributes {stable_mosaic.version = 11 : i64} {
  func.func @_matmul_bias_kernel(%arg0: i32, %arg1: memref<16x30xbf16, #tpu.memory_space<vmem>>, %arg2: memref<30x128xbf16, #tpu.memory_space<vmem>>, %arg3: memref<1x128xf32, #tpu.memory_space<vmem>>, %arg4: memref<16x128xf32, #tpu.memory_space<vmem>>) attributes {dimension_semantics = [#tpu.dimension_semantics<parallel>], iteration_bounds = array<i64: 2>, scalar_prefetch = 0 : i64, scratch_operands = 0 : i64, tpu.core_type = #tpu.core_type<tc>, window_params = [{transform_indices = @transform_0, window_bounds = array<i64: 16, 30>}, {pipeline_mode = #tpu.pipeline_mode<synchronous>, transform_indices = @transform_1, window_bounds = array<i64: 30, 128>}, {pipeline_mode = #tpu.pipeline_mode<synchronous>, transform_indices = @transform_2, window_bounds = array<i64: 1, 128>}, {transform_indices = @transform_3, window_bounds = array<i64: 16, 128>}]} {
    %c0 = arith.constant 0 : index
    %c0_0 = arith.constant 0 : index
    %0 = vector.load %arg1[%c0, %c0_0] : memref<16x30xbf16, #tpu.memory_space<vmem>>, vector<16x30xbf16>
    %c0_1 = arith.constant 0 : index
    %c0_2 = arith.constant 0 : index
    %1 = vector.load %arg2[%c0_1, %c0_2] : memref<30x128xbf16, #tpu.memory_space<vmem>>, vector<30x128xbf16>
    %cst = arith.constant dense<0.000000e+00> : vector<16x128xf32>
    %2 = tpu.matmul %0, %1, %cst {dimension_numbers = #tpu.dot_dimension_numbers<[1], [0], [0], [1], [0, 0, 1, 1], [], []>} : vector<16x30xbf16>, vector<30x128xbf16>, vector<16x128xf32> -> vector<16x128xf32>
    %c0_3 = arith.constant 0 : index
    %c0_4 = arith.constant 0 : index
    %3 = vector.load %arg3[%c0_3, %c0_4] : memref<1x128xf32, #tpu.memory_space<vmem>>, vector<1x128xf32>
    %4 = vector.broadcast %3 : vector<1x128xf32> to vector<16x128xf32>
    %5 = arith.addf %2, %4 : vector<16x128xf32>
    %c0_5 = arith.constant 0 : index
    %c0_6 = arith.constant 0 : index
    %6 = vector.load %arg4[%c0_5, %c0_6] : memref<16x128xf32, #tpu.memory_space<vmem>>, vector<16x128xf32>
    tpu.vector_store %arg4[%c0_5, %c0_6], %5 {strides = array<i32>} : memref<16x128xf32, #tpu.memory_space<vmem>>, vector<16x128xf32>,
    return
  }
  func.func @transform_0(%arg0: i32) -> (i32, i32) {
    %c0_i32 = arith.constant 0 : i32
    %c0_i32_0 = arith.constant 0 : i32
    return %arg0, %c0_i32 : i32, i32
  }
  func.func @transform_1(%arg0: i32) -> (i32, i32) {
    %c0_i32 = arith.constant 0 : i32
    %c0_i32_0 = arith.constant 0 : i32
    %c0_i32_1 = arith.constant 0 : i32
    return %c0_i32, %c0_i32_0 : i32, i32
  }
  func.func @transform_2(%arg0: i32) -> (i32, i32) {
    %c0_i32 = arith.constant 0 : i32
    %c0_i32_0 = arith.constant 0 : i32
    %c0_i32_1 = arith.constant 0 : i32
    return %c0_i32, %c0_i32_0 : i32, i32
  }
  func.func @transform_3(%arg0: i32) -> (i32, i32) {
    %c0_i32 = arith.constant 0 : i32
    %c0_i32_0 = arith.constant 0 : i32
    return %arg0, %c0_i32 : i32, i32
  }
}

</mosaic_0001>

<bundles_post_ra>
// kernel: mcnn_forward.15
= control target key start
LH: loop header
LB: loop body
LE: loop exit
PB: predicated region body
PF: predicated region fallthrough
CT: control target
= control target key end

     0   :  { %s1281_s12 = smov 0   ;;  %s1487_s0 = inlined_call_operand.vmem [shape: bf16[512,243], index: 0, kind: input, shape index: {}]   ;;  %s1488_s1 = inlined_call_operand.vmem [shape: bf16[243,128], index: 1, kind: input, shape index: {}]   ;;  %s1489_s2 = inlined_call_operand.vmem [shape: f32[1,128], index: 2, kind: input, shape index: {}]   ;;  %s1490_s3 = inlined_call_operand.vmem [shape: bf16[512,128], index: 3, kind: output, shape index: {}]  }
   0x1 LB: > { %s867_s13 = sadd.s32 4294967295, %s1258_s12   ;;  %p871_p0 = scmp.ge.s32.totalorder %s1258_s12, 1  ;;  %s1258_s12 = sphi %s1281_s12, %s13_s12  }
   0x2   : > { %p139_p1 = scmp.lt.s32.totalorder %s1258_s12, 3 }
   0x4   : > { %p140_p2 = pnand %p871_p0, %p139_p1 }
   0x5   : > { %s872_s24 = sshll.u32 (!%p140_p2), %s867_s13, 5 }
   0x6   : > { %143 = sbr.rel (%p140_p2) target bundleno = 309 (0x135), region = 32  ;;  %p165_p3 = scmp.lt.s32.totalorder (!%p140_p2), %s872_s24, 63 }
   0xb   : > { %v1123_v0 = vld [vmem:[%s1488_s1 + $0x38] sm:$0xff]  ;;  %vm530_vm0 = vcmask 1040384   ;;  %vm531_vm1 = vcmask 1041408   ;;  %v1122_v3 = vld [vmem:[%s1488_s1 + $0x30] sm:$0xff]  ;;  %v1260_v4 = vmov 65535   ;;  %v1121_v9 = vld [vmem:[%s1488_s1 + $0x28] sm:$0xff] }
   0xc   : > { %v239_v1 = vld [vmem:[%s1488_s1 + $0x78] sm:$0x3]  ;;  %537 = vmatpush.bf16.msra.mxu0 %v1123_v0  ;;  %1226 = vmatpush.bf16.msra.mxu2 %v1123_v0  ;;  %v532_v5 = vsel %vm530_vm0, 4294967295, %v1260_v4  ;;  %v1130_v10 = vld [vmem:[%s1488_s1 + $0x70] sm:$0xff]  ;;  %v1120_v11 = vld [vmem:[%s1488_s1 + $0x20] sm:$0xff]  ;;  %s1492_s24 = smov (!%p165_p3, %s872_s24), 63 }
   0xd   : > { %v449_v2 = vunpack.c.l.b16 %v239_v1  ;;  %v533_v7 = vsel %vm531_vm1, %v532_v5, 0  ;;  %v1129_v12 = vld [vmem:[%s1488_s1 + $0x68] sm:$0xff]  ;;  %v1119_v13 = vld [vmem:[%s1488_s1 + $0x18] sm:$0xff]  ;;  %v1128_v14 = vld [vmem:[%s1488_s1 + $0x60] sm:$0xff]  ;;  %s1083_s10 = sshll.u32 %s1492_s24, 3  ;;  %vm481_vm2 = vcmask 941056  }
   0xe   : > { %v1118_v15 = vld [vmem:[%s1488_s1 + $0x10] sm:$0xff]  ;;  %v1127_v16 = vld [vmem:[%s1488_s1 + $0x58] sm:$0xff]  ;;  %v1117_v17 = vld [vmem:[%s1488_s1 + $0x8] sm:$0xff]  ;;  %s1331_s16 = scalar_lea.vmem %s1487_s0, %s1083_s10  ;;  %s876_s28 = sshll.u32 %s1492_s24, 2 }
   0xf   : > { %v465_v6 = vpack.c.b16 %v449_v2, %v449_v2  ;;  %v1126_v18 = vld [vmem:[%s1488_s1 + $0x50] sm:$0xff]  ;;  %v1116_v19 = vld [vmem:[%s1488_s1] sm:$0xff]  ;;  %v1085_v21 = vld [vmem:[%s1331_s16 + $0x4] sm:$0xf0]  ;;  %s1437_s4 = scalar_lea.vmem %s1490_s3, %s876_s28 }
  0x10   : > { %538 = vmatpush.bf16.msra.mxu0 %v1122_v3  ;;  %1227 = vmatpush.bf16.msra.mxu2 %v1122_v3  ;;  %v879_v20 = vld [vmem:[%s1331_s16] sm:$0xf]  ;;  %v1101_v23 = vld [vmem:[%s1331_s16 + $0x84] sm:$0xf0]  ;;  %v1084_v28 = vld [vmem:[%s1331_s16 + $0x4] sm:$0xf] }
  0x11   : > { %v535_v8 = vand.u32 %v533_v7, %v465_v6  ;;  %v943_v22 = vld [vmem:[%s1331_s16 + $0x80] sm:$0xf]  ;;  %v1125_v24 = vld [vmem:[%s1488_s1 + $0x48] sm:$0xff]  ;;  %v880_v25 = vor.u32 %v1085_v21, %v879_v20  ;;  %v1100_v30 = vld [vmem:[%s1331_s16 + $0x84] sm:$0xf] }
  0x12   : > { %v944_v26 = vor.u32 %v1101_v23, %v943_v22  ;;  %v1124_v27 = vld [vmem:[%s1488_s1 + $0x40] sm:$0xff]  ;;  %v881_v29 = vld [vmem:[%s1331_s16 + $0x8] sm:$0xf0]  ;;  %v887_v34 = vld [vmem:[%s1331_s16 + $0x10] sm:$0xf] }
  0x13   : > { %626 = vmatpush.bf16.msra.mxu1 %v535_v8  ;;  %1234 = vmatpush.bf16.msra.mxu3 %v535_v8  ;;  %v945_v31 = vld [vmem:[%s1331_s16 + $0x88] sm:$0xf0]  ;;  %v884_v32 = vor.u32 %v1084_v28, %v881_v29  ;;  %v1087_v35 = vld [vmem:[%s1331_s16 + $0x14] sm:$0xf0]  ;;  %v951_v36 = vld [vmem:[%s1331_s16 + $0x90] sm:$0xf] }
  0x14   : > { %539 = vmatpush.bf16.msra.mxu0 %v1121_v9  ;;  %1228 = vmatpush.bf16.msra.mxu2 %v1121_v9  ;;  %v948_v33 = vor.u32 %v1100_v30, %v945_v31  ;;  %v1103_v37 = vld [vmem:[%s1331_s16 + $0x94] sm:$0xf0]  ;;  %v888_v38 = vor.u32 %v1087_v35, %v887_v34  ;;  %v1086_v40 = vld [vmem:[%s1331_s16 + $0x14] sm:$0xf]  ;;  %v889_v41 = vld [vmem:[%s1331_s16 + $0x18] sm:$0xf0] }
  0x15   : > { %v952_v39 = vor.u32 %v1103_v37, %v951_v36  ;;  %v1102_v42 = vld [vmem:[%s1331_s16 + $0x94] sm:$0xf]  ;;  %v953_v43 = vld [vmem:[%s1331_s16 + $0x98] sm:$0xf0]  ;;  %v892_v44 = vor.u32 %v1086_v40, %v889_v41  ;;  %v895_v46 = vld [vmem:[%s1331_s16 + $0x20] sm:$0xf] }
  0x16   : > { %v956_v45 = vor.u32 %v1102_v42, %v953_v43  ;;  %v1089_v47 = vld [vmem:[%s1331_s16 + $0x24] sm:$0xf0]  ;;  %v959_v48 = vld [vmem:[%s1331_s16 + $0xa0] sm:$0xf]  ;;  %v1088_v52 = vld [vmem:[%s1331_s16 + $0x24] sm:$0xf] }
  0x17   : > { %627 = vmatpush.bf16.msra.mxu1 %v1130_v10  ;;  %1235 = vmatpush.bf16.msra.mxu3 %v1130_v10  ;;  %v1105_v49 = vld [vmem:[%s1331_s16 + $0xa4] sm:$0xf0]  ;;  %v896_v50 = vor.u32 %v1089_v47, %v895_v46  ;;  %v897_v53 = vld [vmem:[%s1331_s16 + $0x28] sm:$0xf0]  ;;  %v1104_v54 = vld [vmem:[%s1331_s16 + $0xa4] sm:$0xf] }
  0x18   : > { %540 = vmatpush.bf16.msra.mxu0 %v1120_v11  ;;  %1229 = vmatpush.bf16.msra.mxu2 %v1120_v11  ;;  %v960_v51 = vor.u32 %v1105_v49, %v959_v48  ;;  %v961_v55 = vld [vmem:[%s1331_s16 + $0xa8] sm:$0xf0]  ;;  %v900_v56 = vor.u32 %v1088_v52, %v897_v53  ;;  %v903_v58 = vld [vmem:[%s1331_s16 + $0x30] sm:$0xf]  ;;  %v1091_v59 = vld [vmem:[%s1331_s16 + $0x34] sm:$0xf0] }
  0x19   : > { %v964_v57 = vor.u32 %v1104_v54, %v961_v55  ;;  %v967_v60 = vld [vmem:[%s1331_s16 + $0xb0] sm:$0xf]  ;;  %v1107_v61 = vld [vmem:[%s1331_s16 + $0xb4] sm:$0xf0]  ;;  %v904_v62 = vor.u32 %v1091_v59, %v903_v58  ;;  %v1090_v0 = vld [vmem:[%s1331_s16 + $0x34] sm:$0xf] }
  0x1a   : > { %v968_v63 = vor.u32 %v1107_v61, %v967_v60  ;;  %v905_v1 = vld [vmem:[%s1331_s16 + $0x38] sm:$0xf0]  ;;  %v1106_v2 = vld [vmem:[%s1331_s16 + $0xb4] sm:$0xf]  ;;  %v911_v6 = vld [vmem:[%s1331_s16 + $0x40] sm:$0xf] }
  0x1b   : > { %628 = vmatpush.bf16.msra.mxu1 %v1129_v12  ;;  %1236 = vmatpush.bf16.msra.mxu3 %v1129_v12  ;;  %v969_v3 = vld [vmem:[%s1331_s16 + $0xb8] sm:$0xf0]  ;;  %v908_v4 = vor.u32 %v1090_v0, %v905_v1  ;;  %v1093_v7 = vld [vmem:[%s1331_s16 + $0x44] sm:$0xf0]  ;;  %v975_v8 = vld [vmem:[%s1331_s16 + $0xc0] sm:$0xf] }
  0x1c   : > { %541 = vmatpush.bf16.msra.mxu0 %v1119_v13  ;;  %1230 = vmatpush.bf16.msra.mxu2 %v1119_v13  ;;  %v972_v5 = vor.u32 %v1106_v2, %v969_v3  ;;  %v1109_v9 = vld [vmem:[%s1331_s16 + $0xc4] sm:$0xf0]  ;;  %v912_v10 = vor.u32 %v1093_v7, %v911_v6  ;;  %v1092_v12 = vld [vmem:[%s1331_s16 + $0x44] sm:$0xf]  ;;  %v913_v13 = vld [vmem:[%s1331_s16 + $0x48] sm:$0xf0] }
  0x1d   : > { %v976_v11 = vor.u32 %v1109_v9, %v975_v8  ;;  %v983_v20 = vld [vmem:[%s1331_s16 + $0xd0] sm:$0xf]  ;;  %v1111_v21 = vld [vmem:[%s1331_s16 + $0xd4] sm:$0xf0]  ;;  %v927_v30 = vld [vmem:[%s1331_s16 + $0x60] sm:$0xf] }
  0x1e   : > { %v984_v23 = vor.u32 %v1111_v21, %v983_v20  ;;  %v1097_v31 = vld [vmem:[%s1331_s16 + $0x64] sm:$0xf0]  ;;  %v1096_v36 = vld [vmem:[%s1331_s16 + $0x64] sm:$0xf]  ;;  %v929_v37 = vld [vmem:[%s1331_s16 + $0x68] sm:$0xf0] }
  0x1f   : > { %629 = vmatpush.bf16.msra.mxu1 %v1128_v14  ;;  %1237 = vmatpush.bf16.msra.mxu3 %v1128_v14  ;;  %v1108_v14 = vld [vmem:[%s1331_s16 + $0xc4] sm:$0xf]  ;;  %v928_v34 = vor.u32 %v1097_v31, %v927_v30  ;;  %v932_v40 = vor.u32 %v1096_v36, %v929_v37  ;;  %v935_v42 = vld [vmem:[%s1331_s16 + $0x70] sm:$0xf]  ;;  %v1099_v43 = vld [vmem:[%s1331_s16 + $0x74] sm:$0xf0] }
  0x20   : > { %542 = vmatpush.bf16.msra.mxu0 %v1118_v15  ;;  %1231 = vmatpush.bf16.msra.mxu2 %v1118_v15  ;;  %v977_v15 = vld [vmem:[%s1331_s16 + $0xc8] sm:$0xf0]  ;;  %v936_v46 = vor.u32 %v1099_v43, %v935_v42  ;;  %v1098_v48 = vld [vmem:[%s1331_s16 + $0x74] sm:$0xf]  ;;  %v937_v49 = vld [vmem:[%s1331_s16 + $0x78] sm:$0xf0] }
  0x21   : > { %v940_v52 = vor.u32 %v1098_v48, %v937_v49  ;;  %v1428_v55 = vld [vmem:[%s1489_s2] ss:$0 sm:$0xff] }
  0x23   : > { %630 = vmatpush.bf16.msra.mxu1 %v1127_v16  ;;  %1238 = vmatpush.bf16.msra.mxu3 %v1127_v16  ;;  %v916_v16 = vor.u32 %v1092_v12, %v913_v13 }
  0x24   : > { %543 = vmatpush.bf16.msra.mxu0 %v1117_v17  ;;  %1232 = vmatpush.bf16.msra.mxu2 %v1117_v17  ;;  %v980_v17 = vor.u32 %v1108_v14, %v977_v15 }
  0x27   : > { %631 = vmatpush.bf16.msra.mxu1 %v1126_v18  ;;  %1239 = vmatpush.bf16.msra.mxu3 %v1126_v18  ;;  %v919_v18 = vld [vmem:[%s1331_s16 + $0x50] sm:$0xf] }
  0x28   : > { %544 = vmatpush.bf16.msra.mxu0 %v1116_v19  ;;  %1233 = vmatpush.bf16.msra.mxu2 %v1116_v19  ;;  %v1095_v19 = vld [vmem:[%s1331_s16 + $0x54] sm:$0xf0] }
  0x29   : > { %v920_v22 = vor.u32 %v1095_v19, %v919_v18 }
  0x2b   : > { %632 = vmatpush.bf16.msra.mxu1 %v1125_v24  ;;  %1240 = vmatpush.bf16.msra.mxu3 %v1125_v24  ;;  %v1094_v24 = vld [vmem:[%s1331_s16 + $0x54] sm:$0xf] }
  0x2c   : > { %545 = vmatmul.bf16.vlgmr.msra.gmra.mxu0 %v880_v25  ;;  %585 = vmatmul.bf16.vlgmr.msra.gmra.mxu2 %v944_v26  ;;  %v921_v25 = vld [vmem:[%s1331_s16 + $0x58] sm:$0xf0]  ;;  %v1110_v26 = vld [vmem:[%s1331_s16 + $0xd4] sm:$0xf] }
  0x2d   : > { %v924_v28 = vor.u32 %v1094_v24, %v921_v25 }
  0x2f   : > { %633 = vmatpush.bf16.msra.mxu1 %v1124_v27  ;;  %1241 = vmatpush.bf16.msra.mxu3 %v1124_v27  ;;  %v985_v27 = vld [vmem:[%s1331_s16 + $0xd8] sm:$0xf0] }
  0x30   : > { %v988_v29 = vor.u32 %v1110_v26, %v985_v27 }
  0x32   : > { %1065 = vmatmul.msk.bf16.vlgmr.msra.gmra.mxu1 %vm481_vm2, %v884_v32  ;;  %1073 = vmatmul.msk.bf16.vlgmr.msra.gmra.mxu3 %vm481_vm2, %v948_v33  ;;  %v991_v32 = vld [vmem:[%s1331_s16 + $0xe0] sm:$0xf]  ;;  %v1113_v33 = vld [vmem:[%s1331_s16 + $0xe4] sm:$0xf0] }
  0x33   : > { %v992_v35 = vor.u32 %v1113_v33, %v991_v32 }
  0x3c   : > { %550 = vmatmul.bf16.gmra.mxu0 %v888_v38  ;;  %590 = vmatmul.bf16.gmra.mxu2 %v952_v39  ;;  %v1112_v38 = vld [vmem:[%s1331_s16 + $0xe4] sm:$0xf]  ;;  %v993_v39 = vld [vmem:[%s1331_s16 + $0xe8] sm:$0xf0] }
  0x3d   : > { %v996_v41 = vor.u32 %v1112_v38, %v993_v39 }
  0x42   : > { %1066 = vmatmul.msk.bf16.gmra.mxu1 %vm481_vm2, %v892_v44  ;;  %1074 = vmatmul.msk.bf16.gmra.mxu3 %vm481_vm2, %v956_v45  ;;  %v999_v44 = vld [vmem:[%s1331_s16 + $0xf0] sm:$0xf]  ;;  %v1115_v45 = vld [vmem:[%s1331_s16 + $0xf4] sm:$0xf0] }
  0x43   : > { %v1000_v47 = vor.u32 %v1115_v45, %v999_v44 }
  0x4c   : > { %555 = vmatmul.bf16.gmra.mxu0 %v896_v50  ;;  %595 = vmatmul.bf16.gmra.mxu2 %v960_v51  ;;  %v1114_v50 = vld [vmem:[%s1331_s16 + $0xf4] sm:$0xf]  ;;  %v1001_v51 = vld [vmem:[%s1331_s16 + $0xf8] sm:$0xf0] }
  0x4d   : > { %v1004_v53 = vor.u32 %v1114_v50, %v1001_v51 }
  0x52   : > { %1067 = vmatmul.msk.bf16.gmra.mxu1 %vm481_vm2, %v900_v56  ;;  %1075 = vmatmul.msk.bf16.gmra.mxu3 %vm481_vm2, %v964_v57 }
  0x5c   : > { %560 = vmatmul.bf16.gmra.mxu0 %v904_v62  ;;  %600 = vmatmul.bf16.gmra.mxu2 %v968_v63 }
  0x62   : > { %1068 = vmatmul.msk.bf16.gmra.mxu1 %vm481_vm2, %v908_v4  ;;  %1076 = vmatmul.msk.bf16.gmra.mxu3 %vm481_vm2, %v972_v5 }
  0x6c   : > { %565 = vmatmul.bf16.gmra.mxu0 %v912_v10  ;;  %605 = vmatmul.bf16.gmra.mxu2 %v976_v11 }
  0x72   : > { %1069 = vmatmul.msk.bf16.gmra.mxu1 %vm481_vm2, %v916_v16  ;;  %1077 = vmatmul.msk.bf16.gmra.mxu3 %vm481_vm2, %v980_v17 }
  0x7c   : > { %570 = vmatmul.bf16.gmra.mxu0 %v920_v22  ;;  %610 = vmatmul.bf16.gmra.mxu2 %v984_v23 }
  0x82   : > { %1070 = vmatmul.msk.bf16.gmra.mxu1 %vm481_vm2, %v924_v28  ;;  %1078 = vmatmul.msk.bf16.gmra.mxu3 %vm481_vm2, %v988_v29 }
  0x8c   : > { %575 = vmatmul.bf16.gmra.mxu0 %v928_v34  ;;  %615 = vmatmul.bf16.gmra.mxu2 %v992_v35 }
  0x92   : > { %1071 = vmatmul.msk.bf16.gmra.mxu1 %vm481_vm2, %v932_v40  ;;  %1079 = vmatmul.msk.bf16.gmra.mxu3 %vm481_vm2, %v996_v41 }
  0x9c   : > { %580 = vmatmul.bf16.gmra.mxu0 %v936_v46  ;;  %620 = vmatmul.bf16.gmra.mxu2 %v1000_v47 }
  0xa2   : > { %1072 = vmatmul.msk.bf16.gmra.mxu1 %vm481_vm2, %v940_v52  ;;  %1080 = vmatmul.msk.bf16.gmra.mxu3 %vm481_vm2, %v1004_v53 }
  0xa9   : > { %v546_v54 = vpop.f32.mrf.mxu0 }
  0xaa   : > { %v547_v58 = vadd.f32 %v1428_v55, %v546_v54 }
  0xaf   : > { %v635_v56 = vpop.f32.mrf.mxu1  ;;  %v586_v57 = vpop.f32.mrf.mxu2 }
  0xb0   : > { %v636_v61 = vadd.f32 %v635_v56, %v547_v58  ;;  %v587_v0 = vadd.f32 %v1428_v55, %v586_v57 }
  0xb1   : > { %v548_v59 = vpop.f32.mrf.mxu0 }
  0xb2   : > { %v549_v62 = vadd.f32 %v1428_v55, %v548_v59  ;;  %v715_v3 = vmax.f32 %v636_v61, 0.0 }
  0xb5   : > { %v675_v60 = vpop.f32.mrf.mxu3 }
  0xb6   : > { %v676_v6 = vadd.f32 %v675_v60, %v587_v0 }
  0xb7   : > { %v637_v63 = vpop.f32.mrf.mxu1  ;;  %v588_v2 = vpop.f32.mrf.mxu2 }
  0xb8   : > { %v638_v1 = vadd.f32 %v637_v63, %v549_v62  ;;  %v589_v8 = vadd.f32 %v1428_v55, %v588_v2  ;;  %v731_v12 = vmax.f32 %v676_v6, 0.0 }
  0xb9   : > { %v551_v5 = vpop.f32.mrf.mxu0 }
  0xba   : > { %v716_v4 = vmax.f32 %v638_v1, 0.0  ;;  %v552_v15 = vadd.f32 %v1428_v55, %v551_v5 }
  0xbc   : > { %v1134_v7 = vpack.c.bf16 %v716_v4, %v715_v3 }
  0xbd   : > { %v677_v9 = vpop.f32.mrf.mxu3 }
  0xbe   : > { %1135 = vst [vmem:[%s1437_s4] sm:$0xff] %v1134_v7   ;;  %v678_v10 = vadd.f32 %v677_v9, %v589_v8 }
  0xbf   : > { %v640_v11 = vpop.f32.mrf.mxu1  ;;  %v591_v14 = vpop.f32.mrf.mxu2 }
  0xc0   : > { %v732_v13 = vmax.f32 %v678_v10, 0.0  ;;  %v641_v19 = vadd.f32 %v640_v11, %v552_v15  ;;  %v592_v22 = vadd.f32 %v1428_v55, %v591_v14 }
  0xc1   : > { %v553_v17 = vpop.f32.mrf.mxu0 }
  0xc2   : > { %v1174_v16 = vpack.c.bf16 %v732_v13, %v731_v12  ;;  %v554_v20 = vadd.f32 %v1428_v55, %v553_v17  ;;  %v717_v25 = vmax.f32 %v641_v19, 0.0 }
  0xc4   : > { %1218 = vst [vmem:[%s1437_s4 + $0x40] sm:$0xff] %v1174_v16  }
  0xc5   : > { %v680_v18 = vpop.f32.mrf.mxu3 }
  0xc6   : > { %v681_v28 = vadd.f32 %v680_v18, %v592_v22 }
  0xc7   : > { %v642_v21 = vpop.f32.mrf.mxu1  ;;  %v593_v24 = vpop.f32.mrf.mxu2 }
  0xc8   : > { %v643_v23 = vadd.f32 %v642_v21, %v554_v20  ;;  %v594_v30 = vadd.f32 %v1428_v55, %v593_v24  ;;  %v733_v34 = vmax.f32 %v681_v28, 0.0 }
  0xc9   : > { %v556_v27 = vpop.f32.mrf.mxu0 }
  0xca   : > { %v718_v26 = vmax.f32 %v643_v23, 0.0  ;;  %v557_v37 = vadd.f32 %v1428_v55, %v556_v27 }
  0xcc   : > { %v1139_v29 = vpack.c.bf16 %v718_v26, %v717_v25 }
  0xcd   : > { %v682_v31 = vpop.f32.mrf.mxu3 }
  0xce   : > { %1211 = vst [vmem:[%s1437_s4 + $0x8] sm:$0xff] %v1139_v29   ;;  %v683_v32 = vadd.f32 %v682_v31, %v594_v30 }
  0xcf   : > { %v645_v33 = vpop.f32.mrf.mxu1  ;;  %v596_v36 = vpop.f32.mrf.mxu2 }
  0xd0   : > { %v734_v35 = vmax.f32 %v683_v32, 0.0  ;;  %v646_v41 = vadd.f32 %v645_v33, %v557_v37  ;;  %v597_v44 = vadd.f32 %v1428_v55, %v596_v36 }
  0xd1   : > { %v558_v39 = vpop.f32.mrf.mxu0 }
  0xd2   : > { %v1179_v38 = vpack.c.bf16 %v734_v35, %v733_v34  ;;  %v559_v42 = vadd.f32 %v1428_v55, %v558_v39  ;;  %v719_v47 = vmax.f32 %v646_v41, 0.0 }
  0xd4   : > { %1219 = vst [vmem:[%s1437_s4 + $0x48] sm:$0xff] %v1179_v38  }
  0xd5   : > { %v685_v40 = vpop.f32.mrf.mxu3 }
  0xd6   : > { %v686_v50 = vadd.f32 %v685_v40, %v597_v44 }
  0xd7   : > { %v647_v43 = vpop.f32.mrf.mxu1  ;;  %v598_v46 = vpop.f32.mrf.mxu2 }
  0xd8   : > { %v648_v45 = vadd.f32 %v647_v43, %v559_v42  ;;  %v599_v52 = vadd.f32 %v1428_v55, %v598_v46  ;;  %v735_v57 = vmax.f32 %v686_v50, 0.0 }
  0xd9   : > { %v561_v49 = vpop.f32.mrf.mxu0 }
  0xda   : > { %v720_v48 = vmax.f32 %v648_v45, 0.0  ;;  %v562_v60 = vadd.f32 %v1428_v55, %v561_v49 }
  0xdc   : > { %v1144_v51 = vpack.c.bf16 %v720_v48, %v719_v47 }
  0xdd   : > { %v687_v53 = vpop.f32.mrf.mxu3 }
  0xde   : > { %1212 = vst [vmem:[%s1437_s4 + $0x10] sm:$0xff] %v1144_v51   ;;  %v688_v54 = vadd.f32 %v687_v53, %v599_v52 }
  0xdf   : > { %v650_v56 = vpop.f32.mrf.mxu1  ;;  %v601_v59 = vpop.f32.mrf.mxu2 }
  0xe0   : > { %v736_v58 = vmax.f32 %v688_v54, 0.0  ;;  %v651_v0 = vadd.f32 %v650_v56, %v562_v60  ;;  %v602_v3 = vadd.f32 %v1428_v55, %v601_v59 }
  0xe1   : > { %v563_v62 = vpop.f32.mrf.mxu0 }
  0xe2   : > { %v1184_v61 = vpack.c.bf16 %v736_v58, %v735_v57  ;;  %v564_v1 = vadd.f32 %v1428_v55, %v563_v62  ;;  %v721_v6 = vmax.f32 %v651_v0, 0.0 }
  0xe4   : > { %1220 = vst [vmem:[%s1437_s4 + $0x50] sm:$0xff] %v1184_v61  }
  0xe5   : > { %v690_v63 = vpop.f32.mrf.mxu3 }
  0xe6   : > { %v691_v9 = vadd.f32 %v690_v63, %v602_v3 }
  0xe7   : > { %v652_v2 = vpop.f32.mrf.mxu1  ;;  %v603_v5 = vpop.f32.mrf.mxu2 }
  0xe8   : > { %v653_v4 = vadd.f32 %v652_v2, %v564_v1  ;;  %v604_v11 = vadd.f32 %v1428_v55, %v603_v5  ;;  %v737_v15 = vmax.f32 %v691_v9, 0.0 }
  0xe9   : > { %v566_v8 = vpop.f32.mrf.mxu0 }
  0xea   : > { %v722_v7 = vmax.f32 %v653_v4, 0.0  ;;  %v567_v18 = vadd.f32 %v1428_v55, %v566_v8 }
  0xec   : > { %v1149_v10 = vpack.c.bf16 %v722_v7, %v721_v6 }
  0xed   : > { %v692_v12 = vpop.f32.mrf.mxu3 }
  0xee   : > { %1213 = vst [vmem:[%s1437_s4 + $0x18] sm:$0xff] %v1149_v10   ;;  %v693_v13 = vadd.f32 %v692_v12, %v604_v11 }
  0xef   : > { %v655_v14 = vpop.f32.mrf.mxu1  ;;  %v606_v17 = vpop.f32.mrf.mxu2 }
  0xf0   : > { %v738_v16 = vmax.f32 %v693_v13, 0.0  ;;  %v656_v22 = vadd.f32 %v655_v14, %v567_v18  ;;  %v607_v25 = vadd.f32 %v1428_v55, %v606_v17 }
  0xf1   : > { %v568_v20 = vpop.f32.mrf.mxu0 }
  0xf2   : > { %v1189_v19 = vpack.c.bf16 %v738_v16, %v737_v15  ;;  %v569_v23 = vadd.f32 %v1428_v55, %v568_v20  ;;  %v723_v28 = vmax.f32 %v656_v22, 0.0 }
  0xf4   : > { %1221 = vst [vmem:[%s1437_s4 + $0x58] sm:$0xff] %v1189_v19  }
  0xf5   : > { %v695_v21 = vpop.f32.mrf.mxu3 }
  0xf6   : > { %v696_v31 = vadd.f32 %v695_v21, %v607_v25 }
  0xf7   : > { %v657_v24 = vpop.f32.mrf.mxu1  ;;  %v608_v27 = vpop.f32.mrf.mxu2 }
  0xf8   : > { %v658_v26 = vadd.f32 %v657_v24, %v569_v23  ;;  %v609_v33 = vadd.f32 %v1428_v55, %v608_v27  ;;  %v739_v37 = vmax.f32 %v696_v31, 0.0 }
  0xf9   : > { %v571_v30 = vpop.f32.mrf.mxu0 }
  0xfa   : > { %v724_v29 = vmax.f32 %v658_v26, 0.0  ;;  %v572_v40 = vadd.f32 %v1428_v55, %v571_v30 }
  0xfc   : > { %v1154_v32 = vpack.c.bf16 %v724_v29, %v723_v28 }
  0xfd   : > { %v697_v34 = vpop.f32.mrf.mxu3 }
  0xfe   : > { %1214 = vst [vmem:[%s1437_s4 + $0x20] sm:$0xff] %v1154_v32   ;;  %v698_v35 = vadd.f32 %v697_v34, %v609_v33 }
  0xff   : > { %v660_v36 = vpop.f32.mrf.mxu1  ;;  %v611_v39 = vpop.f32.mrf.mxu2 }
 0x100   : > { %v740_v38 = vmax.f32 %v698_v35, 0.0  ;;  %v661_v44 = vadd.f32 %v660_v36, %v572_v40  ;;  %v612_v47 = vadd.f32 %v1428_v55, %v611_v39 }
 0x101   : > { %v573_v42 = vpop.f32.mrf.mxu0 }
 0x102   : > { %v1194_v41 = vpack.c.bf16 %v740_v38, %v739_v37  ;;  %v574_v45 = vadd.f32 %v1428_v55, %v573_v42  ;;  %v725_v50 = vmax.f32 %v661_v44, 0.0 }
 0x104   : > { %1222 = vst [vmem:[%s1437_s4 + $0x60] sm:$0xff] %v1194_v41  }
 0x105   : > { %v700_v43 = vpop.f32.mrf.mxu3 }
 0x106   : > { %v701_v53 = vadd.f32 %v700_v43, %v612_v47 }
 0x107   : > { %v662_v46 = vpop.f32.mrf.mxu1  ;;  %v613_v49 = vpop.f32.mrf.mxu2 }
 0x108   : > { %v663_v48 = vadd.f32 %v662_v46, %v574_v45  ;;  %v614_v56 = vadd.f32 %v1428_v55, %v613_v49  ;;  %v741_v60 = vmax.f32 %v701_v53, 0.0 }
 0x109   : > { %v576_v52 = vpop.f32.mrf.mxu0 }
 0x10a   : > { %v726_v51 = vmax.f32 %v663_v48, 0.0  ;;  %v577_v63 = vadd.f32 %v1428_v55, %v576_v52 }
 0x10c   : > { %v1159_v54 = vpack.c.bf16 %v726_v51, %v725_v50 }
 0x10d   : > { %v702_v57 = vpop.f32.mrf.mxu3 }
 0x10e   : > { %1215 = vst [vmem:[%s1437_s4 + $0x28] sm:$0xff] %v1159_v54   ;;  %v703_v58 = vadd.f32 %v702_v57, %v614_v56 }
 0x10f   : > { %v665_v59 = vpop.f32.mrf.mxu1  ;;  %v616_v62 = vpop.f32.mrf.mxu2 }
 0x110   : > { %v742_v61 = vmax.f32 %v703_v58, 0.0  ;;  %v666_v3 = vadd.f32 %v665_v59, %v577_v63  ;;  %v617_v6 = vadd.f32 %v1428_v55, %v616_v62 }
 0x111   : > { %v578_v1 = vpop.f32.mrf.mxu0 }
 0x112   : > { %v1199_v0 = vpack.c.bf16 %v742_v61, %v741_v60  ;;  %v579_v4 = vadd.f32 %v1428_v55, %v578_v1  ;;  %v727_v9 = vmax.f32 %v666_v3, 0.0 }
 0x114   : > { %1223 = vst [vmem:[%s1437_s4 + $0x68] sm:$0xff] %v1199_v0  }
 0x115   : > { %v705_v2 = vpop.f32.mrf.mxu3 }
 0x116   : > { %v706_v12 = vadd.f32 %v705_v2, %v617_v6 }
 0x117   : > { %v667_v5 = vpop.f32.mrf.mxu1  ;;  %v618_v8 = vpop.f32.mrf.mxu2 }
 0x118   : > { %v668_v7 = vadd.f32 %v667_v5, %v579_v4  ;;  %v619_v14 = vadd.f32 %v1428_v55, %v618_v8  ;;  %v743_v18 = vmax.f32 %v706_v12, 0.0 }
 0x119   : > { %v581_v11 = vpop.f32.mrf.mxu0 }
 0x11a   : > { %v728_v10 = vmax.f32 %v668_v7, 0.0  ;;  %v582_v21 = vadd.f32 %v1428_v55, %v581_v11 }
 0x11c   : > { %v1164_v13 = vpack.c.bf16 %v728_v10, %v727_v9 }
 0x11d   : > { %v707_v15 = vpop.f32.mrf.mxu3 }
 0x11e   : > { %1216 = vst [vmem:[%s1437_s4 + $0x30] sm:$0xff] %v1164_v13   ;;  %v708_v16 = vadd.f32 %v707_v15, %v619_v14 }
 0x11f   : > { %v670_v17 = vpop.f32.mrf.mxu1  ;;  %v621_v20 = vpop.f32.mrf.mxu2 }
 0x120   : > { %v744_v19 = vmax.f32 %v708_v16, 0.0  ;;  %v671_v25 = vadd.f32 %v670_v17, %v582_v21  ;;  %v622_v28 = vadd.f32 %v1428_v55, %v621_v20 }
 0x121   : > { %v583_v23 = vpop.f32.mrf.mxu0 }
 0x122   : > { %v1204_v22 = vpack.c.bf16 %v744_v19, %v743_v18  ;;  %v584_v26 = vadd.f32 %v1428_v55, %v583_v23  ;;  %v729_v31 = vmax.f32 %v671_v25, 0.0 }
 0x124   : > { %1224 = vst [vmem:[%s1437_s4 + $0x70] sm:$0xff] %v1204_v22  }
 0x125   : > { %v710_v24 = vpop.f32.mrf.mxu3 }
 0x126   : > { %v711_v33 = vadd.f32 %v710_v24, %v622_v28 }
 0x127   : > { %v672_v27 = vpop.f32.mrf.mxu1  ;;  %v623_v30 = vpop.f32.mrf.mxu2 }
 0x128   : > { %v673_v29 = vadd.f32 %v672_v27, %v584_v26  ;;  %v624_v35 = vadd.f32 %v1428_v55, %v623_v30  ;;  %v745_v38 = vmax.f32 %v711_v33, 0.0 }
 0x12a   : > { %v730_v32 = vmax.f32 %v673_v29, 0.0 }
 0x12c   : > { %v1169_v34 = vpack.c.bf16 %v730_v32, %v729_v31 }
 0x12d   : > { %v712_v36 = vpop.f32.mrf.mxu3 }
 0x12e   : > { %1217 = vst [vmem:[%s1437_s4 + $0x38] sm:$0xff] %v1169_v34   ;;  %v713_v37 = vadd.f32 %v712_v36, %v624_v35 }
 0x130   : > { %v746_v39 = vmax.f32 %v713_v37, 0.0 }
 0x132   : > { %v1209_v40 = vpack.c.bf16 %v746_v39, %v745_v38 }
 0x134   : > { %1225 = vst [vmem:[%s1437_s4 + $0x78] sm:$0xff] %v1209_v40  }
 0x135 PF: > { %s13_s12 = sadd.s32 1, %s1258_s12  }
 0x136   : > { %p10_p4 = scmp.ge.s32.totalorder %s13_s12, 4  }
 0x138   :  { %12 = sbr.rel (!%p10_p4) target bundleno = 1 (0x1), region = 62 }

// kernel: mcnn_forward.16
= control target key start
LH: loop header
LB: loop body
LE: loop exit
PB: predicated region body
PF: predicated region fallthrough
CT: control target
= control target key end

     0   :  { %s357_s30 = smov 68   ;;  %vm216_vm0 = vcmask 486400   ;;  %s536_s0 = inlined_call_operand.vmem [shape: bf16[16,2,8,120], index: 0, kind: input, shape index: {}]   ;;  %s537_s1 = inlined_call_operand.vmem [shape: bf16[16,8,60], index: 1, kind: output, shape index: {}]  }
   0x1   :  { %v304_v0 = vld [vmem:[%s536_s0 + $0x20] sm:$0xff]   ;;  %v305_v1 = vld [vmem:[%s536_s0 + $0x28] sm:$0xff]   ;;  %v306_v8 = vld [vmem:[%s536_s0 + $0x30] sm:$0xff]  }
   0x2   :  { %v238_v2 = vld [vmem:[%s536_s0] sm:$0xff]   ;;  %v255_v3 = vunpack.c.l.bf16 %v304_v0  ;;  %v256_v4 = vunpack.c.h.bf16 %v304_v0  ;;  %v259_v5 = vunpack.c.l.bf16 %v305_v1  ;;  %v260_v6 = vunpack.c.h.bf16 %v305_v1  ;;  %v301_v7 = vld [vmem:[%s536_s0 + $0x8] sm:$0xff]   ;;  %v307_v9 = vld [vmem:[%s536_s0 + $0x38] sm:$0xff]  }
   0x3   :  { %v239_v10 = vunpack.c.l.bf16 %v238_v2  ;;  %v240_v11 = vunpack.c.h.bf16 %v238_v2  ;;  %v243_v12 = vunpack.c.l.bf16 %v301_v7  ;;  %v244_v13 = vunpack.c.h.bf16 %v301_v7  ;;  %v302_v14 = vld [vmem:[%s536_s0 + $0x10] sm:$0xff]   ;;  %v303_v23 = vld [vmem:[%s536_s0 + $0x18] sm:$0xff]   ;;  %v312_v32 = vld [vmem:[%s536_s0 + $0x60] sm:$0xff]  }
   0x4   :  { %v389_v15 = vmax.f32 %v255_v3, %v256_v4  ;;  %v391_v16 = vmax.f32 %v259_v5, %v260_v6  ;;  %v263_v17 = vunpack.c.l.bf16 %v306_v8  ;;  %v264_v18 = vunpack.c.h.bf16 %v306_v8  ;;  %v314_v28 = vld [vmem:[%s536_s0 + $0x70] sm:$0xff]   ;;  %v315_v31 = vld [vmem:[%s536_s0 + $0x78] sm:$0xff]   ;;  %v313_v39 = vld [vmem:[%s536_s0 + $0x68] sm:$0xff]  }
   0x5   :  { %v393_v19 = vmax.f32 %v239_v10, %v240_v11  ;;  %v395_v20 = vmax.f32 %v243_v12, %v244_v13  ;;  %v267_v21 = vunpack.c.l.bf16 %v307_v9  ;;  %v268_v22 = vunpack.c.h.bf16 %v307_v9  ;;  %v308_v43 = vld [vmem:[%s536_s0 + $0x40] sm:$0xff]   ;;  %v309_v47 = vld [vmem:[%s536_s0 + $0x48] sm:$0xff]   ;;  %v310_v53 = vld [vmem:[%s536_s0 + $0x50] sm:$0xff]  }
   0x6   :  { %v400_v24 = vmax.f32 %v263_v17, %v264_v18  ;;  %v247_v25 = vunpack.c.l.bf16 %v302_v14  ;;  %v248_v27 = vunpack.c.h.bf16 %v302_v14  ;;  %v251_v29 = vunpack.c.l.bf16 %v303_v23  ;;  %v311_v57 = vld [vmem:[%s536_s0 + $0x58] sm:$0xff]  }
   0x7   :  { %v402_v26 = vmax.f32 %v267_v21, %v268_v22  ;;  %v252_v30 = vunpack.c.h.bf16 %v303_v23  ;;  %v327_v33 = vpack.i.bf16 %v391_v16, %v389_v15  ;;  %v295_v35 = vunpack.c.l.bf16 %v314_v28 }
   0x8   :  { %v415_v34 = vmax.f32 %v247_v25, %v248_v27  ;;  %v317_v36 = vpack.i.bf16 %v395_v20, %v393_v19  ;;  %v296_v38 = vunpack.c.h.bf16 %v314_v28  ;;  %v299_v40 = vunpack.c.l.bf16 %v315_v31 }
   0x9   :  { %v419_v37 = vmax.f32 %v251_v29, %v252_v30  ;;  %328 = vrot.lane.b32.xlu1 %v327_v33, %s357_s30  ;;  %v300_v41 = vunpack.c.h.bf16 %v315_v31  ;;  %v287_v42 = vunpack.c.l.bf16 %v312_v32  ;;  %v332_v44 = vpack.i.bf16 %v402_v26, %v400_v24 }
   0xa   :  { %318 = vrot.lane.b32.xlu0 %v317_v36, %s357_s30  ;;  %v431_v45 = vmax.f32 %v295_v35, %v296_v38  ;;  %v288_v46 = vunpack.c.h.bf16 %v312_v32  ;;  %v291_v49 = vunpack.c.l.bf16 %v313_v39  ;;  %v292_v50 = vunpack.c.h.bf16 %v313_v39 }
   0xb   :  { %v436_v48 = vmax.f32 %v299_v40, %v300_v41  ;;  %v271_v52 = vunpack.c.l.bf16 %v308_v43  ;;  %v272_v55 = vunpack.c.h.bf16 %v308_v43  ;;  %v275_v56 = vunpack.c.l.bf16 %v309_v47 }
   0xc   :  { %v438_v51 = vmax.f32 %v287_v42, %v288_v46  ;;  %v443_v54 = vmax.f32 %v291_v49, %v292_v50  ;;  %v322_v58 = vpack.i.bf16 %v419_v37, %v415_v34  ;;  %v276_v59 = vunpack.c.h.bf16 %v309_v47 }
   0xd   :  { %v80_v60 = vmax.f32 %v271_v52, %v272_v55  ;;  %v279_v61 = vunpack.c.l.bf16 %v310_v53  ;;  %v280_v63 = vunpack.c.h.bf16 %v310_v53  ;;  %v283_v0 = vunpack.c.l.bf16 %v311_v57 }
   0xe   :  { %v81_v62 = vmax.f32 %v275_v56, %v276_v59  ;;  %v284_v1 = vunpack.c.h.bf16 %v311_v57  ;;  %v352_v4 = vpack.i.bf16 %v436_v48, %v431_v45  ;;  %v347_v5 = vpack.i.bf16 %v443_v54, %v438_v51 }
   0xf   :  { %v82_v2 = vmax.f32 %v279_v61, %v280_v63 }
  0x10   :  { %v83_v3 = vmax.f32 %v283_v0, %v284_v1  ;;  %v337_v6 = vpack.i.bf16 %v81_v62, %v80_v60 }
  0x11   :  { %333 = vrot.lane.b32.xlu1 %v332_v44, %s357_s30 }
  0x12   :  { %323 = vrot.lane.b32.xlu0 %v322_v58, %s357_s30  ;;  %338 = vrot.lane.b32.xlu2 %v337_v6, %s357_s30  ;;  %v342_v7 = vpack.i.bf16 %v83_v3, %v82_v2 }
  0x19   :  { %353 = vrot.lane.b32.xlu1 %v352_v4, %s357_s30 }
  0x1a   :  { %348 = vrot.lane.b32.xlu0 %v347_v5, %s357_s30  ;;  %343 = vrot.lane.b32.xlu2 %v342_v7, %s357_s30 }
  0x6c   :  { %v339_v8 = vpop.permute.xlu2 %338 }
  0x6d   :  { %v341_v9 = vunpack.i.h.bf16 %v339_v8  ;;  %v340_v10 = vunpack.i.l.bf16 %v339_v8 }
  0x6f   :  { %v193_v11 = vmax.f32 %v81_v62, %v341_v9  ;;  %v192_v12 = vmax.f32 %v80_v60, %v340_v10 }
  0x71   :  { %v209_v13 = vpack.c.bf16 %v193_v11, %v193_v11  ;;  %v208_v14 = vpack.c.bf16 %v192_v12, %v192_v12 }
  0x73   :  { %226 = vst.msk [vmem:[%s537_s1 + $0x24] sm:$0xf] %vm216_vm0, %v209_v13 }
  0x74   :  { %225 = vst.msk [vmem:[%s537_s1 + $0x20] sm:$0xf] %vm216_vm0, %v208_v14  ;;  %v344_v17 = vpop.permute.xlu2 %343 }
  0x75   :  { %v346_v21 = vunpack.i.h.bf16 %v344_v17  ;;  %v345_v22 = vunpack.i.l.bf16 %v344_v17 }
  0x77   :  { %v195_v30 = vmax.f32 %v83_v3, %v346_v21  ;;  %v194_v33 = vmax.f32 %v82_v2, %v345_v22 }
  0x79   :  { %v211_v38 = vpack.c.bf16 %v195_v30, %v195_v30 }
  0x7b   :  { %v329_v18 = vpop.permute.xlu1 %328  ;;  %228 = vst.msk [vmem:[%s537_s1 + $0x2c] sm:$0xf] %vm216_vm0, %v211_v38 }
  0x7c   :  { %v331_v23 = vunpack.i.h.bf16 %v329_v18  ;;  %v330_v25 = vunpack.i.l.bf16 %v329_v18  ;;  %v319_v27 = vpop.permute.xlu0 %318 }
  0x7d   :  { %v321_v28 = vunpack.i.h.bf16 %v319_v27  ;;  %v320_v29 = vunpack.i.l.bf16 %v319_v27 }
  0x7e   :  { %v189_v31 = vmax.f32 %v391_v16, %v331_v23  ;;  %v188_v32 = vmax.f32 %v389_v15, %v330_v25  ;;  %v210_v15 = vpack.c.bf16 %v194_v33, %v194_v33 }
  0x7f   :  { %v185_v35 = vmax.f32 %v395_v20, %v321_v28  ;;  %v184_v36 = vmax.f32 %v393_v19, %v320_v29 }
  0x80   :  { %v205_v39 = vpack.c.bf16 %v189_v31, %v189_v31  ;;  %v204_v40 = vpack.c.bf16 %v188_v32, %v188_v32  ;;  %227 = vst.msk [vmem:[%s537_s1 + $0x28] sm:$0xf] %vm216_vm0, %v210_v15 }
  0x81   :  { %v201_v41 = vpack.c.bf16 %v185_v35, %v185_v35  ;;  %v200_v42 = vpack.c.bf16 %v184_v36, %v184_v36 }
  0x82   :  { %222 = vst.msk [vmem:[%s537_s1 + $0x14] sm:$0xf] %vm216_vm0, %v205_v39 }
  0x83   :  { %221 = vst.msk [vmem:[%s537_s1 + $0x10] sm:$0xf] %vm216_vm0, %v204_v40  ;;  %v334_v16 = vpop.permute.xlu1 %333 }
  0x84   :  { %218 = vst.msk [vmem:[%s537_s1 + $0x4] sm:$0xf] %vm216_vm0, %v201_v41  ;;  %v336_v19 = vunpack.i.h.bf16 %v334_v16  ;;  %v335_v20 = vunpack.i.l.bf16 %v334_v16  ;;  %v324_v43 = vpop.permute.xlu0 %323 }
  0x85   :  { %217 = vst.msk [vmem:[%s537_s1] sm:$0xf] %vm216_vm0, %v200_v42  ;;  %v326_v44 = vunpack.i.h.bf16 %v324_v43  ;;  %v325_v46 = vunpack.i.l.bf16 %v324_v43 }
  0x86   :  { %v191_v47 = vmax.f32 %v402_v26, %v336_v19  ;;  %v190_v49 = vmax.f32 %v400_v24, %v335_v20 }
  0x87   :  { %v187_v50 = vmax.f32 %v419_v37, %v326_v44  ;;  %v186_v52 = vmax.f32 %v415_v34, %v325_v46 }
  0x88   :  { %v207_v53 = vpack.c.bf16 %v191_v47, %v191_v47  ;;  %v206_v55 = vpack.c.bf16 %v190_v49, %v190_v49 }
  0x89   :  { %v203_v56 = vpack.c.bf16 %v187_v50, %v187_v50  ;;  %v202_v57 = vpack.c.bf16 %v186_v52, %v186_v52 }
  0x8a   :  { %224 = vst.msk [vmem:[%s537_s1 + $0x1c] sm:$0xf] %vm216_vm0, %v207_v53 }
  0x8b   :  { %223 = vst.msk [vmem:[%s537_s1 + $0x18] sm:$0xf] %vm216_vm0, %v206_v55  ;;  %v354_v24 = vpop.permute.xlu1 %353 }
  0x8c   :  { %220 = vst.msk [vmem:[%s537_s1 + $0xc] sm:$0xf] %vm216_vm0, %v203_v56  ;;  %v356_v26 = vunpack.i.h.bf16 %v354_v24  ;;  %v355_v34 = vunpack.i.l.bf16 %v354_v24  ;;  %v349_v37 = vpop.permute.xlu0 %348 }
  0x8d   :  { %219 = vst.msk [vmem:[%s537_s1 + $0x8] sm:$0xf] %vm216_vm0, %v202_v57  ;;  %v351_v58 = vunpack.i.h.bf16 %v349_v37  ;;  %v350_v59 = vunpack.i.l.bf16 %v349_v37 }
  0x8e   :  { %v199_v60 = vmax.f32 %v436_v48, %v356_v26  ;;  %v198_v61 = vmax.f32 %v431_v45, %v355_v34 }
  0x8f   :  { %v197_v62 = vmax.f32 %v443_v54, %v351_v58  ;;  %v196_v63 = vmax.f32 %v438_v51, %v350_v59 }
  0x90   :  { %v215_v0 = vpack.c.bf16 %v199_v60, %v199_v60  ;;  %v214_v1 = vpack.c.bf16 %v198_v61, %v198_v61 }
  0x91   :  { %v213_v2 = vpack.c.bf16 %v197_v62, %v197_v62  ;;  %v212_v3 = vpack.c.bf16 %v196_v63, %v196_v63 }
  0x92   :  { %232 = vst.msk [vmem:[%s537_s1 + $0x3c] sm:$0xf] %vm216_vm0, %v215_v0 }
  0x93   :  { %231 = vst.msk [vmem:[%s537_s1 + $0x38] sm:$0xf] %vm216_vm0, %v214_v1 }
  0x94   :  { %230 = vst.msk [vmem:[%s537_s1 + $0x34] sm:$0xf] %vm216_vm0, %v213_v2 }
  0x95   :  { %229 = vst.msk [vmem:[%s537_s1 + $0x30] sm:$0xf] %vm216_vm0, %v212_v3 }

// kernel: mcnn_forward.25
= control target key start
LH: loop header
LB: loop body
LE: loop exit
PB: predicated region body
PF: predicated region fallthrough
CT: control target
= control target key end

     0   :  { %s685_s12 = smov 0   ;;  %s779_s0 = inlined_call_operand.vmem [shape: bf16[128,216], index: 0, kind: input, shape index: {}]   ;;  %s780_s1 = inlined_call_operand.vmem [shape: bf16[216,128], index: 1, kind: input, shape index: {}]   ;;  %s781_s2 = inlined_call_operand.vmem [shape: f32[1,128], index: 2, kind: input, shape index: {}]   ;;  %s782_s3 = inlined_call_operand.vmem [shape: bf16[128,128], index: 3, kind: output, shape index: {}]  }
   0x1 LB: > { %s489_s13 = sadd.s32 4294967295, %s663_s12   ;;  %p493_p0 = scmp.ge.s32.totalorder %s663_s12, 1  ;;  %s663_s12 = sphi %s685_s12, %s13_s12  }
   0x2   : > { %p139_p1 = scmp.lt.s32.totalorder %s663_s12, 3 }
   0x4   : > { %p140_p2 = pnand %p493_p0, %p139_p1 }
   0x5   : > { %s494_s20 = sshll.u32 (!%p140_p2), %s489_s13, 3 }
   0x6   : > { %143 = sbr.rel (%p140_p2) target bundleno = 219 (0xdb), region = 32  ;;  %p165_p3 = scmp.lt.s32.totalorder (!%p140_p2), %s494_s20, 15 }
   0xb   : > { %v605_v0 = vld [vmem:[%s780_s1 + $0x38] sm:$0xff]  ;;  %v212_v1 = vld [vmem:[%s780_s1 + $0x68] sm:$0xf]  ;;  %vm347_vm0 = vcmask 1043456   ;;  %v604_v3 = vld [vmem:[%s780_s1 + $0x30] sm:$0xff]  ;;  %s784_s20 = smov (!%p165_p3, %s494_s20), 15 }
   0xc   : > { %v306_v2 = vunpack.c.l.b16 %v212_v1  ;;  %351 = vmatpush.bf16.msra.mxu0 %v605_v0  ;;  %634 = vmatpush.bf16.msra.mxu2 %v605_v0  ;;  %v610_v6 = vld [vmem:[%s780_s1 + $0x60] sm:$0xff]  ;;  %v603_v7 = vld [vmem:[%s780_s1 + $0x28] sm:$0xff]  ;;  %v609_v8 = vld [vmem:[%s780_s1 + $0x58] sm:$0xff]  ;;  %s589_s6 = sshll.u32 %s784_s20, 3  ;;  %vm334_vm1 = vcmask 719872   ;;  %s498_s24 = sshll.u32 %s784_s20, 2 }
   0xd   : > { %v602_v9 = vld [vmem:[%s780_s1 + $0x20] sm:$0xff]  ;;  %v608_v10 = vld [vmem:[%s780_s1 + $0x50] sm:$0xff]  ;;  %v601_v11 = vld [vmem:[%s780_s1 + $0x18] sm:$0xff]  ;;  %s732_s14 = scalar_lea.vmem %s779_s0, %s589_s6  ;;  %s770_s27 = scalar_lea.vmem %s782_s3, %s498_s24 }
   0xe   : > { %v320_v4 = vpack.c.b16 %v306_v2, %v306_v2  ;;  %v607_v12 = vld [vmem:[%s780_s1 + $0x48] sm:$0xff]  ;;  %v600_v13 = vld [vmem:[%s780_s1 + $0x10] sm:$0xff]  ;;  %v606_v14 = vld [vmem:[%s780_s1 + $0x40] sm:$0xff] }
   0xf   : > { %v599_v15 = vld [vmem:[%s780_s1 + $0x8] sm:$0xff]  ;;  %v592_v16 = vld [vmem:[%s732_s14 + $0x14] sm:$0xf]  ;;  %v511_v17 = vld [vmem:[%s732_s14 + $0x18] sm:$0xf0] }
  0x10   : > { %v349_v5 = vsel %vm347_vm0, %v320_v4, 0  ;;  %352 = vmatpush.bf16.msra.mxu0 %v604_v3  ;;  %635 = vmatpush.bf16.msra.mxu2 %v604_v3  ;;  %v590_v18 = vld [vmem:[%s732_s14 + $0x4] sm:$0xf]  ;;  %v503_v19 = vld [vmem:[%s732_s14 + $0x8] sm:$0xf0]  ;;  %v514_v20 = vor.u32 %v592_v16, %v511_v17 }
  0x11   : > { %642 = vmatpush.bf16.msra.mxu3 %v349_v5  ;;  %382 = vmatpush.bf16.msra.mxu1 %v349_v5  ;;  %v598_v21 = vld [vmem:[%s780_s1] sm:$0xff]  ;;  %v591_v23 = vld [vmem:[%s732_s14 + $0x4] sm:$0xf0]  ;;  %v506_v24 = vor.u32 %v590_v18, %v503_v19  ;;  %v519_v30 = vld [vmem:[%s732_s14 + $0x28] sm:$0xf0] }
  0x12   : > { %v501_v22 = vld [vmem:[%s732_s14] sm:$0xf]  ;;  %v595_v26 = vld [vmem:[%s732_s14 + $0x24] sm:$0xf0]  ;;  %v594_v29 = vld [vmem:[%s732_s14 + $0x24] sm:$0xf] }
  0x13   : > { %v517_v25 = vld [vmem:[%s732_s14 + $0x20] sm:$0xf]  ;;  %v502_v27 = vor.u32 %v591_v23, %v501_v22  ;;  %v522_v31 = vor.u32 %v594_v29, %v519_v30  ;;  %v509_v32 = vld [vmem:[%s732_s14 + $0x10] sm:$0xf]  ;;  %v593_v33 = vld [vmem:[%s732_s14 + $0x14] sm:$0xf0] }
  0x14   : > { %353 = vmatpush.bf16.msra.mxu0 %v603_v7  ;;  %636 = vmatpush.bf16.msra.mxu2 %v603_v7  ;;  %v518_v28 = vor.u32 %v595_v26, %v517_v25  ;;  %v525_v34 = vld [vmem:[%s732_s14 + $0x30] sm:$0xf]  ;;  %v597_v35 = vld [vmem:[%s732_s14 + $0x34] sm:$0xf0]  ;;  %v510_v36 = vor.u32 %v593_v33, %v509_v32  ;;  %v596_v38 = vld [vmem:[%s732_s14 + $0x34] sm:$0xf] }
  0x15   : > { %643 = vmatpush.bf16.msra.mxu3 %v610_v6  ;;  %383 = vmatpush.bf16.msra.mxu1 %v610_v6  ;;  %v526_v37 = vor.u32 %v597_v35, %v525_v34  ;;  %v527_v39 = vld [vmem:[%s732_s14 + $0x38] sm:$0xf0]  ;;  %v656_v42 = vld [vmem:[%s781_s2] ss:$0 sm:$0xff] }
  0x16   : > { %v530_v40 = vor.u32 %v596_v38, %v527_v39 }
  0x18   : > { %354 = vmatpush.bf16.msra.mxu0 %v602_v9  ;;  %637 = vmatpush.bf16.msra.mxu2 %v602_v9 }
  0x19   : > { %644 = vmatpush.bf16.msra.mxu3 %v609_v8  ;;  %384 = vmatpush.bf16.msra.mxu1 %v609_v8 }
  0x1c   : > { %355 = vmatpush.bf16.msra.mxu0 %v601_v11  ;;  %638 = vmatpush.bf16.msra.mxu2 %v601_v11 }
  0x1d   : > { %645 = vmatpush.bf16.msra.mxu3 %v608_v10  ;;  %385 = vmatpush.bf16.msra.mxu1 %v608_v10 }
  0x20   : > { %356 = vmatpush.bf16.msra.mxu0 %v600_v13  ;;  %639 = vmatpush.bf16.msra.mxu2 %v600_v13 }
  0x21   : > { %646 = vmatpush.bf16.msra.mxu3 %v607_v12  ;;  %386 = vmatpush.bf16.msra.mxu1 %v607_v12 }
  0x24   : > { %357 = vmatpush.bf16.msra.mxu0 %v599_v15  ;;  %640 = vmatpush.bf16.msra.mxu2 %v599_v15 }
  0x25   : > { %647 = vmatpush.bf16.msra.mxu3 %v606_v14  ;;  %387 = vmatpush.bf16.msra.mxu1 %v606_v14 }
  0x28   : > { %584 = vmatmul.msk.bf16.vlgmr.msra.gmra.mxu3 %vm334_vm1, %v514_v20  ;;  %358 = vmatpush.bf16.msra.mxu0 %v598_v21 }
  0x29   : > { %583 = vmatmul.msk.bf16.vlgmr.msra.gmra.mxu1 %vm334_vm1, %v506_v24  ;;  %641 = vmatpush.bf16.msra.mxu2 %v598_v21 }
  0x2b   : > { %359 = vmatmul.bf16.vlgmr.msra.gmra.mxu0 %v502_v27 }
  0x2c   : > { %369 = vmatmul.bf16.vlgmr.msra.gmra.mxu2 %v518_v28 }
  0x38   : > { %585 = vmatmul.msk.bf16.gmra.mxu3 %vm334_vm1, %v522_v31 }
  0x3b   : > { %364 = vmatmul.bf16.gmra.mxu0 %v510_v36 }
  0x3c   : > { %374 = vmatmul.bf16.gmra.mxu2 %v526_v37 }
  0x48   : > { %586 = vmatmul.msk.bf16.gmra.mxu3 %vm334_vm1, %v530_v40 }
  0xa6   : > { %v389_v41 = vpop.f32.mrf.mxu1 }
  0xa8   : > { %v360_v43 = vpop.f32.mrf.mxu0 }
  0xa9   : > { %v361_v45 = vadd.f32 %v656_v42, %v360_v43 }
  0xab   : > { %v394_v44 = vpop.f32.mrf.mxu3  ;;  %v390_v46 = vadd.f32 %v389_v41, %v361_v45 }
  0xad   : > { %v409_v52 = vmax.f32 %v390_v46, 0.0 }
  0xae   : > { %v391_v47 = vpop.f32.mrf.mxu1 }
  0xaf   : > { %v370_v48 = vpop.f32.mrf.mxu2 }
  0xb0   : > { %v362_v49 = vpop.f32.mrf.mxu0  ;;  %v371_v59 = vadd.f32 %v656_v42, %v370_v48 }
  0xb1   : > { %v363_v50 = vadd.f32 %v656_v42, %v362_v49 }
  0xb3   : > { %v396_v51 = vpop.f32.mrf.mxu3  ;;  %v392_v53 = vadd.f32 %v391_v47, %v363_v50 }
  0xb5   : > { %v410_v54 = vmax.f32 %v392_v53, 0.0 }
  0xb7   : > { %v614_v55 = vpack.c.bf16 %v410_v54, %v409_v52  ;;  %v372_v57 = vpop.f32.mrf.mxu2 }
  0xb8   : > { %v365_v56 = vpop.f32.mrf.mxu0  ;;  %v373_v62 = vadd.f32 %v656_v42, %v372_v57 }
  0xb9   : > { %615 = vst [vmem:[%s770_s27] sm:$0xff] %v614_v55   ;;  %v366_v60 = vadd.f32 %v656_v42, %v365_v56 }
  0xbb   : > { %v399_v58 = vpop.f32.mrf.mxu3  ;;  %v395_v63 = vadd.f32 %v394_v44, %v366_v60 }
  0xbc   : > { %v400_v0 = vadd.f32 %v399_v58, %v371_v59 }
  0xbd   : > { %v411_v6 = vmax.f32 %v395_v63, 0.0 }
  0xbe   : > { %v413_v7 = vmax.f32 %v400_v0, 0.0 }
  0xbf   : > { %v375_v5 = vpop.f32.mrf.mxu2 }
  0xc0   : > { %v367_v61 = vpop.f32.mrf.mxu0  ;;  %v376_v13 = vadd.f32 %v656_v42, %v375_v5 }
  0xc1   : > { %v368_v1 = vadd.f32 %v656_v42, %v367_v61 }
  0xc3   : > { %v401_v2 = vpop.f32.mrf.mxu3  ;;  %v397_v3 = vadd.f32 %v396_v51, %v368_v1 }
  0xc4   : > { %v402_v4 = vadd.f32 %v401_v2, %v373_v62 }
  0xc5   : > { %v412_v8 = vmax.f32 %v397_v3, 0.0 }
  0xc6   : > { %v414_v9 = vmax.f32 %v402_v4, 0.0 }
  0xc7   : > { %v619_v10 = vpack.c.bf16 %v412_v8, %v411_v6  ;;  %v377_v14 = vpop.f32.mrf.mxu2 }
  0xc8   : > { %v624_v11 = vpack.c.bf16 %v414_v9, %v413_v7  ;;  %v378_v15 = vadd.f32 %v656_v42, %v377_v14 }
  0xc9   : > { %631 = vst [vmem:[%s770_s27 + $0x8] sm:$0xff] %v619_v10  }
  0xca   : > { %632 = vst [vmem:[%s770_s27 + $0x10] sm:$0xff] %v624_v11  }
  0xcb   : > { %v404_v12 = vpop.f32.mrf.mxu3 }
  0xcc   : > { %v405_v16 = vadd.f32 %v404_v12, %v376_v13 }
  0xce   : > { %v415_v19 = vmax.f32 %v405_v16, 0.0 }
  0xd3   : > { %v406_v17 = vpop.f32.mrf.mxu3 }
  0xd4   : > { %v407_v18 = vadd.f32 %v406_v17, %v378_v15 }
  0xd6   : > { %v416_v20 = vmax.f32 %v407_v18, 0.0 }
  0xd8   : > { %v629_v21 = vpack.c.bf16 %v416_v20, %v415_v19 }
  0xda   : > { %633 = vst [vmem:[%s770_s27 + $0x18] sm:$0xff] %v629_v21  }
  0xdb PF: > { %s13_s12 = sadd.s32 1, %s663_s12  }
  0xdc   : > { %p10_p4 = scmp.ge.s32.totalorder %s13_s12, 4  }
  0xde   :  { %12 = sbr.rel (!%p10_p4) target bundleno = 1 (0x1), region = 62 }

// kernel: mcnn_forward.26
= control target key start
LH: loop header
LB: loop body
LE: loop exit
PB: predicated region body
PF: predicated region fallthrough
CT: control target
= control target key end

     0   :  { %s146_s9 = smov 80   ;;  %vm112_vm0 = vcmask 386048   ;;  %s237_s0 = inlined_call_operand.vmem [shape: bf16[8,2,4,96], index: 0, kind: input, shape index: {}]   ;;  %s238_s1 = inlined_call_operand.vmem [shape: bf16[8,4,48], index: 1, kind: output, shape index: {}]  }
   0x1   :  { %v16_v0 = vld [vmem:[%s237_s0 + $0x10] sm:$0x3]  ;;  %v17_v1 = vld [vmem:[%s237_s0 + $0x12] sm:$0x3]  ;;  %v18_v2 = vld [vmem:[%s237_s0 + $0x14] sm:$0x3] }
   0x2   :  { %v19_v3 = vld [vmem:[%s237_s0 + $0x16] sm:$0x3]  ;;  %v28_v4 = vunpack.c.l.bf16 %v16_v0  ;;  %v29_v5 = vunpack.c.l.bf16 %v18_v2  ;;  %v36_v6 = vunpack.c.l.bf16 %v17_v1  ;;  %v8_v7 = vld [vmem:[%s237_s0] sm:$0x3]  ;;  %v9_v8 = vld [vmem:[%s237_s0 + $0x2] sm:$0x3] }
   0x3   :  { %v37_v9 = vunpack.c.l.bf16 %v19_v3  ;;  %v10_v10 = vld [vmem:[%s237_s0 + $0x4] sm:$0x3]  ;;  %v11_v11 = vld [vmem:[%s237_s0 + $0x6] sm:$0x3]  ;;  %v24_v12 = vunpack.c.l.bf16 %v8_v7  ;;  %v32_v13 = vunpack.c.l.bf16 %v9_v8  ;;  %v20_v14 = vld [vmem:[%s237_s0 + $0x18] sm:$0x3] }
   0x4   :  { %v44_v15 = vmax.f32 %v28_v4, %v36_v6  ;;  %v25_v16 = vunpack.c.l.bf16 %v10_v10  ;;  %v33_v17 = vunpack.c.l.bf16 %v11_v11  ;;  %v21_v18 = vld [vmem:[%s237_s0 + $0x1a] sm:$0x3]  ;;  %v22_v19 = vld [vmem:[%s237_s0 + $0x1c] sm:$0x3]  ;;  %v23_v20 = vld [vmem:[%s237_s0 + $0x1e] sm:$0x3]  ;;  %v30_v21 = vunpack.c.l.bf16 %v20_v14 }
   0x5   :  { %v45_v22 = vmax.f32 %v29_v5, %v37_v9  ;;  %v40_v23 = vmax.f32 %v24_v12, %v32_v13  ;;  %v31_v24 = vunpack.c.l.bf16 %v22_v19  ;;  %v38_v25 = vunpack.c.l.bf16 %v21_v18  ;;  %v12_v26 = vld [vmem:[%s237_s0 + $0x8] sm:$0x3]  ;;  %v13_v27 = vld [vmem:[%s237_s0 + $0xa] sm:$0x3]  ;;  %v14_v28 = vld [vmem:[%s237_s0 + $0xc] sm:$0x3] }
   0x6   :  { %v41_v29 = vmax.f32 %v25_v16, %v33_v17  ;;  %v39_v30 = vunpack.c.l.bf16 %v23_v20  ;;  %v15_v31 = vld [vmem:[%s237_s0 + $0xe] sm:$0x3]  ;;  %v26_v32 = vunpack.c.l.bf16 %v12_v26  ;;  %v27_v34 = vunpack.c.l.bf16 %v14_v28 }
   0x7   :  { %v46_v33 = vmax.f32 %v30_v21, %v38_v25  ;;  %v34_v36 = vunpack.c.l.bf16 %v13_v27  ;;  %v35_v37 = vunpack.c.l.bf16 %v15_v31  ;;  %v136_v39 = vpack.i.bf16 %v45_v22, %v44_v15 }
   0x8   :  { %v47_v35 = vmax.f32 %v31_v24, %v39_v30  ;;  %v126_v41 = vpack.i.bf16 %v41_v29, %v40_v23 }
   0x9   :  { %v42_v38 = vmax.f32 %v26_v32, %v34_v36  ;;  %v43_v40 = vmax.f32 %v27_v34, %v35_v37  ;;  %137 = vrot.lane.b32.xlu1 %v136_v39, %s146_s9 }
   0xa   :  { %127 = vrot.lane.b32.xlu0 %v126_v41, %s146_s9  ;;  %v141_v42 = vpack.i.bf16 %v47_v35, %v46_v33 }
   0xb   :  { %v131_v43 = vpack.i.bf16 %v43_v40, %v42_v38 }
  0x11   :  { %142 = vrot.lane.b32.xlu1 %v141_v42, %s146_s9 }
  0x12   :  { %132 = vrot.lane.b32.xlu0 %v131_v43, %s146_s9 }
  0x7b   :  { %v138_v44 = vpop.permute.xlu1 %137 }
  0x7c   :  { %v140_v45 = vunpack.i.h.bf16 %v138_v44  ;;  %v139_v46 = vunpack.i.l.bf16 %v138_v44  ;;  %v128_v47 = vpop.permute.xlu0 %127 }
  0x7d   :  { %v130_v48 = vunpack.i.h.bf16 %v128_v47  ;;  %v129_v49 = vunpack.i.l.bf16 %v128_v47 }
  0x7e   :  { %v101_v50 = vmax.f32 %v45_v22, %v140_v45  ;;  %v100_v51 = vmax.f32 %v44_v15, %v139_v46 }
  0x7f   :  { %v97_v52 = vmax.f32 %v41_v29, %v130_v48  ;;  %v96_v53 = vmax.f32 %v40_v23, %v129_v49 }
  0x80   :  { %v109_v54 = vpack.c.bf16 %v101_v50, %v101_v50  ;;  %v108_v55 = vpack.c.bf16 %v100_v51, %v100_v51 }
  0x81   :  { %v105_v56 = vpack.c.bf16 %v97_v52, %v97_v52  ;;  %v104_v57 = vpack.c.bf16 %v96_v53, %v96_v53 }
  0x82   :  { %118 = vst.msk [vmem:[%s238_s1 + $0xa] sm:$0x3] %vm112_vm0, %v109_v54 }
  0x83   :  { %117 = vst.msk [vmem:[%s238_s1 + $0x8] sm:$0x3] %vm112_vm0, %v108_v55  ;;  %v143_v58 = vpop.permute.xlu1 %142 }
  0x84   :  { %114 = vst.msk [vmem:[%s238_s1 + $0x2] sm:$0x3] %vm112_vm0, %v105_v56  ;;  %v145_v59 = vunpack.i.h.bf16 %v143_v58  ;;  %v144_v60 = vunpack.i.l.bf16 %v143_v58  ;;  %v133_v61 = vpop.permute.xlu0 %132 }
  0x85   :  { %113 = vst.msk [vmem:[%s238_s1] sm:$0x3] %vm112_vm0, %v104_v57  ;;  %v135_v62 = vunpack.i.h.bf16 %v133_v61  ;;  %v134_v63 = vunpack.i.l.bf16 %v133_v61 }
  0x86   :  { %v103_v0 = vmax.f32 %v47_v35, %v145_v59  ;;  %v102_v1 = vmax.f32 %v46_v33, %v144_v60 }
  0x87   :  { %v99_v2 = vmax.f32 %v43_v40, %v135_v62  ;;  %v98_v3 = vmax.f32 %v42_v38, %v134_v63 }
  0x88   :  { %v111_v4 = vpack.c.bf16 %v103_v0, %v103_v0  ;;  %v110_v5 = vpack.c.bf16 %v102_v1, %v102_v1 }
  0x89   :  { %v107_v6 = vpack.c.bf16 %v99_v2, %v99_v2  ;;  %v106_v7 = vpack.c.bf16 %v98_v3, %v98_v3 }
  0x8a   :  { %120 = vst.msk [vmem:[%s238_s1 + $0xe] sm:$0x3] %vm112_vm0, %v111_v4 }
  0x8b   :  { %119 = vst.msk [vmem:[%s238_s1 + $0xc] sm:$0x3] %vm112_vm0, %v110_v5 }
  0x8c   :  { %116 = vst.msk [vmem:[%s238_s1 + $0x6] sm:$0x3] %vm112_vm0, %v107_v6 }
  0x8d   :  { %115 = vst.msk [vmem:[%s238_s1 + $0x4] sm:$0x3] %vm112_vm0, %v106_v7 }

// kernel: mcnn_forward.27
= control target key start
LH: loop header
LB: loop body
LE: loop exit
PB: predicated region body
PF: predicated region fallthrough
CT: control target
= control target key end

     0   :  { %s754_s12 = smov 0   ;;  %s869_s0 = inlined_call_operand.vmem [shape: bf16[32,432], index: 0, kind: input, shape index: {}]   ;;  %s870_s1 = inlined_call_operand.vmem [shape: bf16[432,128], index: 1, kind: input, shape index: {}]   ;;  %s871_s2 = inlined_call_operand.vmem [shape: f32[1,128], index: 2, kind: input, shape index: {}]   ;;  %s872_s3 = inlined_call_operand.vmem [shape: bf16[32,128], index: 3, kind: output, shape index: {}]  }
   0x1 LB: > { %s543_s13 = sadd.s32 4294967295, %s732_s12   ;;  %p547_p0 = scmp.ge.s32.totalorder %s732_s12, 1  ;;  %s732_s12 = sphi %s754_s12, %s13_s12  }
   0x2   : > { %p139_p1 = scmp.lt.s32.totalorder %s732_s12, 3 }
   0x4   : > { %p140_p2 = pnand %p547_p0, %p139_p1 }
   0x5   : > { %s548_s20 = sshll.u32 (!%p140_p2), %s543_s13, 1 }
   0x6   : > { %143 = sbr.rel (%p140_p2) target bundleno = 194 (0xc2), region = 32  ;;  %p165_p3 = scmp.lt.s32.totalorder (!%p140_p2), %s548_s20, 3 }
   0xb   : > { %v692_v0 = vld [vmem:[%s870_s1 + $0x38] sm:$0xff]  ;;  %v691_v3 = vld [vmem:[%s870_s1 + $0x30] sm:$0xff]  ;;  %s874_s20 = smov (!%p165_p3, %s548_s20), 3  ;;  %v690_v7 = vld [vmem:[%s870_s1 + $0x28] sm:$0xff]  ;;  %vm421_vm0 = vcmask 392192  }
   0xc   : > { %v700_v1 = vld [vmem:[%s870_s1 + $0x78] sm:$0xff]  ;;  %425 = vmatpush.bf16.msra.mxu0 %v692_v0  ;;  %v699_v4 = vld [vmem:[%s870_s1 + $0x70] sm:$0xff]  ;;  %v698_v8 = vld [vmem:[%s870_s1 + $0x68] sm:$0xff]  ;;  %s680_s6 = sshll.u32 %s874_s20, 4 }
   0xd   : > { %v708_v2 = vld [vmem:[%s870_s1 + $0xb8] sm:$0xff]  ;;  %439 = vmatpush.bf16.msra.mxu1 %v700_v1  ;;  %v707_v5 = vld [vmem:[%s870_s1 + $0xb0] sm:$0xff]  ;;  %v706_v9 = vld [vmem:[%s870_s1 + $0xa8] sm:$0xff]  ;;  %s801_s14 = scalar_lea.vmem %s869_s0, %s680_s6 }
   0xe   : > { %453 = vmatpush.bf16.msra.mxu2 %v708_v2  ;;  %v711_v6 = vld [vmem:[%s870_s1 + $0xd0] sm:$0xff]  ;;  %v710_v10 = vld [vmem:[%s870_s1 + $0xc8] sm:$0xff]  ;;  %v689_v11 = vld [vmem:[%s870_s1 + $0x20] sm:$0xff] }
   0xf   : > { %472 = vmatpush.bf16.msra.mxu3 %v711_v6  ;;  %v697_v12 = vld [vmem:[%s870_s1 + $0x60] sm:$0xff]  ;;  %v682_v15 = vld [vmem:[%s801_s14 + $0xc] sm:$0xf]  ;;  %v565_v16 = vld [vmem:[%s801_s14 + $0x18] sm:$0xf0] }
  0x10   : > { %426 = vmatpush.bf16.msra.mxu0 %v691_v3  ;;  %v705_v13 = vld [vmem:[%s870_s1 + $0xa0] sm:$0xff]  ;;  %v688_v17 = vld [vmem:[%s870_s1 + $0x18] sm:$0xff]  ;;  %v568_v20 = vor.u32 %v682_v15, %v565_v16  ;;  %v687_v21 = vld [vmem:[%s870_s1 + $0x10] sm:$0xff] }
  0x11   : > { %440 = vmatpush.bf16.msra.mxu1 %v699_v4  ;;  %v709_v14 = vld [vmem:[%s870_s1 + $0xc0] sm:$0xff]  ;;  %v696_v18 = vld [vmem:[%s870_s1 + $0x58] sm:$0xff]  ;;  %v695_v22 = vld [vmem:[%s870_s1 + $0x50] sm:$0xff] }
  0x12   : > { %454 = vmatpush.bf16.msra.mxu2 %v707_v5  ;;  %v704_v19 = vld [vmem:[%s870_s1 + $0x98] sm:$0xff]  ;;  %v703_v23 = vld [vmem:[%s870_s1 + $0x90] sm:$0xff]  ;;  %v686_v24 = vld [vmem:[%s870_s1 + $0x8] sm:$0xff] }
  0x13   : > { %473 = vmatpush.bf16.msra.mxu3 %v710_v10  ;;  %v694_v25 = vld [vmem:[%s870_s1 + $0x48] sm:$0xff]  ;;  %v685_v27 = vld [vmem:[%s870_s1] sm:$0xff]  ;;  %v683_v30 = vld [vmem:[%s801_s14 + $0xc] sm:$0xf0] }
  0x14   : > { %427 = vmatpush.bf16.msra.mxu0 %v690_v7  ;;  %v702_v26 = vld [vmem:[%s870_s1 + $0x88] sm:$0xff]  ;;  %v693_v28 = vld [vmem:[%s870_s1 + $0x40] sm:$0xff]  ;;  %v557_v32 = vld [vmem:[%s801_s14 + $0x10] sm:$0xf0] }
  0x15   : > { %441 = vmatpush.bf16.msra.mxu1 %v698_v8  ;;  %v555_v29 = vld [vmem:[%s801_s14] sm:$0xf]  ;;  %v681_v31 = vld [vmem:[%s801_s14 + $0x4] sm:$0xf]  ;;  %v563_v34 = vld [vmem:[%s801_s14 + $0x8] sm:$0xf] }
  0x16   : > { %455 = vmatpush.bf16.msra.mxu2 %v706_v9  ;;  %v701_v33 = vld [vmem:[%s870_s1 + $0x80] sm:$0xff]  ;;  %v684_v35 = vld [vmem:[%s801_s14 + $0x14] sm:$0xf0]  ;;  %v556_v36 = vor.u32 %v683_v30, %v555_v29  ;;  %v560_v37 = vor.u32 %v681_v31, %v557_v32  ;;  %s552_s14 = sshll.u32 %s874_s20, 2 }
  0x17   : > { %474 = vmatpush.bf16.msra.mxu3 %v709_v14  ;;  %v564_v38 = vor.u32 %v684_v35, %v563_v34  ;;  %v725_v39 = vld [vmem:[%s871_s2] ss:$0 sm:$0xff]  ;;  %s175_s28 = scalar_lea.vmem %s872_s3, %s552_s14 }
  0x18   : > { %428 = vmatpush.bf16.msra.mxu0 %v689_v11 }
  0x19   : > { %442 = vmatpush.bf16.msra.mxu1 %v697_v12 }
  0x1a   : > { %456 = vmatpush.bf16.msra.mxu2 %v705_v13  ;;  %677 = vmatmul.msk.bf16.vlgmr.msra.gmra.mxu3 %vm421_vm0, %v568_v20 }
  0x1c   : > { %429 = vmatpush.bf16.msra.mxu0 %v688_v17 }
  0x1d   : > { %443 = vmatpush.bf16.msra.mxu1 %v696_v18 }
  0x1e   : > { %457 = vmatpush.bf16.msra.mxu2 %v704_v19 }
  0x20   : > { %430 = vmatpush.bf16.msra.mxu0 %v687_v21 }
  0x21   : > { %444 = vmatpush.bf16.msra.mxu1 %v695_v22 }
  0x22   : > { %458 = vmatpush.bf16.msra.mxu2 %v703_v23 }
  0x24   : > { %431 = vmatpush.bf16.msra.mxu0 %v686_v24 }
  0x25   : > { %445 = vmatpush.bf16.msra.mxu1 %v694_v25 }
  0x26   : > { %459 = vmatpush.bf16.msra.mxu2 %v702_v26 }
  0x28   : > { %432 = vmatpush.bf16.msra.mxu0 %v685_v27 }
  0x29   : > { %446 = vmatpush.bf16.msra.mxu1 %v693_v28 }
  0x2a   : > { %460 = vmatpush.bf16.msra.mxu2 %v701_v33 }
  0x2b   : > { %433 = vmatmul.bf16.vlgmr.msra.gmra.mxu0 %v556_v36 }
  0x2c   : > { %447 = vmatmul.bf16.vlgmr.msra.gmra.mxu1 %v560_v37 }
  0x2d   : > { %461 = vmatmul.bf16.vlgmr.msra.gmra.mxu2 %v564_v38 }
  0x9d   : > { %v476_v43 = vpop.f32.mrf.mxu3 }
  0xa5   : > { %v478_v54 = vpop.f32.mrf.mxu3 }
  0xa8   : > { %v434_v40 = vpop.f32.mrf.mxu0 }
  0xa9   : > { %v448_v41 = vpop.f32.mrf.mxu1  ;;  %v435_v42 = vadd.f32 %v725_v39, %v434_v40 }
  0xab   : > { %v449_v45 = vadd.f32 %v448_v41, %v435_v42 }
  0xb0   : > { %v462_v44 = vpop.f32.mrf.mxu2  ;;  %v436_v46 = vpop.f32.mrf.mxu0 }
  0xb1   : > { %v437_v47 = vadd.f32 %v725_v39, %v436_v46  ;;  %v463_v48 = vadd.f32 %v462_v44, %v449_v45  ;;  %v450_v49 = vpop.f32.mrf.mxu1 }
  0xb3   : > { %v451_v50 = vadd.f32 %v450_v49, %v437_v47  ;;  %v477_v52 = vadd.f32 %v476_v43, %v463_v48 }
  0xb5   : > { %v481_v56 = vmax.f32 %v477_v52, 0.0 }
  0xb8   : > { %v464_v51 = vpop.f32.mrf.mxu2 }
  0xb9   : > { %v465_v53 = vadd.f32 %v464_v51, %v451_v50 }
  0xbb   : > { %v479_v55 = vadd.f32 %v478_v54, %v465_v53 }
  0xbd   : > { %v482_v57 = vmax.f32 %v479_v55, 0.0 }
  0xbf   : > { %v715_v58 = vpack.c.bf16 %v482_v57, %v481_v56 }
  0xc1   : > { %716 = vst [vmem:[%s175_s28] sm:$0xff] %v715_v58  }
  0xc2 PF: > { %s13_s12 = sadd.s32 1, %s732_s12  }
  0xc3   : > { %p10_p4 = scmp.ge.s32.totalorder %s13_s12, 4  }
  0xc5   :  { %12 = sbr.rel (!%p10_p4) target bundleno = 1 (0x1), region = 62 }

// kernel: mcnn_forward.28
= control target key start
LH: loop header
LB: loop body
LE: loop exit
PB: predicated region body
PF: predicated region fallthrough
CT: control target
= control target key end

     0   :  { %s530_s12 = smov 0   ;;  %s596_s0 = inlined_call_operand.vmem [shape: bf16[32,216], index: 0, kind: input, shape index: {}]   ;;  %s597_s1 = inlined_call_operand.vmem [shape: bf16[216,128], index: 1, kind: input, shape index: {}]   ;;  %s598_s2 = inlined_call_operand.vmem [shape: f32[1,128], index: 2, kind: input, shape index: {}]   ;;  %s599_s3 = inlined_call_operand.vmem [shape: bf16[32,128], index: 3, kind: output, shape index: {}]  }
   0x1 LB: > { %s399_s13 = sadd.s32 4294967295, %s508_s12   ;;  %p403_p0 = scmp.ge.s32.totalorder %s508_s12, 1  ;;  %s508_s12 = sphi %s530_s12, %s13_s12  }
   0x2   : > { %p139_p1 = scmp.lt.s32.totalorder %s508_s12, 3 }
   0x4   : > { %p140_p2 = pnand %p403_p0, %p139_p1 }
   0x5   : > { %s404_s20 = sshll.u32 (!%p140_p2), %s399_s13, 1 }
   0x6   : > { %143 = sbr.rel (%p140_p2) target bundleno = 186 (0xba), region = 32  ;;  %p165_p3 = scmp.lt.s32.totalorder (!%p140_p2), %s404_s20, 3 }
   0xb   : > { %v482_v0 = vld [vmem:[%s597_s1 + $0x38] sm:$0xff]  ;;  %v206_v1 = vld [vmem:[%s597_s1 + $0x68] sm:$0xf]  ;;  %vm305_vm0 = vcmask 1043456   ;;  %v481_v3 = vld [vmem:[%s597_s1 + $0x30] sm:$0xff]  ;;  %s601_s20 = smov (!%p165_p3, %s404_s20), 3 }
   0xc   : > { %v273_v2 = vunpack.c.l.b16 %v206_v1  ;;  %309 = vmatpush.bf16.msra.mxu0 %v482_v0  ;;  %v487_v6 = vld [vmem:[%s597_s1 + $0x60] sm:$0xff]  ;;  %v480_v7 = vld [vmem:[%s597_s1 + $0x28] sm:$0xff]  ;;  %v486_v8 = vld [vmem:[%s597_s1 + $0x58] sm:$0xff]  ;;  %s472_s6 = sshll.u32 %s601_s20, 3  ;;  %vm301_vm1 = vcmask 719872   ;;  %s408_s24 = sshll.u32 %s601_s20, 2 }
   0xd   : > { %v479_v9 = vld [vmem:[%s597_s1 + $0x20] sm:$0xff]  ;;  %v485_v10 = vld [vmem:[%s597_s1 + $0x50] sm:$0xff]  ;;  %v478_v11 = vld [vmem:[%s597_s1 + $0x18] sm:$0xff]  ;;  %s169_s14 = scalar_lea.vmem %s596_s0, %s472_s6  ;;  %s175_s27 = scalar_lea.vmem %s599_s3, %s408_s24 }
   0xe   : > { %v287_v4 = vpack.c.b16 %v273_v2, %v273_v2  ;;  %v484_v12 = vld [vmem:[%s597_s1 + $0x48] sm:$0xff]  ;;  %v477_v13 = vld [vmem:[%s597_s1 + $0x10] sm:$0xff]  ;;  %v483_v14 = vld [vmem:[%s597_s1 + $0x40] sm:$0xff] }
   0xf   : > { %v476_v15 = vld [vmem:[%s597_s1 + $0x8] sm:$0xff]  ;;  %v473_v16 = vld [vmem:[%s169_s14 + $0x4] sm:$0xf]  ;;  %v411_v20 = vld [vmem:[%s169_s14] sm:$0xf] }
  0x10   : > { %v307_v5 = vsel %vm305_vm0, %v287_v4, 0  ;;  %310 = vmatpush.bf16.msra.mxu0 %v481_v3  ;;  %v413_v17 = vld [vmem:[%s169_s14 + $0x8] sm:$0xf0]  ;;  %v475_v19 = vld [vmem:[%s597_s1] sm:$0xff]  ;;  %v474_v21 = vld [vmem:[%s169_s14 + $0x4] sm:$0xf0] }
  0x11   : > { %325 = vmatpush.bf16.msra.mxu1 %v307_v5  ;;  %v416_v18 = vor.u32 %v473_v16, %v413_v17  ;;  %v412_v22 = vor.u32 %v474_v21, %v411_v20  ;;  %v501_v25 = vld [vmem:[%s598_s2] ss:$0 sm:$0xff] }
  0x14   : > { %311 = vmatpush.bf16.msra.mxu0 %v480_v7 }
  0x15   : > { %326 = vmatpush.bf16.msra.mxu1 %v487_v6 }
  0x18   : > { %312 = vmatpush.bf16.msra.mxu0 %v479_v9 }
  0x19   : > { %327 = vmatpush.bf16.msra.mxu1 %v486_v8 }
  0x1c   : > { %313 = vmatpush.bf16.msra.mxu0 %v478_v11 }
  0x1d   : > { %328 = vmatpush.bf16.msra.mxu1 %v485_v10 }
  0x20   : > { %314 = vmatpush.bf16.msra.mxu0 %v477_v13 }
  0x21   : > { %329 = vmatpush.bf16.msra.mxu1 %v484_v12 }
  0x24   : > { %315 = vmatpush.bf16.msra.mxu0 %v476_v15 }
  0x25   : > { %330 = vmatpush.bf16.msra.mxu1 %v483_v14 }
  0x28   : > { %469 = vmatmul.msk.bf16.vlgmr.msra.gmra.mxu1 %vm301_vm1, %v416_v18  ;;  %316 = vmatpush.bf16.msra.mxu0 %v475_v19 }
  0x2b   : > { %317 = vmatmul.bf16.vlgmr.msra.gmra.mxu0 %v412_v22 }
  0xa5   : > { %v332_v23 = vpop.f32.mrf.mxu1 }
  0xa8   : > { %v318_v24 = vpop.f32.mrf.mxu0 }
  0xa9   : > { %v319_v26 = vadd.f32 %v501_v25, %v318_v24 }
  0xab   : > { %v333_v28 = vadd.f32 %v332_v23, %v319_v26 }
  0xad   : > { %v334_v30 = vpop.f32.mrf.mxu1  ;;  %v337_v32 = vmax.f32 %v333_v28, 0.0 }
  0xb0   : > { %v320_v27 = vpop.f32.mrf.mxu0 }
  0xb1   : > { %v321_v29 = vadd.f32 %v501_v25, %v320_v27 }
  0xb3   : > { %v335_v31 = vadd.f32 %v334_v30, %v321_v29 }
  0xb5   : > { %v338_v33 = vmax.f32 %v335_v31, 0.0 }
  0xb7   : > { %v491_v34 = vpack.c.bf16 %v338_v33, %v337_v32 }
  0xb9   : > { %492 = vst [vmem:[%s175_s27] sm:$0xff] %v491_v34  }
  0xba PF: > { %s13_s12 = sadd.s32 1, %s508_s12  }
  0xbb   : > { %p10_p4 = scmp.ge.s32.totalorder %s13_s12, 4  }
  0xbd   :  { %12 = sbr.rel (!%p10_p4) target bundleno = 1 (0x1), region = 62 }

// kernel: mcnn_forward.22
= control target key start
LH: loop header
LB: loop body
LE: loop exit
PB: predicated region body
PF: predicated region fallthrough
CT: control target
= control target key end

     0   :  { %s146_s9 = smov 88   ;;  %vm112_vm0 = vcmask 320512   ;;  %s237_s0 = inlined_call_operand.vmem [shape: bf16[8,2,4,80], index: 0, kind: input, shape index: {}]   ;;  %s238_s1 = inlined_call_operand.vmem [shape: bf16[8,4,40], index: 1, kind: output, shape index: {}]  }
   0x1   :  { %v16_v0 = vld [vmem:[%s237_s0 + $0x10] sm:$0x3]  ;;  %v17_v1 = vld [vmem:[%s237_s0 + $0x12] sm:$0x3]  ;;  %v18_v2 = vld [vmem:[%s237_s0 + $0x14] sm:$0x3] }
   0x2   :  { %v19_v3 = vld [vmem:[%s237_s0 + $0x16] sm:$0x3]  ;;  %v28_v4 = vunpack.c.l.bf16 %v16_v0  ;;  %v29_v5 = vunpack.c.l.bf16 %v18_v2  ;;  %v36_v6 = vunpack.c.l.bf16 %v17_v1  ;;  %v8_v7 = vld [vmem:[%s237_s0] sm:$0x3]  ;;  %v9_v8 = vld [vmem:[%s237_s0 + $0x2] sm:$0x3] }
   0x3   :  { %v37_v9 = vunpack.c.l.bf16 %v19_v3  ;;  %v10_v10 = vld [vmem:[%s237_s0 + $0x4] sm:$0x3]  ;;  %v11_v11 = vld [vmem:[%s237_s0 + $0x6] sm:$0x3]  ;;  %v24_v12 = vunpack.c.l.bf16 %v8_v7  ;;  %v32_v13 = vunpack.c.l.bf16 %v9_v8  ;;  %v20_v14 = vld [vmem:[%s237_s0 + $0x18] sm:$0x3] }
   0x4   :  { %v44_v15 = vmax.f32 %v28_v4, %v36_v6  ;;  %v25_v16 = vunpack.c.l.bf16 %v10_v10  ;;  %v33_v17 = vunpack.c.l.bf16 %v11_v11  ;;  %v21_v18 = vld [vmem:[%s237_s0 + $0x1a] sm:$0x3]  ;;  %v22_v19 = vld [vmem:[%s237_s0 + $0x1c] sm:$0x3]  ;;  %v23_v20 = vld [vmem:[%s237_s0 + $0x1e] sm:$0x3]  ;;  %v30_v21 = vunpack.c.l.bf16 %v20_v14 }
   0x5   :  { %v45_v22 = vmax.f32 %v29_v5, %v37_v9  ;;  %v40_v23 = vmax.f32 %v24_v12, %v32_v13  ;;  %v31_v24 = vunpack.c.l.bf16 %v22_v19  ;;  %v38_v25 = vunpack.c.l.bf16 %v21_v18  ;;  %v12_v26 = vld [vmem:[%s237_s0 + $0x8] sm:$0x3]  ;;  %v13_v27 = vld [vmem:[%s237_s0 + $0xa] sm:$0x3]  ;;  %v14_v28 = vld [vmem:[%s237_s0 + $0xc] sm:$0x3] }
   0x6   :  { %v41_v29 = vmax.f32 %v25_v16, %v33_v17  ;;  %v39_v30 = vunpack.c.l.bf16 %v23_v20  ;;  %v15_v31 = vld [vmem:[%s237_s0 + $0xe] sm:$0x3]  ;;  %v26_v32 = vunpack.c.l.bf16 %v12_v26  ;;  %v27_v34 = vunpack.c.l.bf16 %v14_v28 }
   0x7   :  { %v46_v33 = vmax.f32 %v30_v21, %v38_v25  ;;  %v34_v36 = vunpack.c.l.bf16 %v13_v27  ;;  %v35_v37 = vunpack.c.l.bf16 %v15_v31  ;;  %v136_v39 = vpack.i.bf16 %v45_v22, %v44_v15 }
   0x8   :  { %v47_v35 = vmax.f32 %v31_v24, %v39_v30  ;;  %v126_v41 = vpack.i.bf16 %v41_v29, %v40_v23 }
   0x9   :  { %v42_v38 = vmax.f32 %v26_v32, %v34_v36  ;;  %v43_v40 = vmax.f32 %v27_v34, %v35_v37  ;;  %137 = vrot.lane.b32.xlu1 %v136_v39, %s146_s9 }
   0xa   :  { %127 = vrot.lane.b32.xlu0 %v126_v41, %s146_s9  ;;  %v141_v42 = vpack.i.bf16 %v47_v35, %v46_v33 }
   0xb   :  { %v131_v43 = vpack.i.bf16 %v43_v40, %v42_v38 }
  0x11   :  { %142 = vrot.lane.b32.xlu1 %v141_v42, %s146_s9 }
  0x12   :  { %132 = vrot.lane.b32.xlu0 %v131_v43, %s146_s9 }
  0x7b   :  { %v138_v44 = vpop.permute.xlu1 %137 }
  0x7c   :  { %v140_v45 = vunpack.i.h.bf16 %v138_v44  ;;  %v139_v46 = vunpack.i.l.bf16 %v138_v44  ;;  %v128_v47 = vpop.permute.xlu0 %127 }
  0x7d   :  { %v130_v48 = vunpack.i.h.bf16 %v128_v47  ;;  %v129_v49 = vunpack.i.l.bf16 %v128_v47 }
  0x7e   :  { %v101_v50 = vmax.f32 %v45_v22, %v140_v45  ;;  %v100_v51 = vmax.f32 %v44_v15, %v139_v46 }
  0x7f   :  { %v97_v52 = vmax.f32 %v41_v29, %v130_v48  ;;  %v96_v53 = vmax.f32 %v40_v23, %v129_v49 }
  0x80   :  { %v109_v54 = vpack.c.bf16 %v101_v50, %v101_v50  ;;  %v108_v55 = vpack.c.bf16 %v100_v51, %v100_v51 }
  0x81   :  { %v105_v56 = vpack.c.bf16 %v97_v52, %v97_v52  ;;  %v104_v57 = vpack.c.bf16 %v96_v53, %v96_v53 }
  0x82   :  { %118 = vst.msk [vmem:[%s238_s1 + $0xa] sm:$0x3] %vm112_vm0, %v109_v54 }
  0x83   :  { %117 = vst.msk [vmem:[%s238_s1 + $0x8] sm:$0x3] %vm112_vm0, %v108_v55  ;;  %v143_v58 = vpop.permute.xlu1 %142 }
  0x84   :  { %114 = vst.msk [vmem:[%s238_s1 + $0x2] sm:$0x3] %vm112_vm0, %v105_v56  ;;  %v145_v59 = vunpack.i.h.bf16 %v143_v58  ;;  %v144_v60 = vunpack.i.l.bf16 %v143_v58  ;;  %v133_v61 = vpop.permute.xlu0 %132 }
  0x85   :  { %113 = vst.msk [vmem:[%s238_s1] sm:$0x3] %vm112_vm0, %v104_v57  ;;  %v135_v62 = vunpack.i.h.bf16 %v133_v61  ;;  %v134_v63 = vunpack.i.l.bf16 %v133_v61 }
  0x86   :  { %v103_v0 = vmax.f32 %v47_v35, %v145_v59  ;;  %v102_v1 = vmax.f32 %v46_v33, %v144_v60 }
  0x87   :  { %v99_v2 = vmax.f32 %v43_v40, %v135_v62  ;;  %v98_v3 = vmax.f32 %v42_v38, %v134_v63 }
  0x88   :  { %v111_v4 = vpack.c.bf16 %v103_v0, %v103_v0  ;;  %v110_v5 = vpack.c.bf16 %v102_v1, %v102_v1 }
  0x89   :  { %v107_v6 = vpack.c.bf16 %v99_v2, %v99_v2  ;;  %v106_v7 = vpack.c.bf16 %v98_v3, %v98_v3 }
  0x8a   :  { %120 = vst.msk [vmem:[%s238_s1 + $0xe] sm:$0x3] %vm112_vm0, %v111_v4 }
  0x8b   :  { %119 = vst.msk [vmem:[%s238_s1 + $0xc] sm:$0x3] %vm112_vm0, %v110_v5 }
  0x8c   :  { %116 = vst.msk [vmem:[%s238_s1 + $0x6] sm:$0x3] %vm112_vm0, %v107_v6 }
  0x8d   :  { %115 = vst.msk [vmem:[%s238_s1 + $0x4] sm:$0x3] %vm112_vm0, %v106_v7 }

// kernel: mcnn_forward.21
= control target key start
LH: loop header
LB: loop body
LE: loop exit
PB: predicated region body
PF: predicated region fallthrough
CT: control target
= control target key end

     0   :  { %s1050_s12 = smov 0   ;;  %s1224_s0 = inlined_call_operand.vmem [shape: bf16[128,500], index: 0, kind: input, shape index: {}]   ;;  %s1225_s1 = inlined_call_operand.vmem [shape: bf16[500,128], index: 1, kind: input, shape index: {}]   ;;  %s1226_s2 = inlined_call_operand.vmem [shape: f32[1,128], index: 2, kind: input, shape index: {}]   ;;  %s1227_s3 = inlined_call_operand.vmem [shape: bf16[128,128], index: 3, kind: output, shape index: {}]  }
   0x1 LB: > { %s738_s13 = sadd.s32 4294967295, %s1028_s12   ;;  %p742_p0 = scmp.ge.s32.totalorder %s1028_s12, 1  ;;  %s1028_s12 = sphi %s1050_s12, %s13_s12  }
   0x2   : > { %p139_p1 = scmp.lt.s32.totalorder %s1028_s12, 3 }
   0x4   : > { %p140_p2 = pnand %p742_p0, %p139_p1 }
   0x5   : > { %s743_s9 = sshll.u32 (!%p140_p2), %s738_s13, 3 }
   0x6   : > { %143 = sbr.rel (%p140_p2) target bundleno = 246 (0xf6), region = 32  ;;  %p165_p3 = scmp.lt.s32.totalorder (!%p140_p2), %s743_s9, 15 }
   0xb   : > { %v966_v0 = vld [vmem:[%s1225_s1 + $0x38] sm:$0xff]  ;;  %v965_v5 = vld [vmem:[%s1225_s1 + $0x30] sm:$0xff]  ;;  %vm538_vm0 = vcmask 1041408   ;;  %v964_v10 = vld [vmem:[%s1225_s1 + $0x28] sm:$0xff]  ;;  %s1229_s9 = smov (!%p165_p3, %s743_s9), 15  ;;  %vm525_vm1 = vcmask 949248  }
   0xc   : > { %v974_v1 = vld [vmem:[%s1225_s1 + $0x78] sm:$0xff]  ;;  %542 = vmatpush.bf16.msra.mxu0 %v966_v0  ;;  %v973_v6 = vld [vmem:[%s1225_s1 + $0x70] sm:$0xff]  ;;  %v972_v11 = vld [vmem:[%s1225_s1 + $0x68] sm:$0xff]  ;;  %s942_s8 = sshll.u32 %s1229_s9, 4  ;;  %s747_s7 = sshll.u32 %s1229_s9, 2 }
   0xd   : > { %v982_v2 = vld [vmem:[%s1225_s1 + $0xb8] sm:$0xff]  ;;  %571 = vmatpush.bf16.msra.mxu1 %v974_v1  ;;  %v981_v7 = vld [vmem:[%s1225_s1 + $0xb0] sm:$0xff]  ;;  %v980_v13 = vld [vmem:[%s1225_s1 + $0xa8] sm:$0xff]  ;;  %s1139_s18 = scalar_lea.vmem %s1224_s0, %s942_s8  ;;  %s1210_s11 = scalar_lea.vmem %s1227_s3, %s747_s7 }
   0xe   : > { %v255_v3 = vld [vmem:[%s1225_s1 + $0xf8] sm:$0x3]  ;;  %600 = vmatpush.bf16.msra.mxu2 %v982_v2  ;;  %v989_v12 = vld [vmem:[%s1225_s1 + $0xf0] sm:$0xff]  ;;  %v963_v14 = vld [vmem:[%s1225_s1 + $0x20] sm:$0xff] }
   0xf   : > { %v461_v4 = vunpack.c.l.b16 %v255_v3  ;;  %v971_v15 = vld [vmem:[%s1225_s1 + $0x60] sm:$0xff]  ;;  %v988_v16 = vld [vmem:[%s1225_s1 + $0xe8] sm:$0xff]  ;;  %v962_v18 = vld [vmem:[%s1225_s1 + $0x18] sm:$0xff] }
  0x10   : > { %543 = vmatpush.bf16.msra.mxu0 %v965_v5  ;;  %v979_v17 = vld [vmem:[%s1225_s1 + $0xa0] sm:$0xff]  ;;  %v970_v19 = vld [vmem:[%s1225_s1 + $0x58] sm:$0xff]  ;;  %v961_v22 = vld [vmem:[%s1225_s1 + $0x10] sm:$0xff] }
  0x11   : > { %v493_v8 = vpack.c.b16 %v461_v4, %v461_v4  ;;  %572 = vmatpush.bf16.msra.mxu1 %v973_v6  ;;  %v987_v20 = vld [vmem:[%s1225_s1 + $0xe0] sm:$0xff]  ;;  %v978_v21 = vld [vmem:[%s1225_s1 + $0x98] sm:$0xff]  ;;  %v969_v23 = vld [vmem:[%s1225_s1 + $0x50] sm:$0xff] }
  0x12   : > { %601 = vmatpush.bf16.msra.mxu2 %v981_v7  ;;  %v986_v24 = vld [vmem:[%s1225_s1 + $0xd8] sm:$0xff]  ;;  %v977_v25 = vld [vmem:[%s1225_s1 + $0x90] sm:$0xff]  ;;  %v960_v26 = vld [vmem:[%s1225_s1 + $0x8] sm:$0xff] }
  0x13   : > { %v540_v9 = vsel %vm538_vm0, %v493_v8, 0  ;;  %v968_v27 = vld [vmem:[%s1225_s1 + $0x48] sm:$0xff]  ;;  %v985_v28 = vld [vmem:[%s1225_s1 + $0xd0] sm:$0xff]  ;;  %v959_v31 = vld [vmem:[%s1225_s1] sm:$0xff] }
  0x14   : > { %629 = vmatpush.bf16.msra.mxu3 %v540_v9  ;;  %544 = vmatpush.bf16.msra.mxu0 %v964_v10  ;;  %v976_v29 = vld [vmem:[%s1225_s1 + $0x88] sm:$0xff]  ;;  %v967_v32 = vld [vmem:[%s1225_s1 + $0x40] sm:$0xff]  ;;  %v945_v34 = vld [vmem:[%s1139_s18 + $0xc] sm:$0xf0] }
  0x15   : > { %573 = vmatpush.bf16.msra.mxu1 %v972_v11  ;;  %v984_v30 = vld [vmem:[%s1225_s1 + $0xc8] sm:$0xff]  ;;  %v750_v33 = vld [vmem:[%s1139_s18] sm:$0xf]  ;;  %v943_v35 = vld [vmem:[%s1139_s18 + $0x4] sm:$0xf] }
  0x16   : > { %602 = vmatpush.bf16.msra.mxu2 %v980_v13  ;;  %v752_v36 = vld [vmem:[%s1139_s18 + $0x10] sm:$0xf0]  ;;  %v975_v37 = vld [vmem:[%s1225_s1 + $0x80] sm:$0xff]  ;;  %v758_v38 = vld [vmem:[%s1139_s18 + $0x8] sm:$0xf]  ;;  %v751_v40 = vor.u32 %v945_v34, %v750_v33 }
  0x17   : > { %v946_v39 = vld [vmem:[%s1139_s18 + $0x14] sm:$0xf0]  ;;  %v755_v41 = vor.u32 %v943_v35, %v752_v36  ;;  %v983_v43 = vld [vmem:[%s1225_s1 + $0xc0] sm:$0xff]  ;;  %v944_v44 = vld [vmem:[%s1139_s18 + $0xc] sm:$0xf] }
  0x18   : > { %630 = vmatpush.bf16.msra.mxu3 %v989_v12  ;;  %545 = vmatpush.bf16.msra.mxu0 %v963_v14  ;;  %v759_v42 = vor.u32 %v946_v39, %v758_v38  ;;  %v760_v45 = vld [vmem:[%s1139_s18 + $0x18] sm:$0xf0]  ;;  %v766_v47 = vld [vmem:[%s1139_s18 + $0x20] sm:$0xf]  ;;  %v949_v48 = vld [vmem:[%s1139_s18 + $0x2c] sm:$0xf0] }
  0x19   : > { %574 = vmatpush.bf16.msra.mxu1 %v971_v15  ;;  %v763_v46 = vor.u32 %v944_v44, %v760_v45  ;;  %v947_v49 = vld [vmem:[%s1139_s18 + $0x24] sm:$0xf]  ;;  %v768_v50 = vld [vmem:[%s1139_s18 + $0x30] sm:$0xf0]  ;;  %v774_v51 = vld [vmem:[%s1139_s18 + $0x28] sm:$0xf]  ;;  %v767_v53 = vor.u32 %v949_v48, %v766_v47 }
  0x1a   : > { %603 = vmatpush.bf16.msra.mxu2 %v979_v17  ;;  %v950_v52 = vld [vmem:[%s1139_s18 + $0x34] sm:$0xf0]  ;;  %v771_v54 = vor.u32 %v947_v49, %v768_v50  ;;  %v948_v56 = vld [vmem:[%s1139_s18 + $0x2c] sm:$0xf]  ;;  %v776_v57 = vld [vmem:[%s1139_s18 + $0x38] sm:$0xf0] }
  0x1b   : > { %v775_v55 = vor.u32 %v950_v52, %v774_v51  ;;  %v779_v58 = vor.u32 %v948_v56, %v776_v57  ;;  %v782_v59 = vld [vmem:[%s1139_s18 + $0x40] sm:$0xf]  ;;  %v953_v60 = vld [vmem:[%s1139_s18 + $0x4c] sm:$0xf0]  ;;  %v951_v61 = vld [vmem:[%s1139_s18 + $0x44] sm:$0xf] }
  0x1c   : > { %631 = vmatpush.bf16.msra.mxu3 %v988_v16  ;;  %546 = vmatpush.bf16.msra.mxu0 %v962_v18  ;;  %v784_v62 = vld [vmem:[%s1139_s18 + $0x50] sm:$0xf0]  ;;  %v790_v63 = vld [vmem:[%s1139_s18 + $0x48] sm:$0xf]  ;;  %v954_v0 = vld [vmem:[%s1139_s18 + $0x54] sm:$0xf0]  ;;  %v783_v1 = vor.u32 %v953_v60, %v782_v59 }
  0x1d   : > { %575 = vmatpush.bf16.msra.mxu1 %v970_v19  ;;  %v787_v2 = vor.u32 %v951_v61, %v784_v62  ;;  %v791_v3 = vor.u32 %v954_v0, %v790_v63  ;;  %v952_v4 = vld [vmem:[%s1139_s18 + $0x4c] sm:$0xf]  ;;  %v792_v5 = vld [vmem:[%s1139_s18 + $0x58] sm:$0xf0]  ;;  %v798_v7 = vld [vmem:[%s1139_s18 + $0x60] sm:$0xf] }
  0x1e   : > { %604 = vmatpush.bf16.msra.mxu2 %v978_v21  ;;  %v795_v6 = vor.u32 %v952_v4, %v792_v5  ;;  %v957_v8 = vld [vmem:[%s1139_s18 + $0x6c] sm:$0xf0]  ;;  %v955_v9 = vld [vmem:[%s1139_s18 + $0x64] sm:$0xf]  ;;  %v800_v10 = vld [vmem:[%s1139_s18 + $0x70] sm:$0xf0] }
  0x1f   : > { %v806_v11 = vld [vmem:[%s1139_s18 + $0x68] sm:$0xf]  ;;  %v958_v12 = vld [vmem:[%s1139_s18 + $0x74] sm:$0xf0]  ;;  %v799_v13 = vor.u32 %v957_v8, %v798_v7  ;;  %v803_v14 = vor.u32 %v955_v9, %v800_v10  ;;  %v956_v16 = vld [vmem:[%s1139_s18 + $0x6c] sm:$0xf] }
  0x20   : > { %632 = vmatpush.bf16.msra.mxu3 %v987_v20  ;;  %547 = vmatpush.bf16.msra.mxu0 %v961_v22  ;;  %v807_v15 = vor.u32 %v958_v12, %v806_v11  ;;  %v808_v17 = vld [vmem:[%s1139_s18 + $0x78] sm:$0xf0]  ;;  %v1201_v21 = vld [vmem:[%s1226_s2] ss:$0 sm:$0xff] }
  0x21   : > { %576 = vmatpush.bf16.msra.mxu1 %v969_v23  ;;  %v811_v18 = vor.u32 %v956_v16, %v808_v17 }
  0x22   : > { %605 = vmatpush.bf16.msra.mxu2 %v977_v25 }
  0x24   : > { %633 = vmatpush.bf16.msra.mxu3 %v986_v24  ;;  %548 = vmatpush.bf16.msra.mxu0 %v960_v26 }
  0x25   : > { %577 = vmatpush.bf16.msra.mxu1 %v968_v27 }
  0x26   : > { %606 = vmatpush.bf16.msra.mxu2 %v976_v29 }
  0x28   : > { %634 = vmatpush.bf16.msra.mxu3 %v985_v28  ;;  %549 = vmatpush.bf16.msra.mxu0 %v959_v31 }
  0x29   : > { %578 = vmatpush.bf16.msra.mxu1 %v967_v32 }
  0x2a   : > { %607 = vmatpush.bf16.msra.mxu2 %v975_v37 }
  0x2b   : > { %550 = vmatmul.bf16.vlgmr.msra.gmra.mxu0 %v751_v40 }
  0x2c   : > { %635 = vmatpush.bf16.msra.mxu3 %v984_v30  ;;  %579 = vmatmul.bf16.vlgmr.msra.gmra.mxu1 %v755_v41 }
  0x2d   : > { %608 = vmatmul.bf16.vlgmr.msra.gmra.mxu2 %v759_v42 }
  0x30   : > { %636 = vmatpush.bf16.msra.mxu3 %v983_v43 }
  0x33   : > { %936 = vmatmul.msk.bf16.vlgmr.msra.gmra.mxu3 %vm525_vm1, %v763_v46 }
  0x3b   : > { %555 = vmatmul.bf16.gmra.mxu0 %v767_v53 }
  0x3c   : > { %584 = vmatmul.bf16.gmra.mxu1 %v771_v54 }
  0x3d   : > { %613 = vmatmul.bf16.gmra.mxu2 %v775_v55 }
  0x43   : > { %937 = vmatmul.msk.bf16.gmra.mxu3 %vm525_vm1, %v779_v58 }
  0x4b   : > { %560 = vmatmul.bf16.gmra.mxu0 %v783_v1 }
  0x4c   : > { %589 = vmatmul.bf16.gmra.mxu1 %v787_v2 }
  0x4d   : > { %618 = vmatmul.bf16.gmra.mxu2 %v791_v3 }
  0x53   : > { %938 = vmatmul.msk.bf16.gmra.mxu3 %vm525_vm1, %v795_v6 }
  0x5b   : > { %565 = vmatmul.bf16.gmra.mxu0 %v799_v13 }
  0x5c   : > { %594 = vmatmul.bf16.gmra.mxu1 %v803_v14 }
  0x5d   : > { %623 = vmatmul.bf16.gmra.mxu2 %v807_v15 }
  0x63   : > { %939 = vmatmul.msk.bf16.gmra.mxu3 %vm525_vm1, %v811_v18 }
  0xa8   : > { %v551_v19 = vpop.f32.mrf.mxu0 }
  0xa9   : > { %v580_v20 = vpop.f32.mrf.mxu1  ;;  %v552_v22 = vadd.f32 %v1201_v21, %v551_v19 }
  0xab   : > { %v581_v26 = vadd.f32 %v580_v20, %v552_v22 }
  0xb0   : > { %v609_v23 = vpop.f32.mrf.mxu2  ;;  %v553_v24 = vpop.f32.mrf.mxu0 }
  0xb1   : > { %v582_v25 = vpop.f32.mrf.mxu1  ;;  %v554_v28 = vadd.f32 %v1201_v21, %v553_v24  ;;  %v610_v29 = vadd.f32 %v609_v23, %v581_v26 }
  0xb3   : > { %v583_v31 = vadd.f32 %v582_v25, %v554_v28 }
  0xb6   : > { %v638_v27 = vpop.f32.mrf.mxu3 }
  0xb7   : > { %v639_v34 = vadd.f32 %v638_v27, %v610_v29 }
  0xb8   : > { %v611_v30 = vpop.f32.mrf.mxu2  ;;  %v556_v32 = vpop.f32.mrf.mxu0 }
  0xb9   : > { %v585_v33 = vpop.f32.mrf.mxu1  ;;  %v612_v35 = vadd.f32 %v611_v30, %v583_v31  ;;  %v658_v38 = vmax.f32 %v639_v34, 0.0  ;;  %v557_v39 = vadd.f32 %v1201_v21, %v556_v32 }
  0xbb   : > { %v586_v45 = vadd.f32 %v585_v33, %v557_v39 }
  0xbe   : > { %v640_v36 = vpop.f32.mrf.mxu3 }
  0xbf   : > { %v641_v37 = vadd.f32 %v640_v36, %v612_v35 }
  0xc0   : > { %v614_v41 = vpop.f32.mrf.mxu2  ;;  %v558_v43 = vpop.f32.mrf.mxu0 }
  0xc1   : > { %v659_v40 = vmax.f32 %v641_v37, 0.0  ;;  %v587_v44 = vpop.f32.mrf.mxu1  ;;  %v559_v47 = vadd.f32 %v1201_v21, %v558_v43  ;;  %v615_v48 = vadd.f32 %v614_v41, %v586_v45 }
  0xc3   : > { %v993_v42 = vpack.c.bf16 %v659_v40, %v658_v38  ;;  %v588_v50 = vadd.f32 %v587_v44, %v559_v47 }
  0xc5   : > { %994 = vst [vmem:[%s1210_s11] sm:$0xff] %v993_v42  }
  0xc6   : > { %v643_v46 = vpop.f32.mrf.mxu3 }
  0xc7   : > { %v644_v53 = vadd.f32 %v643_v46, %v615_v48 }
  0xc8   : > { %v616_v49 = vpop.f32.mrf.mxu2  ;;  %v561_v51 = vpop.f32.mrf.mxu0 }
  0xc9   : > { %v590_v52 = vpop.f32.mrf.mxu1  ;;  %v617_v54 = vadd.f32 %v616_v49, %v588_v50  ;;  %v660_v57 = vmax.f32 %v644_v53, 0.0  ;;  %v562_v58 = vadd.f32 %v1201_v21, %v561_v51 }
  0xcb   : > { %v591_v63 = vadd.f32 %v590_v52, %v562_v58 }
  0xce   : > { %v645_v55 = vpop.f32.mrf.mxu3 }
  0xcf   : > { %v646_v56 = vadd.f32 %v645_v55, %v617_v54 }
  0xd0   : > { %v619_v60 = vpop.f32.mrf.mxu2  ;;  %v563_v62 = vpop.f32.mrf.mxu0 }
  0xd1   : > { %v661_v59 = vmax.f32 %v646_v56, 0.0  ;;  %v592_v0 = vpop.f32.mrf.mxu1  ;;  %v564_v2 = vadd.f32 %v1201_v21, %v563_v62  ;;  %v620_v3 = vadd.f32 %v619_v60, %v591_v63 }
  0xd3   : > { %v998_v61 = vpack.c.bf16 %v661_v59, %v660_v57  ;;  %v593_v5 = vadd.f32 %v592_v0, %v564_v2 }
  0xd5   : > { %1010 = vst [vmem:[%s1210_s11 + $0x8] sm:$0xff] %v998_v61  }
  0xd6   : > { %v648_v1 = vpop.f32.mrf.mxu3 }
  0xd7   : > { %v649_v7 = vadd.f32 %v648_v1, %v620_v3 }
  0xd8   : > { %v621_v4 = vpop.f32.mrf.mxu2  ;;  %v566_v6 = vpop.f32.mrf.mxu0 }
  0xd9   : > { %v622_v8 = vadd.f32 %v621_v4, %v593_v5  ;;  %v595_v11 = vpop.f32.mrf.mxu1  ;;  %v662_v12 = vmax.f32 %v649_v7, 0.0  ;;  %v567_v13 = vadd.f32 %v1201_v21, %v566_v6 }
  0xdb   : > { %v596_v18 = vadd.f32 %v595_v11, %v567_v13 }
  0xde   : > { %v650_v9 = vpop.f32.mrf.mxu3 }
  0xdf   : > { %v651_v10 = vadd.f32 %v650_v9, %v622_v8 }
  0xe0   : > { %v624_v15 = vpop.f32.mrf.mxu2  ;;  %v568_v17 = vpop.f32.mrf.mxu0 }
  0xe1   : > { %v663_v14 = vmax.f32 %v651_v10, 0.0  ;;  %v569_v20 = vadd.f32 %v1201_v21, %v568_v17  ;;  %v625_v22 = vadd.f32 %v624_v15, %v596_v18  ;;  %v597_v23 = vpop.f32.mrf.mxu1 }
  0xe3   : > { %v1003_v16 = vpack.c.bf16 %v663_v14, %v662_v12  ;;  %v598_v25 = vadd.f32 %v597_v23, %v569_v20 }
  0xe5   : > { %1011 = vst [vmem:[%s1210_s11 + $0x10] sm:$0xff] %v1003_v16  }
  0xe6   : > { %v653_v19 = vpop.f32.mrf.mxu3 }
  0xe7   : > { %v654_v26 = vadd.f32 %v653_v19, %v625_v22 }
  0xe8   : > { %v626_v24 = vpop.f32.mrf.mxu2 }
  0xe9   : > { %v627_v27 = vadd.f32 %v626_v24, %v598_v25  ;;  %v664_v30 = vmax.f32 %v654_v26, 0.0 }
  0xee   : > { %v655_v28 = vpop.f32.mrf.mxu3 }
  0xef   : > { %v656_v29 = vadd.f32 %v655_v28, %v627_v27 }
  0xf1   : > { %v665_v31 = vmax.f32 %v656_v29, 0.0 }
  0xf3   : > { %v1008_v32 = vpack.c.bf16 %v665_v31, %v664_v30 }
  0xf5   : > { %1012 = vst [vmem:[%s1210_s11 + $0x18] sm:$0xff] %v1008_v32  }
  0xf6 PF: > { %s13_s12 = sadd.s32 1, %s1028_s12  }
  0xf7   : > { %p10_p4 = scmp.ge.s32.totalorder %s13_s12, 4  }
  0xf9   :  { %12 = sbr.rel (!%p10_p4) target bundleno = 1 (0x1), region = 62 }

// kernel: mcnn_forward.23
= control target key start
LH: loop header
LB: loop body
LE: loop exit
PB: predicated region body
PF: predicated region fallthrough
CT: control target
= control target key end

     0   :  { %s1317_s12 = smov 0   ;;  %s1549_s0 = inlined_call_operand.vmem [shape: bf16[32,1000], index: 0, kind: input, shape index: {}]   ;;  %s1550_s1 = inlined_call_operand.vmem [shape: bf16[1000,128], index: 1, kind: input, shape index: {}]   ;;  %s1551_s2 = inlined_call_operand.vmem [shape: f32[1,128], index: 2, kind: input, shape index: {}]   ;;  %s1552_s3 = inlined_call_operand.vmem [shape: bf16[32,128], index: 3, kind: output, shape index: {}]  }
   0x1 LB: > { %s911_s13 = sadd.s32 4294967295, %s1295_s12   ;;  %p915_p0 = scmp.ge.s32.totalorder %s1295_s12, 1  ;;  %s1295_s12 = sphi %s1317_s12, %s13_s12  }
   0x2   : > { %p139_p1 = scmp.lt.s32.totalorder %s1295_s12, 3 }
   0x4   : > { %p140_p2 = pnand %p915_p0, %p139_p1 }
   0x5   : > { %s916_s11 = sshll.u32 (!%p140_p2), %s911_s13, 1 }
   0x6   : > { %143 = sbr.rel (%p140_p2) target bundleno = 226 (0xe2), region = 32  ;;  %p165_p3 = scmp.lt.s32.totalorder (!%p140_p2), %s916_s11, 3 }
   0xb   : > { %v1220_v0 = vld [vmem:[%s1550_s1 + $0x38] sm:$0xff]  ;;  %v1219_v4 = vld [vmem:[%s1550_s1 + $0x30] sm:$0xff]  ;;  %v1218_v8 = vld [vmem:[%s1550_s1 + $0x28] sm:$0xff]  ;;  %s1554_s11 = smov (!%p165_p3, %s916_s11), 3  ;;  %vm733_vm0 = vcmask 1043456   ;;  %vm729_vm1 = vcmask 850944  }
   0xc   : > { %v1228_v1 = vld [vmem:[%s1550_s1 + $0x78] sm:$0xff]  ;;  %737 = vmatpush.bf16.msra.mxu0 %v1220_v0  ;;  %v1227_v5 = vld [vmem:[%s1550_s1 + $0x70] sm:$0xff]  ;;  %v1226_v9 = vld [vmem:[%s1550_s1 + $0x68] sm:$0xff]  ;;  %s1204_s15 = sshll.u32 %s1554_s11, 5 }
   0xd   : > { %v1236_v2 = vld [vmem:[%s1550_s1 + $0xb8] sm:$0xff]  ;;  %751 = vmatpush.bf16.msra.mxu1 %v1228_v1  ;;  %v1235_v6 = vld [vmem:[%s1550_s1 + $0xb0] sm:$0xff]  ;;  %v1234_v10 = vld [vmem:[%s1550_s1 + $0xa8] sm:$0xff]  ;;  %s1418_s25 = scalar_lea.vmem %s1549_s0, %s1204_s15 }
   0xe   : > { %v1244_v3 = vld [vmem:[%s1550_s1 + $0xf8] sm:$0xff]  ;;  %765 = vmatpush.bf16.msra.mxu2 %v1236_v2  ;;  %v1243_v7 = vld [vmem:[%s1550_s1 + $0xf0] sm:$0xff]  ;;  %v1242_v11 = vld [vmem:[%s1550_s1 + $0xe8] sm:$0xff] }
   0xf   : > { %779 = vmatpush.bf16.msra.mxu3 %v1244_v3  ;;  %v1217_v12 = vld [vmem:[%s1550_s1 + $0x20] sm:$0xff]  ;;  %v1216_v16 = vld [vmem:[%s1550_s1 + $0x18] sm:$0xff]  ;;  %v1215_v20 = vld [vmem:[%s1550_s1 + $0x10] sm:$0xff] }
  0x10   : > { %738 = vmatpush.bf16.msra.mxu0 %v1219_v4  ;;  %v1225_v13 = vld [vmem:[%s1550_s1 + $0x60] sm:$0xff]  ;;  %v1224_v17 = vld [vmem:[%s1550_s1 + $0x58] sm:$0xff]  ;;  %v1223_v21 = vld [vmem:[%s1550_s1 + $0x50] sm:$0xff] }
  0x11   : > { %752 = vmatpush.bf16.msra.mxu1 %v1227_v5  ;;  %v1233_v14 = vld [vmem:[%s1550_s1 + $0xa0] sm:$0xff]  ;;  %v1232_v18 = vld [vmem:[%s1550_s1 + $0x98] sm:$0xff]  ;;  %v1231_v22 = vld [vmem:[%s1550_s1 + $0x90] sm:$0xff] }
  0x12   : > { %766 = vmatpush.bf16.msra.mxu2 %v1235_v6  ;;  %v1241_v15 = vld [vmem:[%s1550_s1 + $0xe0] sm:$0xff]  ;;  %v1240_v19 = vld [vmem:[%s1550_s1 + $0xd8] sm:$0xff]  ;;  %v1239_v23 = vld [vmem:[%s1550_s1 + $0xd0] sm:$0xff] }
  0x13   : > { %780 = vmatpush.bf16.msra.mxu3 %v1243_v7  ;;  %v310_v24 = vld [vmem:[%s1550_s1 + $0x1f0] sm:$0xf]  ;;  %v1214_v25 = vld [vmem:[%s1550_s1 + $0x8] sm:$0xff]  ;;  %v1213_v30 = vld [vmem:[%s1550_s1] sm:$0xff] }
  0x14   : > { %739 = vmatpush.bf16.msra.mxu0 %v1218_v8  ;;  %v1222_v26 = vld [vmem:[%s1550_s1 + $0x48] sm:$0xff]  ;;  %v603_v27 = vunpack.c.l.b16 %v310_v24  ;;  %v1221_v31 = vld [vmem:[%s1550_s1 + $0x40] sm:$0xff]  ;;  %v1252_v34 = vld [vmem:[%s1550_s1 + $0x138] sm:$0xff] }
  0x15   : > { %753 = vmatpush.bf16.msra.mxu1 %v1226_v9  ;;  %v1230_v28 = vld [vmem:[%s1550_s1 + $0x88] sm:$0xff]  ;;  %v1229_v32 = vld [vmem:[%s1550_s1 + $0x80] sm:$0xff]  ;;  %v1260_v35 = vld [vmem:[%s1550_s1 + $0x178] sm:$0xff] }
  0x16   : > { %767 = vmatpush.bf16.msra.mxu2 %v1234_v10  ;;  %v1238_v29 = vld [vmem:[%s1550_s1 + $0xc8] sm:$0xff]  ;;  %v1237_v33 = vld [vmem:[%s1550_s1 + $0xc0] sm:$0xff]  ;;  %v666_v36 = vpack.c.b16 %v603_v27, %v603_v27  ;;  %v1268_v45 = vld [vmem:[%s1550_s1 + $0x1b8] sm:$0xff] }
  0x17   : > { %781 = vmatpush.bf16.msra.mxu3 %v1242_v11  ;;  %v931_v37 = vld [vmem:[%s1418_s25 + $0x8] sm:$0xf]  ;;  %v923_v39 = vld [vmem:[%s1418_s25] sm:$0xf]  ;;  %v1206_v41 = vld [vmem:[%s1418_s25 + $0xc] sm:$0xf] }
  0x18   : > { %740 = vmatpush.bf16.msra.mxu0 %v1217_v12  ;;  %v1210_v38 = vld [vmem:[%s1418_s25 + $0x24] sm:$0xf0]  ;;  %v1209_v40 = vld [vmem:[%s1418_s25 + $0x1c] sm:$0xf0]  ;;  %v933_v42 = vld [vmem:[%s1418_s25 + $0x28] sm:$0xf0] }
  0x19   : > { %754 = vmatpush.bf16.msra.mxu1 %v1225_v13  ;;  %v1205_v43 = vld [vmem:[%s1418_s25 + $0x4] sm:$0xf]  ;;  %v735_v46 = vsel %vm733_vm0, %v666_v36, 0  ;;  %v932_v47 = vor.u32 %v1210_v38, %v931_v37  ;;  %v924_v48 = vor.u32 %v1209_v40, %v923_v39  ;;  %v936_v49 = vor.u32 %v1206_v41, %v933_v42  ;;  %v1251_v51 = vld [vmem:[%s1550_s1 + $0x130] sm:$0xff]  ;;  %v1274_v54 = vld [vmem:[%s1550_s1 + $0x1e8] sm:$0xff] }
  0x1a   : > { %768 = vmatpush.bf16.msra.mxu2 %v1233_v14  ;;  %v925_v44 = vld [vmem:[%s1418_s25 + $0x20] sm:$0xf0]  ;;  %v1259_v52 = vld [vmem:[%s1550_s1 + $0x170] sm:$0xff]  ;;  %v1250_v55 = vld [vmem:[%s1550_s1 + $0x128] sm:$0xff] }
  0x1b   : > { %782 = vmatpush.bf16.msra.mxu3 %v1241_v15  ;;  %v928_v50 = vor.u32 %v1205_v43, %v925_v44  ;;  %v1267_v53 = vld [vmem:[%s1550_s1 + $0x1b0] sm:$0xff]  ;;  %v1258_v56 = vld [vmem:[%s1550_s1 + $0x168] sm:$0xff]  ;;  %v1273_v58 = vld [vmem:[%s1550_s1 + $0x1e0] sm:$0xff] }
  0x1c   : > { %741 = vmatpush.bf16.msra.mxu0 %v1216_v16  ;;  %v1266_v57 = vld [vmem:[%s1550_s1 + $0x1a8] sm:$0xff]  ;;  %v1249_v59 = vld [vmem:[%s1550_s1 + $0x120] sm:$0xff]  ;;  %v1272_v62 = vld [vmem:[%s1550_s1 + $0x1d8] sm:$0xff] }
  0x1d   : > { %755 = vmatpush.bf16.msra.mxu1 %v1224_v17  ;;  %v1257_v60 = vld [vmem:[%s1550_s1 + $0x160] sm:$0xff]  ;;  %v1248_v63 = vld [vmem:[%s1550_s1 + $0x118] sm:$0xff]  ;;  %v1271_v2 = vld [vmem:[%s1550_s1 + $0x1d0] sm:$0xff] }
  0x1e   : > { %769 = vmatpush.bf16.msra.mxu2 %v1232_v18  ;;  %v1265_v61 = vld [vmem:[%s1550_s1 + $0x1a0] sm:$0xff]  ;;  %v1256_v0 = vld [vmem:[%s1550_s1 + $0x158] sm:$0xff]  ;;  %v1247_v3 = vld [vmem:[%s1550_s1 + $0x110] sm:$0xff] }
  0x1f   : > { %783 = vmatpush.bf16.msra.mxu3 %v1240_v19  ;;  %v1264_v1 = vld [vmem:[%s1550_s1 + $0x198] sm:$0xff]  ;;  %v1255_v4 = vld [vmem:[%s1550_s1 + $0x150] sm:$0xff]  ;;  %v1270_v6 = vld [vmem:[%s1550_s1 + $0x1c8] sm:$0xff] }
  0x20   : > { %742 = vmatpush.bf16.msra.mxu0 %v1215_v20  ;;  %v1263_v5 = vld [vmem:[%s1550_s1 + $0x190] sm:$0xff]  ;;  %v1246_v7 = vld [vmem:[%s1550_s1 + $0x108] sm:$0xff]  ;;  %v1269_v10 = vld [vmem:[%s1550_s1 + $0x1c0] sm:$0xff] }
  0x21   : > { %756 = vmatpush.bf16.msra.mxu1 %v1223_v21  ;;  %v1254_v8 = vld [vmem:[%s1550_s1 + $0x148] sm:$0xff]  ;;  %v1208_v11 = vld [vmem:[%s1418_s25 + $0x1c] sm:$0xf]  ;;  %v1245_v13 = vld [vmem:[%s1550_s1 + $0x100] sm:$0xff] }
  0x22   : > { %770 = vmatpush.bf16.msra.mxu2 %v1231_v22  ;;  %v1262_v9 = vld [vmem:[%s1550_s1 + $0x188] sm:$0xff]  ;;  %v949_v12 = vld [vmem:[%s1418_s25 + $0x38] sm:$0xf0]  ;;  %v1253_v14 = vld [vmem:[%s1550_s1 + $0x140] sm:$0xff] }
  0x23   : > { %784 = vmatpush.bf16.msra.mxu3 %v1239_v23  ;;  %v1261_v15 = vld [vmem:[%s1550_s1 + $0x180] sm:$0xff]  ;;  %v952_v16 = vor.u32 %v1208_v11, %v949_v12  ;;  %v939_v17 = vld [vmem:[%s1418_s25 + $0x10] sm:$0xf]  ;;  %v1207_v19 = vld [vmem:[%s1418_s25 + $0x14] sm:$0xf] }
  0x24   : > { %743 = vmatpush.bf16.msra.mxu0 %v1214_v25  ;;  %v1211_v18 = vld [vmem:[%s1418_s25 + $0x2c] sm:$0xf0]  ;;  %v941_v20 = vld [vmem:[%s1418_s25 + $0x30] sm:$0xf0]  ;;  %v947_v21 = vld [vmem:[%s1418_s25 + $0x18] sm:$0xf] }
  0x25   : > { %757 = vmatpush.bf16.msra.mxu1 %v1222_v26  ;;  %v1212_v22 = vld [vmem:[%s1418_s25 + $0x34] sm:$0xf0]  ;;  %v940_v23 = vor.u32 %v1211_v18, %v939_v17  ;;  %v944_v24 = vor.u32 %v1207_v19, %v941_v20  ;;  %s920_s25 = sshll.u32 %s1554_s11, 2 }
  0x26   : > { %771 = vmatpush.bf16.msra.mxu2 %v1230_v28  ;;  %v948_v25 = vor.u32 %v1212_v22, %v947_v21  ;;  %v1288_v28 = vld [vmem:[%s1551_s2] ss:$0 sm:$0xff]  ;;  %s175_s26 = scalar_lea.vmem %s1552_s3, %s920_s25 }
  0x27   : > { %785 = vmatpush.bf16.msra.mxu3 %v1238_v29 }
  0x28   : > { %744 = vmatpush.bf16.msra.mxu0 %v1213_v30 }
  0x29   : > { %758 = vmatpush.bf16.msra.mxu1 %v1221_v31 }
  0x2a   : > { %772 = vmatpush.bf16.msra.mxu2 %v1229_v32 }
  0x2b   : > { %786 = vmatpush.bf16.msra.mxu3 %v1237_v33  ;;  %745 = vmatmul.bf16.vlgmr.msra.gmra.mxu0 %v924_v48 }
  0x2c   : > { %793 = vmatpush.bf16.msrb.mxu0 %v1252_v34  ;;  %759 = vmatmul.bf16.vlgmr.msra.gmra.mxu1 %v928_v50 }
  0x2d   : > { %807 = vmatpush.bf16.msrb.mxu1 %v1260_v35  ;;  %773 = vmatmul.bf16.vlgmr.msra.gmra.mxu2 %v932_v47 }
  0x2e   : > { %821 = vmatpush.bf16.msrb.mxu2 %v1268_v45  ;;  %787 = vmatmul.bf16.vlgmr.msra.gmra.mxu3 %v936_v49 }
  0x2f   : > { %836 = vmatpush.bf16.msrb.mxu3 %v735_v46 }
  0x30   : > { %794 = vmatpush.bf16.msrb.mxu0 %v1251_v51 }
  0x31   : > { %808 = vmatpush.bf16.msrb.mxu1 %v1259_v52 }
  0x32   : > { %822 = vmatpush.bf16.msrb.mxu2 %v1267_v53 }
  0x33   : > { %837 = vmatpush.bf16.msrb.mxu3 %v1274_v54 }
  0x34   : > { %795 = vmatpush.bf16.msrb.mxu0 %v1250_v55 }
  0x35   : > { %809 = vmatpush.bf16.msrb.mxu1 %v1258_v56 }
  0x36   : > { %823 = vmatpush.bf16.msrb.mxu2 %v1266_v57 }
  0x37   : > { %838 = vmatpush.bf16.msrb.mxu3 %v1273_v58 }
  0x38   : > { %796 = vmatpush.bf16.msrb.mxu0 %v1249_v59 }
  0x39   : > { %810 = vmatpush.bf16.msrb.mxu1 %v1257_v60 }
  0x3a   : > { %824 = vmatpush.bf16.msrb.mxu2 %v1265_v61 }
  0x3b   : > { %839 = vmatpush.bf16.msrb.mxu3 %v1272_v62 }
  0x3c   : > { %797 = vmatpush.bf16.msrb.mxu0 %v1248_v63 }
  0x3d   : > { %811 = vmatpush.bf16.msrb.mxu1 %v1256_v0 }
  0x3e   : > { %825 = vmatpush.bf16.msrb.mxu2 %v1264_v1 }
  0x3f   : > { %840 = vmatpush.bf16.msrb.mxu3 %v1271_v2 }
  0x40   : > { %798 = vmatpush.bf16.msrb.mxu0 %v1247_v3 }
  0x41   : > { %812 = vmatpush.bf16.msrb.mxu1 %v1255_v4 }
  0x42   : > { %826 = vmatpush.bf16.msrb.mxu2 %v1263_v5 }
  0x43   : > { %841 = vmatpush.bf16.msrb.mxu3 %v1270_v6 }
  0x44   : > { %799 = vmatpush.bf16.msrb.mxu0 %v1246_v7 }
  0x45   : > { %813 = vmatpush.bf16.msrb.mxu1 %v1254_v8 }
  0x46   : > { %827 = vmatpush.bf16.msrb.mxu2 %v1262_v9 }
  0x47   : > { %842 = vmatpush.bf16.msrb.mxu3 %v1269_v10 }
  0x48   : > { %800 = vmatpush.bf16.msrb.mxu0 %v1245_v13 }
  0x49   : > { %814 = vmatpush.bf16.msrb.mxu1 %v1253_v14 }
  0x4a   : > { %1201 = vmatmul.msk.bf16.vlgmr.msrb.gmra.mxu3 %vm729_vm1, %v952_v16  ;;  %828 = vmatpush.bf16.msrb.mxu2 %v1261_v15 }
  0x4b   : > { %801 = vmatmul.bf16.vlgmr.msrb.gmra.mxu0 %v940_v23 }
  0x4c   : > { %815 = vmatmul.bf16.vlgmr.msrb.gmra.mxu1 %v944_v24 }
  0x4d   : > { %829 = vmatmul.bf16.vlgmr.msrb.gmra.mxu2 %v948_v25 }
  0xa8   : > { %v746_v26 = vpop.f32.mrf.mxu0 }
  0xa9   : > { %v760_v27 = vpop.f32.mrf.mxu1  ;;  %v747_v31 = vadd.f32 %v1288_v28, %v746_v26 }
  0xab   : > { %v761_v34 = vadd.f32 %v760_v27, %v747_v31 }
  0xb0   : > { %v774_v29 = vpop.f32.mrf.mxu2  ;;  %v748_v32 = vpop.f32.mrf.mxu0 }
  0xb1   : > { %v788_v30 = vpop.f32.mrf.mxu3  ;;  %v762_v33 = vpop.f32.mrf.mxu1  ;;  %v749_v35 = vadd.f32 %v1288_v28, %v748_v32  ;;  %v775_v38 = vadd.f32 %v774_v29, %v761_v34 }
  0xb3   : > { %v763_v39 = vadd.f32 %v762_v33, %v749_v35  ;;  %v789_v42 = vadd.f32 %v788_v30, %v775_v38 }
  0xb8   : > { %v776_v36 = vpop.f32.mrf.mxu2 }
  0xb9   : > { %v790_v37 = vpop.f32.mrf.mxu3  ;;  %v777_v43 = vadd.f32 %v776_v36, %v763_v39 }
  0xbb   : > { %v791_v47 = vadd.f32 %v790_v37, %v777_v43 }
  0xc8   : > { %v802_v40 = vpop.f32.mrf.mxu0 }
  0xc9   : > { %v816_v41 = vpop.f32.mrf.mxu1  ;;  %v803_v44 = vadd.f32 %v802_v40, %v789_v42 }
  0xcb   : > { %v817_v49 = vadd.f32 %v816_v41, %v803_v44 }
  0xcd   : > { %v844_v45 = vpop.f32.mrf.mxu3 }
  0xd0   : > { %v830_v46 = vpop.f32.mrf.mxu2  ;;  %v804_v48 = vpop.f32.mrf.mxu0 }
  0xd1   : > { %v805_v50 = vadd.f32 %v804_v48, %v791_v47  ;;  %v831_v51 = vadd.f32 %v830_v46, %v817_v49  ;;  %v818_v52 = vpop.f32.mrf.mxu1 }
  0xd3   : > { %v819_v53 = vadd.f32 %v818_v52, %v805_v50  ;;  %v845_v55 = vadd.f32 %v844_v45, %v831_v51 }
  0xd5   : > { %v846_v57 = vpop.f32.mrf.mxu3  ;;  %v849_v59 = vmax.f32 %v845_v55, 0.0 }
  0xd8   : > { %v832_v54 = vpop.f32.mrf.mxu2 }
  0xd9   : > { %v833_v56 = vadd.f32 %v832_v54, %v819_v53 }
  0xdb   : > { %v847_v58 = vadd.f32 %v846_v57, %v833_v56 }
  0xdd   : > { %v850_v60 = vmax.f32 %v847_v58, 0.0 }
  0xdf   : > { %v1278_v61 = vpack.c.bf16 %v850_v60, %v849_v59 }
  0xe1   : > { %1279 = vst [vmem:[%s175_s26] sm:$0xff] %v1278_v61  }
  0xe2 PF: > { %s13_s12 = sadd.s32 1, %s1295_s12  }
  0xe3   : > { %p10_p4 = scmp.ge.s32.totalorder %s13_s12, 4  }
  0xe5   :  { %12 = sbr.rel (!%p10_p4) target bundleno = 1 (0x1), region = 62 }

// kernel: mcnn_forward.24
= control target key start
LH: loop header
LB: loop body
LE: loop exit
PB: predicated region body
PF: predicated region fallthrough
CT: control target
= control target key end

     0   :  { %s813_s12 = smov 0   ;;  %s933_s0 = inlined_call_operand.vmem [shape: bf16[32,500], index: 0, kind: input, shape index: {}]   ;;  %s934_s1 = inlined_call_operand.vmem [shape: bf16[500,128], index: 1, kind: input, shape index: {}]   ;;  %s935_s2 = inlined_call_operand.vmem [shape: f32[1,128], index: 2, kind: input, shape index: {}]   ;;  %s936_s3 = inlined_call_operand.vmem [shape: bf16[32,128], index: 3, kind: output, shape index: {}]  }
   0x1 LB: > { %s582_s13 = sadd.s32 4294967295, %s791_s12   ;;  %p586_p0 = scmp.ge.s32.totalorder %s791_s12, 1  ;;  %s791_s12 = sphi %s813_s12, %s13_s12  }
   0x2   : > { %p139_p1 = scmp.lt.s32.totalorder %s791_s12, 3 }
   0x4   : > { %p140_p2 = pnand %p586_p0, %p139_p1 }
   0x5   : > { %s587_s9 = sshll.u32 (!%p140_p2), %s582_s13, 1 }
   0x6   : > { %143 = sbr.rel (%p140_p2) target bundleno = 198 (0xc6), region = 32  ;;  %p165_p3 = scmp.lt.s32.totalorder (!%p140_p2), %s587_s9, 3 }
   0xb   : > { %v747_v0 = vld [vmem:[%s934_s1 + $0x38] sm:$0xff]  ;;  %v746_v5 = vld [vmem:[%s934_s1 + $0x30] sm:$0xff]  ;;  %vm460_vm0 = vcmask 1041408   ;;  %v745_v10 = vld [vmem:[%s934_s1 + $0x28] sm:$0xff]  ;;  %s938_s9 = smov (!%p165_p3, %s587_s9), 3  ;;  %vm456_vm1 = vcmask 949248  }
   0xc   : > { %v755_v1 = vld [vmem:[%s934_s1 + $0x78] sm:$0xff]  ;;  %464 = vmatpush.bf16.msra.mxu0 %v747_v0  ;;  %v754_v6 = vld [vmem:[%s934_s1 + $0x70] sm:$0xff]  ;;  %v753_v11 = vld [vmem:[%s934_s1 + $0x68] sm:$0xff]  ;;  %s735_s8 = sshll.u32 %s938_s9, 4  ;;  %s591_s7 = sshll.u32 %s938_s9, 2 }
   0xd   : > { %v763_v2 = vld [vmem:[%s934_s1 + $0xb8] sm:$0xff]  ;;  %478 = vmatpush.bf16.msra.mxu1 %v755_v1  ;;  %v762_v7 = vld [vmem:[%s934_s1 + $0xb0] sm:$0xff]  ;;  %v761_v13 = vld [vmem:[%s934_s1 + $0xa8] sm:$0xff]  ;;  %s169_s18 = scalar_lea.vmem %s933_s0, %s735_s8  ;;  %s175_s11 = scalar_lea.vmem %s936_s3, %s591_s7 }
   0xe   : > { %v243_v3 = vld [vmem:[%s934_s1 + $0xf8] sm:$0x3]  ;;  %492 = vmatpush.bf16.msra.mxu2 %v763_v2  ;;  %v770_v12 = vld [vmem:[%s934_s1 + $0xf0] sm:$0xff]  ;;  %v744_v14 = vld [vmem:[%s934_s1 + $0x20] sm:$0xff] }
   0xf   : > { %v392_v4 = vunpack.c.l.b16 %v243_v3  ;;  %v752_v15 = vld [vmem:[%s934_s1 + $0x60] sm:$0xff]  ;;  %v769_v16 = vld [vmem:[%s934_s1 + $0xe8] sm:$0xff]  ;;  %v743_v18 = vld [vmem:[%s934_s1 + $0x18] sm:$0xff] }
  0x10   : > { %465 = vmatpush.bf16.msra.mxu0 %v746_v5  ;;  %v760_v17 = vld [vmem:[%s934_s1 + $0xa0] sm:$0xff]  ;;  %v751_v19 = vld [vmem:[%s934_s1 + $0x58] sm:$0xff]  ;;  %v742_v22 = vld [vmem:[%s934_s1 + $0x10] sm:$0xff] }
  0x11   : > { %v424_v8 = vpack.c.b16 %v392_v4, %v392_v4  ;;  %479 = vmatpush.bf16.msra.mxu1 %v754_v6  ;;  %v768_v20 = vld [vmem:[%s934_s1 + $0xe0] sm:$0xff]  ;;  %v759_v21 = vld [vmem:[%s934_s1 + $0x98] sm:$0xff]  ;;  %v750_v23 = vld [vmem:[%s934_s1 + $0x50] sm:$0xff] }
  0x12   : > { %493 = vmatpush.bf16.msra.mxu2 %v762_v7  ;;  %v767_v24 = vld [vmem:[%s934_s1 + $0xd8] sm:$0xff]  ;;  %v758_v25 = vld [vmem:[%s934_s1 + $0x90] sm:$0xff]  ;;  %v741_v26 = vld [vmem:[%s934_s1 + $0x8] sm:$0xff] }
  0x13   : > { %v462_v9 = vsel %vm460_vm0, %v424_v8, 0  ;;  %v749_v27 = vld [vmem:[%s934_s1 + $0x48] sm:$0xff]  ;;  %v766_v28 = vld [vmem:[%s934_s1 + $0xd0] sm:$0xff]  ;;  %v740_v31 = vld [vmem:[%s934_s1] sm:$0xff] }
  0x14   : > { %506 = vmatpush.bf16.msra.mxu3 %v462_v9  ;;  %466 = vmatpush.bf16.msra.mxu0 %v745_v10  ;;  %v757_v29 = vld [vmem:[%s934_s1 + $0x88] sm:$0xff]  ;;  %v748_v32 = vld [vmem:[%s934_s1 + $0x40] sm:$0xff]  ;;  %v738_v34 = vld [vmem:[%s169_s18 + $0xc] sm:$0xf0] }
  0x15   : > { %480 = vmatpush.bf16.msra.mxu1 %v753_v11  ;;  %v765_v30 = vld [vmem:[%s934_s1 + $0xc8] sm:$0xff]  ;;  %v594_v33 = vld [vmem:[%s169_s18] sm:$0xf]  ;;  %v736_v35 = vld [vmem:[%s169_s18 + $0x4] sm:$0xf] }
  0x16   : > { %494 = vmatpush.bf16.msra.mxu2 %v761_v13  ;;  %v596_v36 = vld [vmem:[%s169_s18 + $0x10] sm:$0xf0]  ;;  %v756_v37 = vld [vmem:[%s934_s1 + $0x80] sm:$0xff]  ;;  %v602_v38 = vld [vmem:[%s169_s18 + $0x8] sm:$0xf]  ;;  %v595_v40 = vor.u32 %v738_v34, %v594_v33 }
  0x17   : > { %v739_v39 = vld [vmem:[%s169_s18 + $0x14] sm:$0xf0]  ;;  %v599_v41 = vor.u32 %v736_v35, %v596_v36  ;;  %v764_v43 = vld [vmem:[%s934_s1 + $0xc0] sm:$0xff]  ;;  %v737_v44 = vld [vmem:[%s169_s18 + $0xc] sm:$0xf] }
  0x18   : > { %507 = vmatpush.bf16.msra.mxu3 %v770_v12  ;;  %467 = vmatpush.bf16.msra.mxu0 %v744_v14  ;;  %v603_v42 = vor.u32 %v739_v39, %v602_v38  ;;  %v604_v45 = vld [vmem:[%s169_s18 + $0x18] sm:$0xf0]  ;;  %v784_v48 = vld [vmem:[%s935_s2] ss:$0 sm:$0xff] }
  0x19   : > { %481 = vmatpush.bf16.msra.mxu1 %v752_v15  ;;  %v607_v46 = vor.u32 %v737_v44, %v604_v45 }
  0x1a   : > { %495 = vmatpush.bf16.msra.mxu2 %v760_v17 }
  0x1c   : > { %508 = vmatpush.bf16.msra.mxu3 %v769_v16  ;;  %468 = vmatpush.bf16.msra.mxu0 %v743_v18 }
  0x1d   : > { %482 = vmatpush.bf16.msra.mxu1 %v751_v19 }
  0x1e   : > { %496 = vmatpush.bf16.msra.mxu2 %v759_v21 }
  0x20   : > { %509 = vmatpush.bf16.msra.mxu3 %v768_v20  ;;  %469 = vmatpush.bf16.msra.mxu0 %v742_v22 }
  0x21   : > { %483 = vmatpush.bf16.msra.mxu1 %v750_v23 }
  0x22   : > { %497 = vmatpush.bf16.msra.mxu2 %v758_v25 }
  0x24   : > { %510 = vmatpush.bf16.msra.mxu3 %v767_v24  ;;  %470 = vmatpush.bf16.msra.mxu0 %v741_v26 }
  0x25   : > { %484 = vmatpush.bf16.msra.mxu1 %v749_v27 }
  0x26   : > { %498 = vmatpush.bf16.msra.mxu2 %v757_v29 }
  0x28   : > { %511 = vmatpush.bf16.msra.mxu3 %v766_v28  ;;  %471 = vmatpush.bf16.msra.mxu0 %v740_v31 }
  0x29   : > { %485 = vmatpush.bf16.msra.mxu1 %v748_v32 }
  0x2a   : > { %499 = vmatpush.bf16.msra.mxu2 %v756_v37 }
  0x2b   : > { %472 = vmatmul.bf16.vlgmr.msra.gmra.mxu0 %v595_v40 }
  0x2c   : > { %512 = vmatpush.bf16.msra.mxu3 %v765_v30  ;;  %486 = vmatmul.bf16.vlgmr.msra.gmra.mxu1 %v599_v41 }
  0x2d   : > { %500 = vmatmul.bf16.vlgmr.msra.gmra.mxu2 %v603_v42 }
  0x30   : > { %513 = vmatpush.bf16.msra.mxu3 %v764_v43 }
  0x33   : > { %732 = vmatmul.msk.bf16.vlgmr.msra.gmra.mxu3 %vm456_vm1, %v607_v46 }
  0xa8   : > { %v473_v47 = vpop.f32.mrf.mxu0 }
  0xa9   : > { %v487_v49 = vpop.f32.mrf.mxu1  ;;  %v474_v50 = vadd.f32 %v784_v48, %v473_v47 }
  0xab   : > { %v488_v53 = vadd.f32 %v487_v49, %v474_v50 }
  0xb0   : > { %v501_v51 = vpop.f32.mrf.mxu2  ;;  %v475_v52 = vpop.f32.mrf.mxu0 }
  0xb1   : > { %v476_v55 = vadd.f32 %v784_v48, %v475_v52  ;;  %v502_v56 = vadd.f32 %v501_v51, %v488_v53  ;;  %v489_v57 = vpop.f32.mrf.mxu1 }
  0xb3   : > { %v490_v59 = vadd.f32 %v489_v57, %v476_v55 }
  0xb6   : > { %v515_v54 = vpop.f32.mrf.mxu3 }
  0xb7   : > { %v516_v60 = vadd.f32 %v515_v54, %v502_v56 }
  0xb8   : > { %v503_v58 = vpop.f32.mrf.mxu2 }
  0xb9   : > { %v504_v61 = vadd.f32 %v503_v58, %v490_v59  ;;  %v520_v0 = vmax.f32 %v516_v60, 0.0 }
  0xbe   : > { %v517_v62 = vpop.f32.mrf.mxu3 }
  0xbf   : > { %v518_v63 = vadd.f32 %v517_v62, %v504_v61 }
  0xc1   : > { %v521_v1 = vmax.f32 %v518_v63, 0.0 }
  0xc3   : > { %v774_v2 = vpack.c.bf16 %v521_v1, %v520_v0 }
  0xc5   : > { %775 = vst [vmem:[%s175_s11] sm:$0xff] %v774_v2  }
  0xc6 PF: > { %s13_s12 = sadd.s32 1, %s791_s12  }
  0xc7   : > { %p10_p4 = scmp.ge.s32.totalorder %s13_s12, 4  }
  0xc9   :  { %12 = sbr.rel (!%p10_p4) target bundleno = 1 (0x1), region = 62 }

// kernel: mcnn_forward.18
= control target key start
LH: loop header
LB: loop body
LE: loop exit
PB: predicated region body
PF: predicated region fallthrough
CT: control target
= control target key end

     0   :  { %s146_s9 = smov 96   ;;  %vm112_vm0 = vcmask 254976   ;;  %s237_s0 = inlined_call_operand.vmem [shape: bf16[8,2,4,64], index: 0, kind: input, shape index: {}]   ;;  %s238_s1 = inlined_call_operand.vmem [shape: bf16[8,4,32], index: 1, kind: output, shape index: {}]  }
   0x1   :  { %v16_v0 = vld [vmem:[%s237_s0 + $0x10] sm:$0x3]  ;;  %v17_v1 = vld [vmem:[%s237_s0 + $0x12] sm:$0x3]  ;;  %v18_v2 = vld [vmem:[%s237_s0 + $0x14] sm:$0x3] }
   0x2   :  { %v19_v3 = vld [vmem:[%s237_s0 + $0x16] sm:$0x3]  ;;  %v28_v4 = vunpack.c.l.bf16 %v16_v0  ;;  %v29_v5 = vunpack.c.l.bf16 %v18_v2  ;;  %v36_v6 = vunpack.c.l.bf16 %v17_v1  ;;  %v8_v7 = vld [vmem:[%s237_s0] sm:$0x3]  ;;  %v9_v8 = vld [vmem:[%s237_s0 + $0x2] sm:$0x3] }
   0x3   :  { %v37_v9 = vunpack.c.l.bf16 %v19_v3  ;;  %v10_v10 = vld [vmem:[%s237_s0 + $0x4] sm:$0x3]  ;;  %v11_v11 = vld [vmem:[%s237_s0 + $0x6] sm:$0x3]  ;;  %v24_v12 = vunpack.c.l.bf16 %v8_v7  ;;  %v32_v13 = vunpack.c.l.bf16 %v9_v8  ;;  %v20_v14 = vld [vmem:[%s237_s0 + $0x18] sm:$0x3] }
   0x4   :  { %v44_v15 = vmax.f32 %v28_v4, %v36_v6  ;;  %v25_v16 = vunpack.c.l.bf16 %v10_v10  ;;  %v33_v17 = vunpack.c.l.bf16 %v11_v11  ;;  %v21_v18 = vld [vmem:[%s237_s0 + $0x1a] sm:$0x3]  ;;  %v22_v19 = vld [vmem:[%s237_s0 + $0x1c] sm:$0x3]  ;;  %v23_v20 = vld [vmem:[%s237_s0 + $0x1e] sm:$0x3]  ;;  %v30_v21 = vunpack.c.l.bf16 %v20_v14 }
   0x5   :  { %v45_v22 = vmax.f32 %v29_v5, %v37_v9  ;;  %v40_v23 = vmax.f32 %v24_v12, %v32_v13  ;;  %v31_v24 = vunpack.c.l.bf16 %v22_v19  ;;  %v38_v25 = vunpack.c.l.bf16 %v21_v18  ;;  %v12_v26 = vld [vmem:[%s237_s0 + $0x8] sm:$0x3]  ;;  %v13_v27 = vld [vmem:[%s237_s0 + $0xa] sm:$0x3]  ;;  %v14_v28 = vld [vmem:[%s237_s0 + $0xc] sm:$0x3] }
   0x6   :  { %v41_v29 = vmax.f32 %v25_v16, %v33_v17  ;;  %v39_v30 = vunpack.c.l.bf16 %v23_v20  ;;  %v15_v31 = vld [vmem:[%s237_s0 + $0xe] sm:$0x3]  ;;  %v26_v32 = vunpack.c.l.bf16 %v12_v26  ;;  %v27_v34 = vunpack.c.l.bf16 %v14_v28 }
   0x7   :  { %v46_v33 = vmax.f32 %v30_v21, %v38_v25  ;;  %v34_v36 = vunpack.c.l.bf16 %v13_v27  ;;  %v35_v37 = vunpack.c.l.bf16 %v15_v31  ;;  %v136_v39 = vpack.i.bf16 %v45_v22, %v44_v15 }
   0x8   :  { %v47_v35 = vmax.f32 %v31_v24, %v39_v30  ;;  %v126_v41 = vpack.i.bf16 %v41_v29, %v40_v23 }
   0x9   :  { %v42_v38 = vmax.f32 %v26_v32, %v34_v36  ;;  %v43_v40 = vmax.f32 %v27_v34, %v35_v37  ;;  %137 = vrot.lane.b32.xlu1 %v136_v39, %s146_s9 }
   0xa   :  { %127 = vrot.lane.b32.xlu0 %v126_v41, %s146_s9  ;;  %v141_v42 = vpack.i.bf16 %v47_v35, %v46_v33 }
   0xb   :  { %v131_v43 = vpack.i.bf16 %v43_v40, %v42_v38 }
  0x11   :  { %142 = vrot.lane.b32.xlu1 %v141_v42, %s146_s9 }
  0x12   :  { %132 = vrot.lane.b32.xlu0 %v131_v43, %s146_s9 }
  0x7b   :  { %v138_v44 = vpop.permute.xlu1 %137 }
  0x7c   :  { %v140_v45 = vunpack.i.h.bf16 %v138_v44  ;;  %v139_v46 = vunpack.i.l.bf16 %v138_v44  ;;  %v128_v47 = vpop.permute.xlu0 %127 }
  0x7d   :  { %v130_v48 = vunpack.i.h.bf16 %v128_v47  ;;  %v129_v49 = vunpack.i.l.bf16 %v128_v47 }
  0x7e   :  { %v101_v50 = vmax.f32 %v45_v22, %v140_v45  ;;  %v100_v51 = vmax.f32 %v44_v15, %v139_v46 }
  0x7f   :  { %v97_v52 = vmax.f32 %v41_v29, %v130_v48  ;;  %v96_v53 = vmax.f32 %v40_v23, %v129_v49 }
  0x80   :  { %v109_v54 = vpack.c.bf16 %v101_v50, %v101_v50  ;;  %v108_v55 = vpack.c.bf16 %v100_v51, %v100_v51 }
  0x81   :  { %v105_v56 = vpack.c.bf16 %v97_v52, %v97_v52  ;;  %v104_v57 = vpack.c.bf16 %v96_v53, %v96_v53 }
  0x82   :  { %118 = vst.msk [vmem:[%s238_s1 + $0xa] sm:$0x3] %vm112_vm0, %v109_v54 }
  0x83   :  { %117 = vst.msk [vmem:[%s238_s1 + $0x8] sm:$0x3] %vm112_vm0, %v108_v55  ;;  %v143_v58 = vpop.permute.xlu1 %142 }
  0x84   :  { %114 = vst.msk [vmem:[%s238_s1 + $0x2] sm:$0x3] %vm112_vm0, %v105_v56  ;;  %v145_v59 = vunpack.i.h.bf16 %v143_v58  ;;  %v144_v60 = vunpack.i.l.bf16 %v143_v58  ;;  %v133_v61 = vpop.permute.xlu0 %132 }
  0x85   :  { %113 = vst.msk [vmem:[%s238_s1] sm:$0x3] %vm112_vm0, %v104_v57  ;;  %v135_v62 = vunpack.i.h.bf16 %v133_v61  ;;  %v134_v63 = vunpack.i.l.bf16 %v133_v61 }
  0x86   :  { %v103_v0 = vmax.f32 %v47_v35, %v145_v59  ;;  %v102_v1 = vmax.f32 %v46_v33, %v144_v60 }
  0x87   :  { %v99_v2 = vmax.f32 %v43_v40, %v135_v62  ;;  %v98_v3 = vmax.f32 %v42_v38, %v134_v63 }
  0x88   :  { %v111_v4 = vpack.c.bf16 %v103_v0, %v103_v0  ;;  %v110_v5 = vpack.c.bf16 %v102_v1, %v102_v1 }
  0x89   :  { %v107_v6 = vpack.c.bf16 %v99_v2, %v99_v2  ;;  %v106_v7 = vpack.c.bf16 %v98_v3, %v98_v3 }
  0x8a   :  { %120 = vst.msk [vmem:[%s238_s1 + $0xe] sm:$0x3] %vm112_vm0, %v111_v4 }
  0x8b   :  { %119 = vst.msk [vmem:[%s238_s1 + $0xc] sm:$0x3] %vm112_vm0, %v110_v5 }
  0x8c   :  { %116 = vst.msk [vmem:[%s238_s1 + $0x6] sm:$0x3] %vm112_vm0, %v107_v6 }
  0x8d   :  { %115 = vst.msk [vmem:[%s238_s1 + $0x4] sm:$0x3] %vm112_vm0, %v106_v7 }

// kernel: mcnn_forward.17
= control target key start
LH: loop header
LB: loop body
LE: loop exit
PB: predicated region body
PF: predicated region fallthrough
CT: control target
= control target key end

     0   :  { %s1520_s12 = smov 0   ;;  %s1798_s0 = inlined_call_operand.vmem [shape: bf16[128,784], index: 0, kind: input, shape index: {}]   ;;  %s1799_s1 = inlined_call_operand.vmem [shape: bf16[784,128], index: 1, kind: input, shape index: {}]   ;;  %s1800_s2 = inlined_call_operand.vmem [shape: f32[1,128], index: 2, kind: input, shape index: {}]   ;;  %s1801_s3 = inlined_call_operand.vmem [shape: bf16[128,128], index: 3, kind: output, shape index: {}]  }
   0x1 LB: > { %s1042_s13 = sadd.s32 4294967295, %s1498_s12   ;;  %p1046_p0 = scmp.ge.s32.totalorder %s1498_s12, 1  ;;  %s1498_s12 = sphi %s1520_s12, %s13_s12  }
   0x2   : > { %p139_p1 = scmp.lt.s32.totalorder %s1498_s12, 3 }
   0x4   : > { %p140_p2 = pnand %p1046_p0, %p139_p1 }
   0x5   : > { %s1047_s5 = sshll.u32 (!%p140_p2), %s1042_s13, 3 }
   0x6   : > { %143 = sbr.rel (%p140_p2) target bundleno = 288 (0x120), region = 32  ;;  %p165_p3 = scmp.lt.s32.totalorder (!%p140_p2), %s1047_s5, 15 }
   0xb   : > { %v1400_v0 = vld [vmem:[%s1799_s1 + $0x38] sm:$0xff]  ;;  %v1399_v3 = vld [vmem:[%s1799_s1 + $0x30] sm:$0xff]  ;;  %v1398_v6 = vld [vmem:[%s1799_s1 + $0x28] sm:$0xff]  ;;  %s1803_s5 = smov (!%p165_p3, %s1047_s5), 15  ;;  %vm746_vm0 = vcmask 130048  }
   0xc   : > { %v1408_v1 = vld [vmem:[%s1799_s1 + $0x78] sm:$0xff]  ;;  %759 = vmatpush.bf16.msra.mxu0 %v1400_v0  ;;  %1465 = vmatpush.bf16.msra.mxu3 %v1400_v0  ;;  %v1407_v4 = vld [vmem:[%s1799_s1 + $0x70] sm:$0xff]  ;;  %v1406_v7 = vld [vmem:[%s1799_s1 + $0x68] sm:$0xff]  ;;  %s1482_s21 = smul.u32 28, %s1803_s5 }
   0xd   : > { %v1416_v2 = vld [vmem:[%s1799_s1 + $0xb8] sm:$0xff]  ;;  %788 = vmatpush.bf16.msra.mxu1 %v1408_v1  ;;  %v1415_v5 = vld [vmem:[%s1799_s1 + $0xb0] sm:$0xff]  ;;  %v1414_v8 = vld [vmem:[%s1799_s1 + $0xa8] sm:$0xff] }
   0xe   : > { %817 = vmatpush.bf16.msra.mxu2 %v1416_v2  ;;  %v1397_v9 = vld [vmem:[%s1799_s1 + $0x20] sm:$0xff]  ;;  %v1396_v12 = vld [vmem:[%s1799_s1 + $0x18] sm:$0xff]  ;;  %v1395_v15 = vld [vmem:[%s1799_s1 + $0x10] sm:$0xff]  ;;  %s1591_s30 = scalar_lea.vmem %s1798_s0, %s1482_s21 }
   0xf   : > { %v1405_v10 = vld [vmem:[%s1799_s1 + $0x60] sm:$0xff]  ;;  %v1404_v13 = vld [vmem:[%s1799_s1 + $0x58] sm:$0xff]  ;;  %v1403_v16 = vld [vmem:[%s1799_s1 + $0x50] sm:$0xff] }
  0x10   : > { %760 = vmatpush.bf16.msra.mxu0 %v1399_v3  ;;  %1466 = vmatpush.bf16.msra.mxu3 %v1399_v3  ;;  %v1413_v11 = vld [vmem:[%s1799_s1 + $0xa0] sm:$0xff]  ;;  %v1412_v14 = vld [vmem:[%s1799_s1 + $0x98] sm:$0xff]  ;;  %v1411_v17 = vld [vmem:[%s1799_s1 + $0x90] sm:$0xff] }
  0x11   : > { %789 = vmatpush.bf16.msra.mxu1 %v1407_v4  ;;  %v1394_v18 = vld [vmem:[%s1799_s1 + $0x8] sm:$0xff]  ;;  %v1393_v21 = vld [vmem:[%s1799_s1] sm:$0xff]  ;;  %v1368_v25 = vld [vmem:[%s1591_s30 + $0x18] sm:$0xf0] }
  0x12   : > { %818 = vmatpush.bf16.msra.mxu2 %v1415_v5  ;;  %v1402_v19 = vld [vmem:[%s1799_s1 + $0x48] sm:$0xff]  ;;  %v1401_v22 = vld [vmem:[%s1799_s1 + $0x40] sm:$0xff]  ;;  %v1109_v26 = vld [vmem:[%s1591_s30 + $0x70] sm:$0xf] }
  0x13   : > { %v1410_v20 = vld [vmem:[%s1799_s1 + $0x88] sm:$0xff]  ;;  %v1409_v23 = vld [vmem:[%s1799_s1 + $0x80] sm:$0xff]  ;;  %v1424_v32 = vld [vmem:[%s1799_s1 + $0xf8] sm:$0xff] }
  0x14   : > { %761 = vmatpush.bf16.msra.mxu0 %v1398_v6  ;;  %1467 = vmatpush.bf16.msra.mxu3 %v1398_v6  ;;  %v1053_v24 = vld [vmem:[%s1591_s30] sm:$0xf]  ;;  %v1382_v27 = vld [vmem:[%s1591_s30 + $0x88] sm:$0xf0]  ;;  %v1365_v28 = vld [vmem:[%s1591_s30 + $0x4] sm:$0xf] }
  0x15   : > { %790 = vmatpush.bf16.msra.mxu1 %v1406_v7  ;;  %v1055_v29 = vld [vmem:[%s1591_s30 + $0x1c] sm:$0xf0]  ;;  %v1061_v30 = vld [vmem:[%s1591_s30 + $0x8] sm:$0xf]  ;;  %v1369_v31 = vld [vmem:[%s1591_s30 + $0x20] sm:$0xf0]  ;;  %v1054_v34 = vor.u32 %v1368_v25, %v1053_v24  ;;  %v1110_v35 = vor.u32 %v1382_v27, %v1109_v26 }
  0x16   : > { %819 = vmatpush.bf16.msra.mxu2 %v1414_v8  ;;  %v1622_v33 = vld [vmem:[%s1799_s1 + $0x180] sm:$0xff]  ;;  %v1058_v36 = vor.u32 %v1365_v28, %v1055_v29  ;;  %v1062_v37 = vor.u32 %v1369_v31, %v1061_v30  ;;  %v1432_v38 = vld [vmem:[%s1799_s1 + $0x138] sm:$0xff]  ;;  %v1423_v40 = vld [vmem:[%s1799_s1 + $0xf0] sm:$0xff] }
  0x17   : > { %v1630_v39 = vld [vmem:[%s1799_s1 + $0x178] sm:$0xff]  ;;  %v1431_v41 = vld [vmem:[%s1799_s1 + $0x130] sm:$0xff]  ;;  %v1422_v43 = vld [vmem:[%s1799_s1 + $0xe8] sm:$0xff] }
  0x18   : > { %762 = vmatpush.bf16.msra.mxu0 %v1397_v9  ;;  %1468 = vmatpush.bf16.msra.mxu3 %v1397_v9  ;;  %v1643_v42 = vld [vmem:[%s1799_s1 + $0x170] sm:$0xff]  ;;  %v1430_v44 = vld [vmem:[%s1799_s1 + $0x128] sm:$0xff]  ;;  %v1421_v46 = vld [vmem:[%s1799_s1 + $0xe0] sm:$0xff] }
  0x19   : > { %791 = vmatpush.bf16.msra.mxu1 %v1405_v10  ;;  %v1655_v45 = vld [vmem:[%s1799_s1 + $0x168] sm:$0xff]  ;;  %v1429_v47 = vld [vmem:[%s1799_s1 + $0x120] sm:$0xff]  ;;  %v1081_v48 = vld [vmem:[%s1591_s30 + $0x38] sm:$0xf] }
  0x1a   : > { %820 = vmatpush.bf16.msra.mxu2 %v1413_v11  ;;  %v1375_v49 = vld [vmem:[%s1591_s30 + $0x50] sm:$0xf0]  ;;  %v1137_v50 = vld [vmem:[%s1591_s30 + $0xa8] sm:$0xf]  ;;  %v1389_v51 = vld [vmem:[%s1591_s30 + $0xc0] sm:$0xf0] }
  0x1b   : > { %v1372_v52 = vld [vmem:[%s1591_s30 + $0x3c] sm:$0xf]  ;;  %v1083_v53 = vld [vmem:[%s1591_s30 + $0x54] sm:$0xf0]  ;;  %v1089_v54 = vld [vmem:[%s1591_s30 + $0x40] sm:$0xf]  ;;  %v1082_v58 = vor.u32 %v1375_v49, %v1081_v48  ;;  %v1138_v59 = vor.u32 %v1389_v51, %v1137_v50 }
  0x1c   : > { %763 = vmatpush.bf16.msra.mxu0 %v1396_v12  ;;  %1469 = vmatpush.bf16.msra.mxu3 %v1396_v12  ;;  %v1376_v55 = vld [vmem:[%s1591_s30 + $0x58] sm:$0xf0]  ;;  %v1675_v56 = vld [vmem:[%s1799_s1 + $0x160] sm:$0xff]  ;;  %v1086_v60 = vor.u32 %v1372_v52, %v1083_v53  ;;  %v1419_v0 = vld [vmem:[%s1799_s1 + $0xd0] sm:$0xff] }
  0x1d   : > { %792 = vmatpush.bf16.msra.mxu1 %v1404_v13  ;;  %v1420_v57 = vld [vmem:[%s1799_s1 + $0xd8] sm:$0xff]  ;;  %v1090_v61 = vor.u32 %v1376_v55, %v1089_v54  ;;  %v1427_v1 = vld [vmem:[%s1799_s1 + $0x110] sm:$0xff]  ;;  %v1418_v3 = vld [vmem:[%s1799_s1 + $0xc8] sm:$0xff] }
  0x1e   : > { %821 = vmatpush.bf16.msra.mxu2 %v1412_v14  ;;  %v1428_v62 = vld [vmem:[%s1799_s1 + $0x118] sm:$0xff]  ;;  %v1435_v2 = vld [vmem:[%s1799_s1 + $0x150] sm:$0xff]  ;;  %v1426_v4 = vld [vmem:[%s1799_s1 + $0x108] sm:$0xff] }
  0x1f   : > { %v1436_v63 = vld [vmem:[%s1799_s1 + $0x158] sm:$0xff]  ;;  %v1434_v5 = vld [vmem:[%s1799_s1 + $0x148] sm:$0xff]  ;;  %v1417_v6 = vld [vmem:[%s1799_s1 + $0xc0] sm:$0xff] }
  0x20   : > { %764 = vmatpush.bf16.msra.mxu0 %v1395_v15  ;;  %1470 = vmatpush.bf16.msra.mxu3 %v1395_v15  ;;  %v1425_v7 = vld [vmem:[%s1799_s1 + $0x100] sm:$0xff]  ;;  %v1379_v8 = vld [vmem:[%s1591_s30 + $0x74] sm:$0xf]  ;;  %v1111_v9 = vld [vmem:[%s1591_s30 + $0x8c] sm:$0xf0] }
  0x21   : > { %793 = vmatpush.bf16.msra.mxu1 %v1403_v16  ;;  %v1366_v10 = vld [vmem:[%s1591_s30 + $0xc] sm:$0xf]  ;;  %v1063_v11 = vld [vmem:[%s1591_s30 + $0x24] sm:$0xf0]  ;;  %v1117_v12 = vld [vmem:[%s1591_s30 + $0x78] sm:$0xf] }
  0x22   : > { %822 = vmatpush.bf16.msra.mxu2 %v1411_v17  ;;  %v1383_v13 = vld [vmem:[%s1591_s30 + $0x90] sm:$0xf0]  ;;  %v1433_v14 = vld [vmem:[%s1799_s1 + $0x140] sm:$0xff]  ;;  %v1069_v15 = vld [vmem:[%s1591_s30 + $0x10] sm:$0xf]  ;;  %v1066_v17 = vor.u32 %v1366_v10, %v1063_v11 }
  0x23   : > { %v1370_v16 = vld [vmem:[%s1591_s30 + $0x28] sm:$0xf0]  ;;  %v1139_v24 = vld [vmem:[%s1591_s30 + $0xc4] sm:$0xf0]  ;;  %v1145_v25 = vld [vmem:[%s1591_s30 + $0xb0] sm:$0xf] }
  0x24   : > { %765 = vmatpush.bf16.msra.mxu0 %v1394_v18  ;;  %1471 = vmatpush.bf16.msra.mxu3 %v1394_v18  ;;  %v1114_v18 = vor.u32 %v1379_v8, %v1111_v9  ;;  %v1390_v26 = vld [vmem:[%s1591_s30 + $0xc8] sm:$0xf0]  ;;  %v1097_v27 = vld [vmem:[%s1591_s30 + $0x48] sm:$0xf]  ;;  %v1377_v28 = vld [vmem:[%s1591_s30 + $0x60] sm:$0xf0] }
  0x25   : > { %794 = vmatpush.bf16.msra.mxu1 %v1402_v19  ;;  %v1118_v19 = vor.u32 %v1383_v13, %v1117_v12  ;;  %v1146_v31 = vor.u32 %v1390_v26, %v1145_v25  ;;  %v1127_v48 = vld [vmem:[%s1591_s30 + $0x9c] sm:$0xf0]  ;;  %v1105_v49 = vld [vmem:[%s1591_s30 + $0x50] sm:$0xf]  ;;  %v1378_v50 = vld [vmem:[%s1591_s30 + $0x68] sm:$0xf0] }
  0x26   : > { %823 = vmatpush.bf16.msra.mxu2 %v1410_v20  ;;  %v1070_v20 = vor.u32 %v1370_v16, %v1069_v15  ;;  %v1153_v51 = vld [vmem:[%s1591_s30 + $0xb8] sm:$0xf]  ;;  %v1391_v52 = vld [vmem:[%s1591_s30 + $0xd0] sm:$0xf0]  ;;  %v1106_v55 = vor.u32 %v1378_v50, %v1105_v49 }
  0x28   : > { %766 = vmatpush.bf16.msra.mxu0 %v1393_v21  ;;  %1472 = vmatpush.bf16.msra.mxu3 %v1393_v21  ;;  %v1386_v21 = vld [vmem:[%s1591_s30 + $0xac] sm:$0xf] }
  0x29   : > { %795 = vmatpush.bf16.msra.mxu1 %v1401_v22  ;;  %v1373_v22 = vld [vmem:[%s1591_s30 + $0x44] sm:$0xf]  ;;  %v1142_v30 = vor.u32 %v1386_v21, %v1139_v24 }
  0x2a   : > { %824 = vmatpush.bf16.msra.mxu2 %v1409_v23  ;;  %v1091_v23 = vld [vmem:[%s1591_s30 + $0x5c] sm:$0xf0] }
  0x2b   : > { %767 = vmatmul.bf16.vlgmr.msra.gmra.mxu0 %v1054_v34  ;;  %777 = vmatmul.bf16.vlgmr.msra.gmra.mxu3 %v1110_v35  ;;  %v1094_v29 = vor.u32 %v1373_v22, %v1091_v23  ;;  %v1119_v34 = vld [vmem:[%s1591_s30 + $0x94] sm:$0xf0]  ;;  %v1374_v35 = vld [vmem:[%s1591_s30 + $0x4c] sm:$0xf] }
  0x2c   : > { %846 = vmatpush.bf16.msrb.mxu3 %v1424_v32  ;;  %796 = vmatmul.bf16.vlgmr.msra.gmra.mxu1 %v1058_v36  ;;  %v1098_v32 = vor.u32 %v1377_v28, %v1097_v27  ;;  %v1099_v36 = vld [vmem:[%s1591_s30 + $0x64] sm:$0xf0] }
  0x2d   : > { %825 = vmatmul.bf16.vlgmr.msra.gmra.mxu2 %v1062_v37  ;;  %875 = vmatpush.bf16.msrb.mxu0 %v1432_v38  ;;  %v1077_v37 = vld [vmem:[%s1591_s30 + $0x18] sm:$0xf]  ;;  %v1371_v38 = vld [vmem:[%s1591_s30 + $0x30] sm:$0xf0] }
  0x2e   : > { %940 = vmatpush.bf16.msrb.mxu2 %v1622_v33  ;;  %1473 = vmatpush.bf16.msrb.mxu1 %v1630_v39 }
  0x30   : > { %847 = vmatpush.bf16.msrb.mxu3 %v1423_v40  ;;  %v1384_v40 = vld [vmem:[%s1591_s30 + $0x98] sm:$0xf0] }
  0x31   : > { %876 = vmatpush.bf16.msrb.mxu0 %v1431_v41 }
  0x32   : > { %1474 = vmatpush.bf16.msrb.mxu1 %v1643_v42 }
  0x34   : > { %848 = vmatpush.bf16.msrb.mxu3 %v1422_v43  ;;  %v1078_v43 = vor.u32 %v1371_v38, %v1077_v37 }
  0x35   : > { %877 = vmatpush.bf16.msrb.mxu0 %v1430_v44 }
  0x36   : > { %1475 = vmatpush.bf16.msrb.mxu1 %v1655_v45 }
  0x38   : > { %849 = vmatpush.bf16.msrb.mxu3 %v1421_v46  ;;  %v1147_v46 = vld [vmem:[%s1591_s30 + $0xcc] sm:$0xf0] }
  0x39   : > { %878 = vmatpush.bf16.msrb.mxu0 %v1429_v47  ;;  %v1381_v47 = vld [vmem:[%s1591_s30 + $0x84] sm:$0xf] }
  0x3a   : > { %1476 = vmatpush.bf16.msrb.mxu1 %v1675_v56  ;;  %v1130_v54 = vor.u32 %v1381_v47, %v1127_v48 }
  0x3b   : > { %772 = vmatmul.bf16.gmra.mxu0 %v1082_v58  ;;  %782 = vmatmul.bf16.gmra.mxu3 %v1138_v59  ;;  %v1161_v58 = vld [vmem:[%s1591_s30 + $0xc0] sm:$0xf]  ;;  %v1392_v59 = vld [vmem:[%s1591_s30 + $0xd8] sm:$0xf0] }
  0x3c   : > { %850 = vmatpush.bf16.msrb.mxu3 %v1420_v57  ;;  %801 = vmatmul.bf16.gmra.mxu1 %v1086_v60  ;;  %v1388_v57 = vld [vmem:[%s1591_s30 + $0xbc] sm:$0xf]  ;;  %v1155_v60 = vld [vmem:[%s1591_s30 + $0xd4] sm:$0xf0] }
  0x3d   : > { %830 = vmatmul.bf16.gmra.mxu2 %v1090_v61  ;;  %879 = vmatpush.bf16.msrb.mxu0 %v1428_v62  ;;  %v1133_v61 = vld [vmem:[%s1591_s30 + $0x88] sm:$0xf]  ;;  %v1385_v62 = vld [vmem:[%s1591_s30 + $0xa0] sm:$0xf0] }
  0x3e   : > { %1477 = vmatpush.bf16.msrb.mxu1 %v1436_v63 }
  0x40   : > { %851 = vmatpush.bf16.msrb.mxu3 %v1419_v0  ;;  %v1071_v0 = vld [vmem:[%s1591_s30 + $0x2c] sm:$0xf0] }
  0x41   : > { %880 = vmatpush.bf16.msrb.mxu0 %v1427_v1  ;;  %v1162_v1 = vor.u32 %v1392_v59, %v1161_v58 }
  0x42   : > { %1478 = vmatpush.bf16.msrb.mxu1 %v1435_v2 }
  0x44   : > { %852 = vmatpush.bf16.msrb.mxu3 %v1418_v3  ;;  %v1134_v3 = vor.u32 %v1385_v62, %v1133_v61 }
  0x45   : > { %881 = vmatpush.bf16.msrb.mxu0 %v1426_v4 }
  0x46   : > { %1479 = vmatpush.bf16.msrb.mxu1 %v1434_v5 }
  0x48   : > { %853 = vmatpush.bf16.msrb.mxu3 %v1417_v6 }
  0x49   : > { %882 = vmatpush.bf16.msrb.mxu0 %v1425_v7 }
  0x4a   : > { %1480 = vmatpush.bf16.msrb.mxu1 %v1433_v14 }
  0x4b   : > { %854 = vmatmul.bf16.vlgmr.msrb.gmra.mxu3 %v1066_v17 }
  0x4c   : > { %1481 = vmatpush.bf16.msra.mxu3 %v1622_v33  ;;  %806 = vmatmul.bf16.gmra.mxu1 %v1114_v18  ;;  %v1380_v33 = vld [vmem:[%s1591_s30 + $0x7c] sm:$0xf] }
  0x4d   : > { %904 = vmatpush.bf16.msra.mxu0 %v1630_v39  ;;  %835 = vmatmul.bf16.gmra.mxu2 %v1118_v19  ;;  %v1125_v39 = vld [vmem:[%s1591_s30 + $0x80] sm:$0xf]  ;;  %v1122_v41 = vor.u32 %v1380_v33, %v1119_v34 }
  0x4e   : > { %883 = vmatmul.bf16.vlgmr.msrb.gmra.mxu0 %v1070_v20  ;;  %v1126_v44 = vor.u32 %v1384_v40, %v1125_v39 }
  0x51   : > { %905 = vmatpush.bf16.msra.mxu0 %v1643_v42  ;;  %v1102_v42 = vor.u32 %v1374_v35, %v1099_v36 }
  0x55   : > { %906 = vmatpush.bf16.msra.mxu0 %v1655_v45  ;;  %v1387_v45 = vld [vmem:[%s1591_s30 + $0xb4] sm:$0xf] }
  0x56   : > { %v1150_v53 = vor.u32 %v1387_v45, %v1147_v46 }
  0x59   : > { %907 = vmatpush.bf16.msra.mxu0 %v1675_v56  ;;  %v1154_v56 = vor.u32 %v1391_v52, %v1153_v51 }
  0x5b   : > { %859 = vmatmul.bf16.gmra.mxu3 %v1094_v29 }
  0x5c   : > { %811 = vmatmul.bf16.gmra.mxu1 %v1142_v30 }
  0x5d   : > { %908 = vmatpush.bf16.msra.mxu0 %v1436_v63  ;;  %840 = vmatmul.bf16.gmra.mxu2 %v1146_v31  ;;  %v1367_v63 = vld [vmem:[%s1591_s30 + $0x14] sm:$0xf]  ;;  %s1050_s30 = sshll.u32 %s1803_s5, 2 }
  0x5e   : > { %888 = vmatmul.bf16.gmra.mxu0 %v1098_v32  ;;  %v1074_v4 = vor.u32 %v1367_v63, %v1071_v0  ;;  %s1787_s22 = scalar_lea.vmem %s1801_s3, %s1050_s30 }
  0x61   : > { %909 = vmatpush.bf16.msra.mxu0 %v1435_v2  ;;  %v1158_v2 = vor.u32 %v1388_v57, %v1155_v60 }
  0x65   : > { %910 = vmatpush.bf16.msra.mxu0 %v1434_v5  ;;  %v1766_v5 = vld [vmem:[%s1800_s2] ss:$0 sm:$0xff] }
  0x69   : > { %911 = vmatpush.bf16.msra.mxu0 %v1433_v14 }
  0x6b   : > { %864 = vmatmul.bf16.gmra.mxu3 %v1122_v41 }
  0x6c   : > { %917 = vmatmul.bf16.vlgmr.msrb.gmra.mxu1 %v1102_v42 }
  0x6d   : > { %1359 = vmatmul.msk.bf16.vlgmr.msrb.gmra.mxu2 %vm746_vm0, %v1078_v43 }
  0x6e   : > { %893 = vmatmul.bf16.gmra.mxu0 %v1126_v44 }
  0x7b   : > { %869 = vmatmul.bf16.gmra.mxu3 %v1150_v53 }
  0x7c   : > { %922 = vmatmul.bf16.gmra.mxu1 %v1130_v54 }
  0x7d   : > { %1360 = vmatmul.msk.bf16.gmra.mxu2 %vm746_vm0, %v1106_v55 }
  0x7e   : > { %898 = vmatmul.bf16.gmra.mxu0 %v1154_v56 }
  0x8b   : > { %1362 = vmatmul.msk.bf16.vlgmr.msra.gmra.mxu3 %vm746_vm0, %v1162_v1 }
  0x8c   : > { %927 = vmatmul.bf16.gmra.mxu1 %v1158_v2 }
  0x8d   : > { %1361 = vmatmul.msk.bf16.gmra.mxu2 %vm746_vm0, %v1134_v3 }
  0x8e   : > { %912 = vmatmul.bf16.vlgmr.msra.gmra.mxu0 %v1074_v4 }
  0xa8   : > { %v768_v6 = vpop.f32.mrf.mxu0 }
  0xa9   : > { %v769_v7 = vadd.f32 %v1766_v5, %v768_v6  ;;  %v797_v8 = vpop.f32.mrf.mxu1 }
  0xab   : > { %v798_v9 = vadd.f32 %v797_v8, %v769_v7 }
  0xae   : > { %v778_v10 = vpop.f32.mrf.mxu3 }
  0xaf   : > { %v779_v31 = vadd.f32 %v1766_v5, %v778_v10 }
  0xb0   : > { %v826_v11 = vpop.f32.mrf.mxu2  ;;  %v770_v13 = vpop.f32.mrf.mxu0 }
  0xb1   : > { %v827_v12 = vadd.f32 %v826_v11, %v798_v9  ;;  %v771_v14 = vadd.f32 %v1766_v5, %v770_v13  ;;  %v799_v15 = vpop.f32.mrf.mxu1 }
  0xb3   : > { %v800_v16 = vadd.f32 %v799_v15, %v771_v14 }
  0xb6   : > { %v1770_v17 = vpop.f32.mrf.mxu3 }
  0xb8   : > { %v828_v18 = vpop.f32.mrf.mxu2  ;;  %v773_v20 = vpop.f32.mrf.mxu0 }
  0xb9   : > { %v1772_v19 = vadd.f32 %v828_v18, %v800_v16  ;;  %v774_v21 = vadd.f32 %v1766_v5, %v773_v20  ;;  %v802_v22 = vpop.f32.mrf.mxu1 }
  0xbb   : > { %v803_v23 = vadd.f32 %v802_v22, %v774_v21  ;;  %v781_v22 = vadd.f32 %v1766_v5, %v1770_v17 }
  0xbe   : > { %v783_v24 = vpop.f32.mrf.mxu3 }
  0xbf   : > { %v784_v14 = vadd.f32 %v1766_v5, %v783_v24 }
  0xc0   : > { %v831_v25 = vpop.f32.mrf.mxu2  ;;  %v775_v27 = vpop.f32.mrf.mxu0 }
  0xc1   : > { %v832_v26 = vadd.f32 %v831_v25, %v803_v23  ;;  %v804_v28 = vpop.f32.mrf.mxu1  ;;  %v776_v60 = vadd.f32 %v1766_v5, %v775_v27 }
  0xc3   : > { %v805_v63 = vadd.f32 %v804_v28, %v776_v60 }
  0xc6   : > { %v785_v29 = vpop.f32.mrf.mxu3 }
  0xc7   : > { %v786_v18 = vadd.f32 %v1766_v5, %v785_v29 }
  0xc8   : > { %v833_v30 = vpop.f32.mrf.mxu2 }
  0xc9   : > { %v807_v32 = vpop.f32.mrf.mxu1  ;;  %v834_v0 = vadd.f32 %v833_v30, %v805_v63 }
  0xca   : > { %v808_v33 = vadd.f32 %v807_v32, %v779_v31 }
  0xcb   : > { %v884_v34 = vpop.f32.mrf.mxu0 }
  0xce   : > { %v855_v35 = vpop.f32.mrf.mxu3 }
  0xcf   : > { %v856_v37 = vadd.f32 %v855_v35, %v827_v12 }
  0xd0   : > { %v836_v36 = vpop.f32.mrf.mxu2 }
  0xd1   : > { %v837_v38 = vadd.f32 %v836_v36, %v808_v33  ;;  %v809_v39 = vpop.f32.mrf.mxu1  ;;  %v885_v40 = vadd.f32 %v884_v34, %v856_v37 }
  0xd2   : > { %v810_v24 = vadd.f32 %v809_v39, %v781_v22 }
  0xd3   : > { %v1776_v41 = vpop.f32.mrf.mxu0 }
  0xd6   : > { %v857_v42 = vpop.f32.mrf.mxu3 }
  0xd7   : > { %v858_v29 = vadd.f32 %v857_v42, %v1772_v19 }
  0xd8   : > { %v838_v43 = vpop.f32.mrf.mxu2 }
  0xd9   : > { %v812_v44 = vpop.f32.mrf.mxu1  ;;  %v839_v33 = vadd.f32 %v838_v43, %v810_v24 }
  0xda   : > { %v813_v20 = vadd.f32 %v812_v44, %v784_v14 }
  0xdb   : > { %v889_v45 = vpop.f32.mrf.mxu0 }
  0xde   : > { %v860_v46 = vpop.f32.mrf.mxu3 }
  0xdf   : > { %v861_v1 = vadd.f32 %v860_v46, %v832_v26 }
  0xe0   : > { %v841_v47 = vpop.f32.mrf.mxu2 }
  0xe1   : > { %v814_v48 = vpop.f32.mrf.mxu1  ;;  %v890_v7 = vadd.f32 %v889_v45, %v861_v1  ;;  %v842_v27 = vadd.f32 %v841_v47, %v813_v20  ;;  %v887_v45 = vadd.f32 %v1776_v41, %v858_v29 }
  0xe2   : > { %v815_v28 = vadd.f32 %v814_v48, %v786_v18 }
  0xe3   : > { %v891_v49 = vpop.f32.mrf.mxu0 }
  0xe6   : > { %v862_v50 = vpop.f32.mrf.mxu3 }
  0xe7   : > { %v863_v4 = vadd.f32 %v862_v50, %v834_v0 }
  0xe8   : > { %v843_v51 = vpop.f32.mrf.mxu2 }
  0xe9   : > { %v918_v52 = vpop.f32.mrf.mxu1  ;;  %v892_v10 = vadd.f32 %v891_v49, %v863_v4  ;;  %v844_v31 = vadd.f32 %v843_v51, %v815_v28 }
  0xea   : > { %v919_v9 = vadd.f32 %v918_v52, %v890_v7 }
  0xeb   : > { %v894_v53 = vpop.f32.mrf.mxu0 }
  0xee   : > { %v865_v54 = vpop.f32.mrf.mxu3 }
  0xef   : > { %v866_v34 = vadd.f32 %v865_v54, %v837_v38 }
  0xf0   : > { %v942_v55 = vpop.f32.mrf.mxu2 }
  0xf1   : > { %v920_v56 = vpop.f32.mrf.mxu1  ;;  %v895_v46 = vadd.f32 %v894_v53, %v866_v34 }
  0xf2   : > { %v921_v11 = vadd.f32 %v920_v56, %v892_v10 }
  0xf3   : > { %v896_v57 = vpop.f32.mrf.mxu0 }
  0xf6   : > { %v867_v58 = vpop.f32.mrf.mxu3 }
  0xf7   : > { %v868_v37 = vadd.f32 %v867_v58, %v839_v33 }
  0xf8   : > { %v944_v59 = vpop.f32.mrf.mxu2 }
  0xf9   : > { %v923_v61 = vpop.f32.mrf.mxu1  ;;  %v897_v51 = vadd.f32 %v896_v57, %v868_v37 }
  0xfa   : > { %v924_v42 = vadd.f32 %v923_v61, %v895_v46 }
  0xfb   : > { %v899_v62 = vpop.f32.mrf.mxu0 }
  0xfe   : > { %v870_v2 = vpop.f32.mrf.mxu3 }
  0xff   : > { %v871_v32 = vadd.f32 %v870_v2, %v842_v27 }
 0x100   : > { %v947_v3 = vpop.f32.mrf.mxu2 }
 0x101   : > { %v925_v6 = vpop.f32.mrf.mxu1  ;;  %v948_v12 = vadd.f32 %v947_v3, %v919_v9  ;;  %v900_v44 = vadd.f32 %v899_v62, %v871_v32 }
 0x102   : > { %v926_v54 = vadd.f32 %v925_v6, %v897_v51 }
 0x103   : > { %v901_v8 = vpop.f32.mrf.mxu0  ;;  %v964_v23 = vmax.f32 %v948_v12, 0.0 }
 0x106   : > { %v872_v13 = vpop.f32.mrf.mxu3 }
 0x107   : > { %v873_v17 = vadd.f32 %v872_v13, %v844_v31 }
 0x108   : > { %v949_v15 = vpop.f32.mrf.mxu2 }
 0x109   : > { %v950_v16 = vadd.f32 %v949_v15, %v921_v11  ;;  %v928_v21 = vpop.f32.mrf.mxu1  ;;  %v902_v19 = vadd.f32 %v901_v8, %v873_v17 }
 0x10a   : > { %v929_v49 = vadd.f32 %v928_v21, %v900_v44 }
 0x10b   : > { %v965_v25 = vmax.f32 %v950_v16, 0.0  ;;  %v913_v26 = vpop.f32.mrf.mxu0 }
 0x10c   : > { %v914_v35 = vadd.f32 %v913_v26, %v885_v40 }
 0x10d   : > { %v1450_v30 = vpack.c.bf16 %v965_v25, %v964_v23 }
 0x10e   : > { %v957_v5 = vpop.f32.mrf.mxu3  ;;  %v943_v39 = vadd.f32 %v942_v55, %v914_v35 }
 0x10f   : > { %1462 = vst [vmem:[%s1787_s22 + $0x8] sm:$0xff] %v1450_v30   ;;  %v958_v43 = vadd.f32 %v957_v5, %v929_v49 }
 0x110   : > { %v952_v36 = vpop.f32.mrf.mxu2  ;;  %v962_v58 = vmax.f32 %v943_v39, 0.0 }
 0x111   : > { %v930_v48 = vpop.f32.mrf.mxu1  ;;  %v953_v40 = vadd.f32 %v952_v36, %v924_v42  ;;  %v968_v55 = vmax.f32 %v958_v43, 0.0 }
 0x112   : > { %v931_v52 = vadd.f32 %v930_v48, %v902_v19 }
 0x113   : > { %v915_v47 = vpop.f32.mrf.mxu0  ;;  %v966_v1 = vmax.f32 %v953_v40, 0.0 }
 0x114   : > { %v916_v50 = vadd.f32 %v915_v47, %v887_v45 }
 0x116   : > { %v945_v38 = vadd.f32 %v944_v59, %v916_v50  ;;  %v959_v56 = vpop.f32.mrf.mxu3 }
 0x117   : > { %v960_v60 = vadd.f32 %v959_v56, %v931_v52 }
 0x118   : > { %v963_v41 = vmax.f32 %v945_v38, 0.0  ;;  %v954_v53 = vpop.f32.mrf.mxu2 }
 0x119   : > { %v955_v62 = vadd.f32 %v954_v53, %v926_v54  ;;  %v969_v0 = vmax.f32 %v960_v60, 0.0 }
 0x11a   : > { %v1445_v63 = vpack.c.bf16 %v963_v41, %v962_v58 }
 0x11b   : > { %v967_v61 = vmax.f32 %v955_v62, 0.0  ;;  %v1460_v57 = vpack.c.bf16 %v969_v0, %v968_v55 }
 0x11c   : > { %1446 = vst [vmem:[%s1787_s22] sm:$0xff] %v1445_v63  }
 0x11d   : > { %v1455_v2 = vpack.c.bf16 %v967_v61, %v966_v1  ;;  %1464 = vst [vmem:[%s1787_s22 + $0x18] sm:$0xff] %v1460_v57  }
 0x11f   : > { %1463 = vst [vmem:[%s1787_s22 + $0x10] sm:$0xff] %v1455_v2  }
 0x120 PF: > { %s13_s12 = sadd.s32 1, %s1498_s12  }
 0x121   : > { %p10_p4 = scmp.ge.s32.totalorder %s13_s12, 4  }
 0x123   :  { %12 = sbr.rel (!%p10_p4) target bundleno = 1 (0x1), region = 62 }

// kernel: mcnn_forward.19
= control target key start
LH: loop header
LB: loop body
LE: loop exit
PB: predicated region body
PF: predicated region fallthrough
CT: control target
= control target key end

     0   :  { %s1903_s12 = smov 0   ;;  %s2249_s0 = inlined_call_operand.vmem [shape: bf16[32,1568], index: 0, kind: input, shape index: {}]   ;;  %s2250_s1 = inlined_call_operand.vmem [shape: bf16[1568,128], index: 1, kind: input, shape index: {}]   ;;  %s2251_s2 = inlined_call_operand.vmem [shape: f32[1,128], index: 2, kind: input, shape index: {}]   ;;  %s2252_s3 = inlined_call_operand.vmem [shape: bf16[32,128], index: 3, kind: output, shape index: {}]  }
   0x1 LB: > { %s1293_s13 = sadd.s32 4294967295, %s1881_s12   ;;  %p1297_p0 = scmp.ge.s32.totalorder %s1881_s12, 1  ;;  %s1881_s12 = sphi %s1903_s12, %s13_s12  }
   0x2   : > { %p139_p1 = scmp.lt.s32.totalorder %s1881_s12, 3 }
   0x4   : > { %p140_p2 = pnand %p1297_p0, %p139_p1 }
   0x5   : > { %s1298_s11 = sshll.u32 (!%p140_p2), %s1293_s13, 1 }
   0x6   : > { %143 = sbr.rel (%p140_p2) target bundleno = 264 (0x108), region = 32  ;;  %p165_p3 = scmp.lt.s32.totalorder (!%p140_p2), %s1298_s11, 3 }
   0xb   : > { %v1769_v0 = vld [vmem:[%s2250_s1 + $0x38] sm:$0xff]  ;;  %v1768_v4 = vld [vmem:[%s2250_s1 + $0x30] sm:$0xff]  ;;  %v1767_v8 = vld [vmem:[%s2250_s1 + $0x28] sm:$0xff]  ;;  %s2254_s11 = smov (!%p165_p3, %s1298_s11), 3  ;;  %vm1045_vm0 = vcmask 261120  }
   0xc   : > { %v1785_v1 = vld [vmem:[%s2250_s1 + $0xb8] sm:$0xff]  ;;  %1049 = vmatpush.bf16.msra.mxu0 %v1769_v0  ;;  %v1784_v5 = vld [vmem:[%s2250_s1 + $0xb0] sm:$0xff]  ;;  %v1783_v9 = vld [vmem:[%s2250_s1 + $0xa8] sm:$0xff]  ;;  %s1865_s10 = smul.u32 52, %s2254_s11 }
   0xd   : > { %v1793_v2 = vld [vmem:[%s2250_s1 + $0xf8] sm:$0xff]  ;;  %1077 = vmatpush.bf16.msra.mxu2 %v1785_v1  ;;  %v1792_v6 = vld [vmem:[%s2250_s1 + $0xf0] sm:$0xff]  ;;  %v1791_v10 = vld [vmem:[%s2250_s1 + $0xe8] sm:$0xff] }
   0xe   : > { %v1777_v3 = vld [vmem:[%s2250_s1 + $0x78] sm:$0xff]  ;;  %1091 = vmatpush.bf16.msra.mxu3 %v1793_v2  ;;  %v1776_v7 = vld [vmem:[%s2250_s1 + $0x70] sm:$0xff]  ;;  %v1775_v11 = vld [vmem:[%s2250_s1 + $0x68] sm:$0xff]  ;;  %s2001_s23 = scalar_lea.vmem %s2249_s0, %s1865_s10 }
   0xf   : > { %1063 = vmatpush.bf16.msra.mxu1 %v1777_v3  ;;  %v1766_v12 = vld [vmem:[%s2250_s1 + $0x20] sm:$0xff]  ;;  %v1765_v16 = vld [vmem:[%s2250_s1 + $0x18] sm:$0xff]  ;;  %v1764_v20 = vld [vmem:[%s2250_s1 + $0x10] sm:$0xff] }
  0x10   : > { %1050 = vmatpush.bf16.msra.mxu0 %v1768_v4  ;;  %v1782_v13 = vld [vmem:[%s2250_s1 + $0xa0] sm:$0xff]  ;;  %v1781_v17 = vld [vmem:[%s2250_s1 + $0x98] sm:$0xff]  ;;  %v1780_v21 = vld [vmem:[%s2250_s1 + $0x90] sm:$0xff] }
  0x11   : > { %1078 = vmatpush.bf16.msra.mxu2 %v1784_v5  ;;  %v1790_v14 = vld [vmem:[%s2250_s1 + $0xe0] sm:$0xff]  ;;  %v1789_v18 = vld [vmem:[%s2250_s1 + $0xd8] sm:$0xff]  ;;  %v1788_v22 = vld [vmem:[%s2250_s1 + $0xd0] sm:$0xff] }
  0x12   : > { %1092 = vmatpush.bf16.msra.mxu3 %v1792_v6  ;;  %v1774_v15 = vld [vmem:[%s2250_s1 + $0x60] sm:$0xff]  ;;  %v1773_v19 = vld [vmem:[%s2250_s1 + $0x58] sm:$0xff]  ;;  %v1772_v23 = vld [vmem:[%s2250_s1 + $0x50] sm:$0xff] }
  0x13   : > { %1064 = vmatpush.bf16.msra.mxu1 %v1776_v7  ;;  %v1763_v24 = vld [vmem:[%s2250_s1 + $0x8] sm:$0xff]  ;;  %v1762_v28 = vld [vmem:[%s2250_s1] sm:$0xff]  ;;  %v1801_v31 = vld [vmem:[%s2250_s1 + $0x138] sm:$0xff] }
  0x14   : > { %1051 = vmatpush.bf16.msra.mxu0 %v1767_v8  ;;  %v1779_v25 = vld [vmem:[%s2250_s1 + $0x88] sm:$0xff]  ;;  %v1778_v29 = vld [vmem:[%s2250_s1 + $0x80] sm:$0xff]  ;;  %v1755_v33 = vld [vmem:[%s2001_s23 + $0x30] sm:$0xf0] }
  0x15   : > { %1079 = vmatpush.bf16.msra.mxu2 %v1783_v9  ;;  %v1787_v26 = vld [vmem:[%s2250_s1 + $0xc8] sm:$0xff]  ;;  %v1786_v30 = vld [vmem:[%s2250_s1 + $0xc0] sm:$0xff]  ;;  %v1817_v34 = vld [vmem:[%s2250_s1 + $0x1b8] sm:$0xff] }
  0x16   : > { %1093 = vmatpush.bf16.msra.mxu3 %v1791_v10  ;;  %v1771_v27 = vld [vmem:[%s2250_s1 + $0x48] sm:$0xff]  ;;  %v1304_v32 = vld [vmem:[%s2001_s23] sm:$0xf]  ;;  %v1756_v36 = vld [vmem:[%s2001_s23 + $0x38] sm:$0xf0] }
  0x17   : > { %1065 = vmatpush.bf16.msra.mxu1 %v1775_v11  ;;  %v1312_v35 = vld [vmem:[%s2001_s23 + $0x8] sm:$0xf]  ;;  %v1825_v37 = vld [vmem:[%s2250_s1 + $0x1f8] sm:$0xff]  ;;  %v1750_v38 = vld [vmem:[%s2001_s23 + $0xc] sm:$0xf]  ;;  %v1305_v41 = vor.u32 %v1755_v33, %v1304_v32 }
  0x18   : > { %1052 = vmatpush.bf16.msra.mxu0 %v1766_v12  ;;  %v1314_v39 = vld [vmem:[%s2001_s23 + $0x3c] sm:$0xf0]  ;;  %v1809_v42 = vld [vmem:[%s2250_s1 + $0x178] sm:$0xff]  ;;  %v1313_v43 = vor.u32 %v1756_v36, %v1312_v35  ;;  %v1749_v44 = vld [vmem:[%s2001_s23 + $0x4] sm:$0xf] }
  0x19   : > { %1080 = vmatpush.bf16.msra.mxu2 %v1782_v13  ;;  %v1770_v40 = vld [vmem:[%s2250_s1 + $0x40] sm:$0xff]  ;;  %v1306_v45 = vld [vmem:[%s2001_s23 + $0x34] sm:$0xf0]  ;;  %v1800_v46 = vld [vmem:[%s2250_s1 + $0x130] sm:$0xff]  ;;  %v1317_v47 = vor.u32 %v1750_v38, %v1314_v39 }
  0x1a   : > { %1094 = vmatpush.bf16.msra.mxu3 %v1790_v14  ;;  %v1816_v48 = vld [vmem:[%s2250_s1 + $0x1b0] sm:$0xff]  ;;  %v1309_v50 = vor.u32 %v1749_v44, %v1306_v45  ;;  %v1799_v52 = vld [vmem:[%s2250_s1 + $0x128] sm:$0xff]  ;;  %v1798_v56 = vld [vmem:[%s2250_s1 + $0x120] sm:$0xff] }
  0x1b   : > { %1066 = vmatpush.bf16.msra.mxu1 %v1774_v15  ;;  %v1824_v49 = vld [vmem:[%s2250_s1 + $0x1f0] sm:$0xff]  ;;  %v1815_v53 = vld [vmem:[%s2250_s1 + $0x1a8] sm:$0xff]  ;;  %v1814_v57 = vld [vmem:[%s2250_s1 + $0x1a0] sm:$0xff] }
  0x1c   : > { %1053 = vmatpush.bf16.msra.mxu0 %v1765_v16  ;;  %v1808_v51 = vld [vmem:[%s2250_s1 + $0x170] sm:$0xff]  ;;  %v1823_v54 = vld [vmem:[%s2250_s1 + $0x1e8] sm:$0xff]  ;;  %v1822_v58 = vld [vmem:[%s2250_s1 + $0x1e0] sm:$0xff] }
  0x1d   : > { %1081 = vmatpush.bf16.msra.mxu2 %v1781_v17  ;;  %v1807_v55 = vld [vmem:[%s2250_s1 + $0x168] sm:$0xff]  ;;  %v1806_v59 = vld [vmem:[%s2250_s1 + $0x160] sm:$0xff]  ;;  %v1797_v60 = vld [vmem:[%s2250_s1 + $0x118] sm:$0xff] }
  0x1e   : > { %1095 = vmatpush.bf16.msra.mxu3 %v1789_v18  ;;  %v1813_v61 = vld [vmem:[%s2250_s1 + $0x198] sm:$0xff]  ;;  %v1796_v0 = vld [vmem:[%s2250_s1 + $0x110] sm:$0xff]  ;;  %v1795_v4 = vld [vmem:[%s2250_s1 + $0x108] sm:$0xff] }
  0x1f   : > { %1067 = vmatpush.bf16.msra.mxu1 %v1773_v19  ;;  %v1821_v62 = vld [vmem:[%s2250_s1 + $0x1d8] sm:$0xff]  ;;  %v1812_v1 = vld [vmem:[%s2250_s1 + $0x190] sm:$0xff]  ;;  %v1811_v5 = vld [vmem:[%s2250_s1 + $0x188] sm:$0xff] }
  0x20   : > { %1054 = vmatpush.bf16.msra.mxu0 %v1764_v20  ;;  %v1805_v63 = vld [vmem:[%s2250_s1 + $0x158] sm:$0xff]  ;;  %v1820_v2 = vld [vmem:[%s2250_s1 + $0x1d0] sm:$0xff]  ;;  %v1819_v6 = vld [vmem:[%s2250_s1 + $0x1c8] sm:$0xff] }
  0x21   : > { %1082 = vmatpush.bf16.msra.mxu2 %v1780_v21  ;;  %v1804_v3 = vld [vmem:[%s2250_s1 + $0x150] sm:$0xff]  ;;  %v1803_v7 = vld [vmem:[%s2250_s1 + $0x148] sm:$0xff]  ;;  %v1794_v8 = vld [vmem:[%s2250_s1 + $0x100] sm:$0xff] }
  0x22   : > { %1096 = vmatpush.bf16.msra.mxu3 %v1788_v22  ;;  %v1810_v9 = vld [vmem:[%s2250_s1 + $0x180] sm:$0xff]  ;;  %v1833_v11 = vld [vmem:[%s2250_s1 + $0x238] sm:$0xff]  ;;  %v1320_v13 = vld [vmem:[%s2001_s23 + $0x10] sm:$0xf] }
  0x23   : > { %1068 = vmatpush.bf16.msra.mxu1 %v1772_v23  ;;  %v1818_v10 = vld [vmem:[%s2250_s1 + $0x1c0] sm:$0xff]  ;;  %v1849_v12 = vld [vmem:[%s2250_s1 + $0x2b8] sm:$0xff]  ;;  %v1758_v16 = vld [vmem:[%s2001_s23 + $0x48] sm:$0xf0] }
  0x24   : > { %1055 = vmatpush.bf16.msra.mxu0 %v1763_v24  ;;  %v1757_v14 = vld [vmem:[%s2001_s23 + $0x40] sm:$0xf0]  ;;  %v1328_v15 = vld [vmem:[%s2001_s23 + $0x18] sm:$0xf]  ;;  %v1752_v18 = vld [vmem:[%s2001_s23 + $0x1c] sm:$0xf] }
  0x25   : > { %1083 = vmatpush.bf16.msra.mxu2 %v1779_v25  ;;  %v1857_v17 = vld [vmem:[%s2250_s1 + $0x2f8] sm:$0xff]  ;;  %v1330_v19 = vld [vmem:[%s2001_s23 + $0x4c] sm:$0xf0]  ;;  %v1802_v20 = vld [vmem:[%s2250_s1 + $0x140] sm:$0xff]  ;;  %v1321_v23 = vor.u32 %v1757_v14, %v1320_v13  ;;  %v1329_v24 = vor.u32 %v1758_v16, %v1328_v15 }
  0x26   : > { %1097 = vmatpush.bf16.msra.mxu3 %v1787_v26  ;;  %v1751_v21 = vld [vmem:[%s2001_s23 + $0x14] sm:$0xf]  ;;  %v1322_v22 = vld [vmem:[%s2001_s23 + $0x44] sm:$0xf0]  ;;  %v1841_v25 = vld [vmem:[%s2250_s1 + $0x278] sm:$0xff]  ;;  %v1333_v26 = vor.u32 %v1752_v18, %v1330_v19 }
  0x27   : > { %1069 = vmatpush.bf16.msra.mxu1 %v1771_v27  ;;  %v1325_v27 = vor.u32 %v1751_v21, %v1322_v22  ;;  %v1831_v32 = vld [vmem:[%s2250_s1 + $0x228] sm:$0xff]  ;;  %v1830_v36 = vld [vmem:[%s2250_s1 + $0x220] sm:$0xff]  ;;  %v1828_v44 = vld [vmem:[%s2250_s1 + $0x210] sm:$0xff] }
  0x28   : > { %1056 = vmatpush.bf16.msra.mxu0 %v1762_v28  ;;  %v1832_v28 = vld [vmem:[%s2250_s1 + $0x230] sm:$0xff]  ;;  %v1847_v33 = vld [vmem:[%s2250_s1 + $0x2a8] sm:$0xff]  ;;  %v1854_v38 = vld [vmem:[%s2250_s1 + $0x2e0] sm:$0xff] }
  0x29   : > { %1084 = vmatpush.bf16.msra.mxu2 %v1778_v29  ;;  %v1848_v29 = vld [vmem:[%s2250_s1 + $0x2b0] sm:$0xff]  ;;  %v1839_v35 = vld [vmem:[%s2250_s1 + $0x268] sm:$0xff]  ;;  %v1838_v39 = vld [vmem:[%s2250_s1 + $0x260] sm:$0xff] }
  0x2a   : > { %1098 = vmatpush.bf16.msra.mxu3 %v1786_v30  ;;  %v1856_v30 = vld [vmem:[%s2250_s1 + $0x2f0] sm:$0xff]  ;;  %v1874_v15 = vld [vmem:[%s2251_s2] ss:$0 sm:$0xff] }
  0x2b   : > { %1070 = vmatpush.bf16.msra.mxu1 %v1770_v40  ;;  %1057 = vmatmul.bf16.vlgmr.msra.gmra.mxu0 %v1305_v41  ;;  %v1829_v40 = vld [vmem:[%s2250_s1 + $0x218] sm:$0xff]  ;;  %v1844_v45 = vld [vmem:[%s2250_s1 + $0x290] sm:$0xff] }
  0x2c   : > { %1105 = vmatpush.bf16.msrb.mxu0 %v1801_v31  ;;  %1085 = vmatmul.bf16.vlgmr.msra.gmra.mxu2 %v1313_v43  ;;  %v1840_v31 = vld [vmem:[%s2250_s1 + $0x270] sm:$0xff]  ;;  %v1845_v41 = vld [vmem:[%s2250_s1 + $0x298] sm:$0xff] }
  0x2d   : > { %1133 = vmatpush.bf16.msrb.mxu2 %v1817_v34  ;;  %1099 = vmatmul.bf16.vlgmr.msra.gmra.mxu3 %v1317_v47  ;;  %v1855_v34 = vld [vmem:[%s2250_s1 + $0x2e8] sm:$0xff]  ;;  %v1837_v43 = vld [vmem:[%s2250_s1 + $0x258] sm:$0xff]  ;;  %v1836_v47 = vld [vmem:[%s2250_s1 + $0x250] sm:$0xff] }
  0x2e   : > { %1147 = vmatpush.bf16.msrb.mxu3 %v1825_v37  ;;  %1071 = vmatmul.bf16.vlgmr.msra.gmra.mxu1 %v1309_v50  ;;  %v1846_v37 = vld [vmem:[%s2250_s1 + $0x2a0] sm:$0xff]  ;;  %v1851_v50 = vld [vmem:[%s2250_s1 + $0x2c8] sm:$0xff] }
  0x2f   : > { %1119 = vmatpush.bf16.msrb.mxu1 %v1809_v42  ;;  %v1853_v42 = vld [vmem:[%s2250_s1 + $0x2d8] sm:$0xff] }
  0x30   : > { %1106 = vmatpush.bf16.msrb.mxu0 %v1800_v46  ;;  %v1852_v46 = vld [vmem:[%s2250_s1 + $0x2d0] sm:$0xff] }
  0x31   : > { %1134 = vmatpush.bf16.msrb.mxu2 %v1816_v48  ;;  %v1827_v48 = vld [vmem:[%s2250_s1 + $0x208] sm:$0xff] }
  0x32   : > { %1148 = vmatpush.bf16.msrb.mxu3 %v1824_v49  ;;  %v1843_v49 = vld [vmem:[%s2250_s1 + $0x288] sm:$0xff] }
  0x33   : > { %1120 = vmatpush.bf16.msrb.mxu1 %v1808_v51  ;;  %v1835_v51 = vld [vmem:[%s2250_s1 + $0x248] sm:$0xff] }
  0x34   : > { %1107 = vmatpush.bf16.msrb.mxu0 %v1799_v52  ;;  %v1826_v52 = vld [vmem:[%s2250_s1 + $0x200] sm:$0xff] }
  0x35   : > { %1135 = vmatpush.bf16.msrb.mxu2 %v1815_v53  ;;  %v1842_v53 = vld [vmem:[%s2250_s1 + $0x280] sm:$0xff] }
  0x36   : > { %1149 = vmatpush.bf16.msrb.mxu3 %v1823_v54  ;;  %v1850_v54 = vld [vmem:[%s2250_s1 + $0x2c0] sm:$0xff] }
  0x37   : > { %1121 = vmatpush.bf16.msrb.mxu1 %v1807_v55  ;;  %v1336_v55 = vld [vmem:[%s2001_s23 + $0x20] sm:$0xf] }
  0x38   : > { %1108 = vmatpush.bf16.msrb.mxu0 %v1798_v56  ;;  %v1759_v56 = vld [vmem:[%s2001_s23 + $0x50] sm:$0xf0] }
  0x39   : > { %1136 = vmatpush.bf16.msrb.mxu2 %v1814_v57  ;;  %v1344_v57 = vld [vmem:[%s2001_s23 + $0x28] sm:$0xf] }
  0x3a   : > { %1150 = vmatpush.bf16.msrb.mxu3 %v1822_v58  ;;  %v1760_v58 = vld [vmem:[%s2001_s23 + $0x58] sm:$0xf0] }
  0x3b   : > { %1122 = vmatpush.bf16.msrb.mxu1 %v1806_v59  ;;  %v1754_v59 = vld [vmem:[%s2001_s23 + $0x2c] sm:$0xf] }
  0x3c   : > { %1109 = vmatpush.bf16.msrb.mxu0 %v1797_v60  ;;  %v1346_v60 = vld [vmem:[%s2001_s23 + $0x5c] sm:$0xf0] }
  0x3d   : > { %1137 = vmatpush.bf16.msrb.mxu2 %v1813_v61  ;;  %v1859_v61 = vld [vmem:[%s2250_s1 + $0x308] sm:$0xff] }
  0x3e   : > { %1151 = vmatpush.bf16.msrb.mxu3 %v1821_v62  ;;  %v1834_v62 = vld [vmem:[%s2250_s1 + $0x240] sm:$0xff] }
  0x3f   : > { %1123 = vmatpush.bf16.msrb.mxu1 %v1805_v63  ;;  %v1337_v63 = vor.u32 %v1759_v56, %v1336_v55 }
  0x40   : > { %1110 = vmatpush.bf16.msrb.mxu0 %v1796_v0  ;;  %v1753_v0 = vld [vmem:[%s2001_s23 + $0x24] sm:$0xf] }
  0x41   : > { %1138 = vmatpush.bf16.msrb.mxu2 %v1812_v1  ;;  %v1338_v1 = vld [vmem:[%s2001_s23 + $0x54] sm:$0xf0] }
  0x42   : > { %1152 = vmatpush.bf16.msrb.mxu3 %v1820_v2  ;;  %v1345_v2 = vor.u32 %v1760_v58, %v1344_v57 }
  0x43   : > { %1124 = vmatpush.bf16.msrb.mxu1 %v1804_v3  ;;  %v1349_v3 = vor.u32 %v1754_v59, %v1346_v60 }
  0x44   : > { %1111 = vmatpush.bf16.msrb.mxu0 %v1795_v4  ;;  %v1341_v4 = vor.u32 %v1753_v0, %v1338_v1 }
  0x45   : > { %1139 = vmatpush.bf16.msrb.mxu2 %v1811_v5  ;;  %v1858_v5 = vld [vmem:[%s2250_s1 + $0x300] sm:$0xff] }
  0x46   : > { %1153 = vmatpush.bf16.msrb.mxu3 %v1819_v6  ;;  %v1352_v6 = vld [vmem:[%s2001_s23 + $0x30] sm:$0xf] }
  0x47   : > { %1125 = vmatpush.bf16.msrb.mxu1 %v1803_v7  ;;  %v1761_v7 = vld [vmem:[%s2001_s23 + $0x60] sm:$0xf0]  ;;  %s1301_s23 = sshll.u32 %s2254_s11, 2 }
  0x48   : > { %1112 = vmatpush.bf16.msrb.mxu0 %v1794_v8  ;;  %v1353_v8 = vor.u32 %v1761_v7, %v1352_v6  ;;  %s175_s24 = scalar_lea.vmem %s2252_s3, %s1301_s23 }
  0x49   : > { %1140 = vmatpush.bf16.msrb.mxu2 %v1810_v9 }
  0x4a   : > { %1154 = vmatpush.bf16.msrb.mxu3 %v1818_v10 }
  0x4b   : > { %1126 = vmatpush.bf16.msrb.mxu1 %v1802_v20  ;;  %1113 = vmatmul.bf16.vlgmr.msrb.gmra.mxu0 %v1321_v23 }
  0x4c   : > { %1161 = vmatpush.bf16.msra.mxu0 %v1833_v11  ;;  %1141 = vmatmul.bf16.vlgmr.msrb.gmra.mxu2 %v1329_v24 }
  0x4d   : > { %1189 = vmatpush.bf16.msra.mxu2 %v1849_v12  ;;  %1155 = vmatmul.bf16.vlgmr.msrb.gmra.mxu3 %v1333_v26 }
  0x4e   : > { %1203 = vmatpush.bf16.msra.mxu3 %v1857_v17  ;;  %1127 = vmatmul.bf16.vlgmr.msrb.gmra.mxu1 %v1325_v27 }
  0x4f   : > { %1175 = vmatpush.bf16.msra.mxu1 %v1841_v25 }
  0x50   : > { %1162 = vmatpush.bf16.msra.mxu0 %v1832_v28 }
  0x51   : > { %1190 = vmatpush.bf16.msra.mxu2 %v1848_v29 }
  0x52   : > { %1204 = vmatpush.bf16.msra.mxu3 %v1856_v30 }
  0x53   : > { %1176 = vmatpush.bf16.msra.mxu1 %v1840_v31 }
  0x54   : > { %1163 = vmatpush.bf16.msra.mxu0 %v1831_v32 }
  0x55   : > { %1191 = vmatpush.bf16.msra.mxu2 %v1847_v33 }
  0x56   : > { %1205 = vmatpush.bf16.msra.mxu3 %v1855_v34 }
  0x57   : > { %1177 = vmatpush.bf16.msra.mxu1 %v1839_v35 }
  0x58   : > { %1164 = vmatpush.bf16.msra.mxu0 %v1830_v36 }
  0x59   : > { %1192 = vmatpush.bf16.msra.mxu2 %v1846_v37 }
  0x5a   : > { %1206 = vmatpush.bf16.msra.mxu3 %v1854_v38 }
  0x5b   : > { %1178 = vmatpush.bf16.msra.mxu1 %v1838_v39 }
  0x5c   : > { %1165 = vmatpush.bf16.msra.mxu0 %v1829_v40 }
  0x5d   : > { %1193 = vmatpush.bf16.msra.mxu2 %v1845_v41 }
  0x5e   : > { %1207 = vmatpush.bf16.msra.mxu3 %v1853_v42 }
  0x5f   : > { %1179 = vmatpush.bf16.msra.mxu1 %v1837_v43 }
  0x60   : > { %1166 = vmatpush.bf16.msra.mxu0 %v1828_v44 }
  0x61   : > { %1194 = vmatpush.bf16.msra.mxu2 %v1844_v45 }
  0x62   : > { %1208 = vmatpush.bf16.msra.mxu3 %v1852_v46 }
  0x63   : > { %1180 = vmatpush.bf16.msra.mxu1 %v1836_v47 }
  0x64   : > { %1167 = vmatpush.bf16.msra.mxu0 %v1827_v48 }
  0x65   : > { %1195 = vmatpush.bf16.msra.mxu2 %v1843_v49 }
  0x66   : > { %1209 = vmatpush.bf16.msra.mxu3 %v1851_v50 }
  0x67   : > { %1181 = vmatpush.bf16.msra.mxu1 %v1835_v51 }
  0x68   : > { %1168 = vmatpush.bf16.msra.mxu0 %v1826_v52 }
  0x69   : > { %1196 = vmatpush.bf16.msra.mxu2 %v1842_v53 }
  0x6a   : > { %1210 = vmatpush.bf16.msra.mxu3 %v1850_v54 }
  0x6b   : > { %1182 = vmatpush.bf16.msra.mxu1 %v1834_v62  ;;  %1169 = vmatmul.bf16.vlgmr.msra.gmra.mxu0 %v1337_v63 }
  0x6c   : > { %1223 = vmatpush.bf16.msrb.mxu0 %v1859_v61  ;;  %1197 = vmatmul.bf16.vlgmr.msra.gmra.mxu2 %v1345_v2 }
  0x6d   : > { %1211 = vmatmul.bf16.vlgmr.msra.gmra.mxu3 %v1349_v3 }
  0x6e   : > { %1183 = vmatmul.bf16.vlgmr.msra.gmra.mxu1 %v1341_v4 }
  0x70   : > { %1224 = vmatpush.bf16.msrb.mxu0 %v1858_v5 }
  0x7b   : > { %1746 = vmatmul.msk.bf16.vlgmr.msrb.gmra.mxu0 %vm1045_vm0, %v1353_v8 }
  0xa8   : > { %v1058_v9 = vpop.f32.mrf.mxu0 }
  0xa9   : > { %v1059_v17 = vadd.f32 %v1874_v15, %v1058_v9 }
  0xab   : > { %v1072_v10 = vpop.f32.mrf.mxu1 }
  0xac   : > { %v1073_v20 = vadd.f32 %v1072_v10, %v1059_v17 }
  0xaf   : > { %v1086_v11 = vpop.f32.mrf.mxu2 }
  0xb0   : > { %v1060_v12 = vpop.f32.mrf.mxu0  ;;  %v1100_v13 = vpop.f32.mrf.mxu3  ;;  %v1087_v23 = vadd.f32 %v1086_v11, %v1073_v20 }
  0xb1   : > { %v1061_v22 = vadd.f32 %v1874_v15, %v1060_v12 }
  0xb2   : > { %v1101_v27 = vadd.f32 %v1100_v13, %v1087_v23 }
  0xb3   : > { %v1074_v14 = vpop.f32.mrf.mxu1 }
  0xb4   : > { %v1075_v25 = vadd.f32 %v1074_v14, %v1061_v22 }
  0xb7   : > { %v1088_v16 = vpop.f32.mrf.mxu2 }
  0xb8   : > { %v1102_v19 = vpop.f32.mrf.mxu3  ;;  %v1089_v29 = vadd.f32 %v1088_v16, %v1075_v25 }
  0xba   : > { %v1103_v32 = vadd.f32 %v1102_v19, %v1089_v29 }
  0xc8   : > { %v1114_v18 = vpop.f32.mrf.mxu0 }
  0xc9   : > { %v1115_v31 = vadd.f32 %v1114_v18, %v1101_v27 }
  0xcb   : > { %v1128_v21 = vpop.f32.mrf.mxu1 }
  0xcc   : > { %v1129_v35 = vadd.f32 %v1128_v21, %v1115_v31 }
  0xcf   : > { %v1142_v24 = vpop.f32.mrf.mxu2 }
  0xd0   : > { %v1116_v26 = vpop.f32.mrf.mxu0  ;;  %v1156_v28 = vpop.f32.mrf.mxu3  ;;  %v1143_v39 = vadd.f32 %v1142_v24, %v1129_v35 }
  0xd1   : > { %v1117_v36 = vadd.f32 %v1116_v26, %v1103_v32 }
  0xd2   : > { %v1157_v44 = vadd.f32 %v1156_v28, %v1143_v39 }
  0xd3   : > { %v1130_v30 = vpop.f32.mrf.mxu1 }
  0xd4   : > { %v1131_v40 = vadd.f32 %v1130_v30, %v1117_v36 }
  0xd7   : > { %v1144_v33 = vpop.f32.mrf.mxu2 }
  0xd8   : > { %v1158_v37 = vpop.f32.mrf.mxu3  ;;  %v1145_v41 = vadd.f32 %v1144_v33, %v1131_v40 }
  0xda   : > { %v1159_v45 = vadd.f32 %v1158_v37, %v1145_v41 }
  0xe8   : > { %v1170_v34 = vpop.f32.mrf.mxu0 }
  0xe9   : > { %v1171_v46 = vadd.f32 %v1170_v34, %v1157_v44 }
  0xeb   : > { %v1184_v38 = vpop.f32.mrf.mxu1 }
  0xec   : > { %v1185_v50 = vadd.f32 %v1184_v38, %v1171_v46 }
  0xef   : > { %v1198_v42 = vpop.f32.mrf.mxu2 }
  0xf0   : > { %v1172_v43 = vpop.f32.mrf.mxu0  ;;  %v1212_v47 = vpop.f32.mrf.mxu3  ;;  %v1199_v53 = vadd.f32 %v1198_v42, %v1185_v50 }
  0xf1   : > { %v1173_v48 = vadd.f32 %v1172_v43, %v1159_v45 }
  0xf2   : > { %v1213_v56 = vadd.f32 %v1212_v47, %v1199_v53 }
  0xf3   : > { %v1186_v49 = vpop.f32.mrf.mxu1 }
  0xf4   : > { %v1187_v54 = vadd.f32 %v1186_v49, %v1173_v48 }
  0xf7   : > { %v1200_v51 = vpop.f32.mrf.mxu2 }
  0xf8   : > { %v1226_v52 = vpop.f32.mrf.mxu0  ;;  %v1201_v55 = vadd.f32 %v1200_v51, %v1187_v54  ;;  %v1214_v57 = vpop.f32.mrf.mxu3 }
  0xf9   : > { %v1227_v59 = vadd.f32 %v1226_v52, %v1213_v56 }
  0xfa   : > { %v1215_v58 = vadd.f32 %v1214_v57, %v1201_v55 }
  0xfb   : > { %v1231_v62 = vmax.f32 %v1227_v59, 0.0 }
 0x100   : > { %v1228_v60 = vpop.f32.mrf.mxu0 }
 0x101   : > { %v1229_v61 = vadd.f32 %v1228_v60, %v1215_v58 }
 0x103   : > { %v1232_v63 = vmax.f32 %v1229_v61, 0.0 }
 0x105   : > { %v1863_v0 = vpack.c.bf16 %v1232_v63, %v1231_v62 }
 0x107   : > { %1864 = vst [vmem:[%s175_s24] sm:$0xff] %v1863_v0  }
 0x108 PF: > { %s13_s12 = sadd.s32 1, %s1881_s12  }
 0x109   : > { %p10_p4 = scmp.ge.s32.totalorder %s13_s12, 4  }
 0x10b   :  { %12 = sbr.rel (!%p10_p4) target bundleno = 1 (0x1), region = 62 }

// kernel: mcnn_forward.20
= control target key start
LH: loop header
LB: loop body
LE: loop exit
PB: predicated region body
PF: predicated region fallthrough
CT: control target
= control target key end

     0   :  { %s1116_s12 = smov 0   ;;  %s1303_s0 = inlined_call_operand.vmem [shape: bf16[32,784], index: 0, kind: input, shape index: {}]   ;;  %s1304_s1 = inlined_call_operand.vmem [shape: bf16[784,128], index: 1, kind: input, shape index: {}]   ;;  %s1305_s2 = inlined_call_operand.vmem [shape: f32[1,128], index: 2, kind: input, shape index: {}]   ;;  %s1306_s3 = inlined_call_operand.vmem [shape: bf16[32,128], index: 3, kind: output, shape index: {}]  }
   0x1 LB: > { %s781_s13 = sadd.s32 4294967295, %s1094_s12   ;;  %p785_p0 = scmp.ge.s32.totalorder %s1094_s12, 1  ;;  %s1094_s12 = sphi %s1116_s12, %s13_s12  }
   0x2   : > { %p139_p1 = scmp.lt.s32.totalorder %s1094_s12, 3 }
   0x4   : > { %p140_p2 = pnand %p785_p0, %p139_p1 }
   0x5   : > { %s786_s11 = sshll.u32 (!%p140_p2), %s781_s13, 1 }
   0x6   : > { %143 = sbr.rel (%p140_p2) target bundleno = 220 (0xdc), region = 32  ;;  %p165_p3 = scmp.lt.s32.totalorder (!%p140_p2), %s786_s11, 3 }
   0xb   : > { %v1031_v0 = vld [vmem:[%s1304_s1 + $0x38] sm:$0xff]  ;;  %v1030_v4 = vld [vmem:[%s1304_s1 + $0x30] sm:$0xff]  ;;  %v1029_v8 = vld [vmem:[%s1304_s1 + $0x28] sm:$0xff]  ;;  %s1308_s11 = smov (!%p165_p3, %s786_s11), 3  ;;  %vm617_vm0 = vcmask 130048  }
   0xc   : > { %v1039_v1 = vld [vmem:[%s1304_s1 + $0x78] sm:$0xff]  ;;  %621 = vmatpush.bf16.msra.mxu0 %v1031_v0  ;;  %v1038_v5 = vld [vmem:[%s1304_s1 + $0x70] sm:$0xff]  ;;  %v1037_v9 = vld [vmem:[%s1304_s1 + $0x68] sm:$0xff]  ;;  %s1078_s10 = smul.u32 28, %s1308_s11 }
   0xd   : > { %v1047_v2 = vld [vmem:[%s1304_s1 + $0xb8] sm:$0xff]  ;;  %635 = vmatpush.bf16.msra.mxu1 %v1039_v1  ;;  %v1046_v6 = vld [vmem:[%s1304_s1 + $0xb0] sm:$0xff]  ;;  %v1045_v10 = vld [vmem:[%s1304_s1 + $0xa8] sm:$0xff] }
   0xe   : > { %v1055_v3 = vld [vmem:[%s1304_s1 + $0xf8] sm:$0xff]  ;;  %649 = vmatpush.bf16.msra.mxu2 %v1047_v2  ;;  %v1054_v7 = vld [vmem:[%s1304_s1 + $0xf0] sm:$0xff]  ;;  %v1053_v11 = vld [vmem:[%s1304_s1 + $0xe8] sm:$0xff]  ;;  %s1214_s23 = scalar_lea.vmem %s1303_s0, %s1078_s10 }
   0xf   : > { %663 = vmatpush.bf16.msra.mxu3 %v1055_v3  ;;  %v1028_v12 = vld [vmem:[%s1304_s1 + $0x20] sm:$0xff]  ;;  %v1027_v16 = vld [vmem:[%s1304_s1 + $0x18] sm:$0xff]  ;;  %v1026_v20 = vld [vmem:[%s1304_s1 + $0x10] sm:$0xff] }
  0x10   : > { %622 = vmatpush.bf16.msra.mxu0 %v1030_v4  ;;  %v1036_v13 = vld [vmem:[%s1304_s1 + $0x60] sm:$0xff]  ;;  %v1035_v17 = vld [vmem:[%s1304_s1 + $0x58] sm:$0xff]  ;;  %v1034_v21 = vld [vmem:[%s1304_s1 + $0x50] sm:$0xff] }
  0x11   : > { %636 = vmatpush.bf16.msra.mxu1 %v1038_v5  ;;  %v1044_v14 = vld [vmem:[%s1304_s1 + $0xa0] sm:$0xff]  ;;  %v1043_v18 = vld [vmem:[%s1304_s1 + $0x98] sm:$0xff]  ;;  %v1042_v22 = vld [vmem:[%s1304_s1 + $0x90] sm:$0xff] }
  0x12   : > { %650 = vmatpush.bf16.msra.mxu2 %v1046_v6  ;;  %v1052_v15 = vld [vmem:[%s1304_s1 + $0xe0] sm:$0xff]  ;;  %v1051_v19 = vld [vmem:[%s1304_s1 + $0xd8] sm:$0xff]  ;;  %v1050_v23 = vld [vmem:[%s1304_s1 + $0xd0] sm:$0xff] }
  0x13   : > { %664 = vmatpush.bf16.msra.mxu3 %v1054_v7  ;;  %v1025_v24 = vld [vmem:[%s1304_s1 + $0x8] sm:$0xff]  ;;  %v1024_v28 = vld [vmem:[%s1304_s1] sm:$0xff]  ;;  %v1020_v31 = vld [vmem:[%s1214_s23 + $0x18] sm:$0xf0] }
  0x14   : > { %623 = vmatpush.bf16.msra.mxu0 %v1029_v8  ;;  %v1033_v25 = vld [vmem:[%s1304_s1 + $0x48] sm:$0xff]  ;;  %v1032_v29 = vld [vmem:[%s1304_s1 + $0x40] sm:$0xff]  ;;  %v1063_v34 = vld [vmem:[%s1304_s1 + $0x138] sm:$0xff] }
  0x15   : > { %637 = vmatpush.bf16.msra.mxu1 %v1037_v9  ;;  %v1041_v26 = vld [vmem:[%s1304_s1 + $0x88] sm:$0xff]  ;;  %v792_v30 = vld [vmem:[%s1214_s23] sm:$0xf]  ;;  %v1017_v32 = vld [vmem:[%s1214_s23 + $0x4] sm:$0xf] }
  0x16   : > { %651 = vmatpush.bf16.msra.mxu2 %v1045_v10  ;;  %v1049_v27 = vld [vmem:[%s1304_s1 + $0xc8] sm:$0xff]  ;;  %v794_v33 = vld [vmem:[%s1214_s23 + $0x1c] sm:$0xf0]  ;;  %v1071_v35 = vld [vmem:[%s1304_s1 + $0x178] sm:$0xff]  ;;  %v793_v40 = vor.u32 %v1020_v31, %v792_v30 }
  0x17   : > { %665 = vmatpush.bf16.msra.mxu3 %v1053_v11  ;;  %v1040_v36 = vld [vmem:[%s1304_s1 + $0x80] sm:$0xff]  ;;  %v800_v38 = vld [vmem:[%s1214_s23 + $0x8] sm:$0xf]  ;;  %v1018_v41 = vld [vmem:[%s1214_s23 + $0xc] sm:$0xf]  ;;  %v797_v43 = vor.u32 %v1017_v32, %v794_v33 }
  0x18   : > { %624 = vmatpush.bf16.msra.mxu0 %v1028_v12  ;;  %v1048_v37 = vld [vmem:[%s1304_s1 + $0xc0] sm:$0xff]  ;;  %v802_v42 = vld [vmem:[%s1214_s23 + $0x24] sm:$0xf0]  ;;  %v1062_v45 = vld [vmem:[%s1304_s1 + $0x130] sm:$0xff] }
  0x19   : > { %638 = vmatpush.bf16.msra.mxu1 %v1036_v13  ;;  %v1021_v39 = vld [vmem:[%s1214_s23 + $0x20] sm:$0xf0]  ;;  %v1070_v46 = vld [vmem:[%s1304_s1 + $0x170] sm:$0xff]  ;;  %v805_v48 = vor.u32 %v1018_v41, %v802_v42  ;;  %v1061_v49 = vld [vmem:[%s1304_s1 + $0x128] sm:$0xff] }
  0x1a   : > { %652 = vmatpush.bf16.msra.mxu2 %v1044_v14  ;;  %v1072_v44 = vld [vmem:[%s1304_s1 + $0x180] sm:$0xff]  ;;  %v801_v47 = vor.u32 %v1021_v39, %v800_v38  ;;  %v1069_v50 = vld [vmem:[%s1304_s1 + $0x168] sm:$0xff]  ;;  %v1059_v53 = vld [vmem:[%s1304_s1 + $0x118] sm:$0xff] }
  0x1b   : > { %666 = vmatpush.bf16.msra.mxu3 %v1052_v15  ;;  %v1060_v51 = vld [vmem:[%s1304_s1 + $0x120] sm:$0xff]  ;;  %v1067_v54 = vld [vmem:[%s1304_s1 + $0x158] sm:$0xff]  ;;  %v1023_v56 = vld [vmem:[%s1214_s23 + $0x30] sm:$0xf0] }
  0x1c   : > { %625 = vmatpush.bf16.msra.mxu0 %v1027_v16  ;;  %v1068_v52 = vld [vmem:[%s1304_s1 + $0x160] sm:$0xff]  ;;  %v816_v55 = vld [vmem:[%s1214_s23 + $0x18] sm:$0xf]  ;;  %v1058_v57 = vld [vmem:[%s1304_s1 + $0x110] sm:$0xff] }
  0x1d   : > { %639 = vmatpush.bf16.msra.mxu1 %v1035_v17  ;;  %v1066_v58 = vld [vmem:[%s1304_s1 + $0x150] sm:$0xff]  ;;  %v817_v59 = vor.u32 %v1023_v56, %v816_v55  ;;  %v1057_v60 = vld [vmem:[%s1304_s1 + $0x108] sm:$0xff]  ;;  %v1056_v62 = vld [vmem:[%s1304_s1 + $0x100] sm:$0xff] }
  0x1e   : > { %653 = vmatpush.bf16.msra.mxu2 %v1043_v18  ;;  %v1065_v61 = vld [vmem:[%s1304_s1 + $0x148] sm:$0xff]  ;;  %v1064_v63 = vld [vmem:[%s1304_s1 + $0x140] sm:$0xff]  ;;  %v808_v0 = vld [vmem:[%s1214_s23 + $0x10] sm:$0xf] }
  0x1f   : > { %667 = vmatpush.bf16.msra.mxu3 %v1051_v19  ;;  %v1022_v1 = vld [vmem:[%s1214_s23 + $0x28] sm:$0xf0]  ;;  %v1019_v2 = vld [vmem:[%s1214_s23 + $0x14] sm:$0xf]  ;;  %v810_v3 = vld [vmem:[%s1214_s23 + $0x2c] sm:$0xf0] }
  0x20   : > { %626 = vmatpush.bf16.msra.mxu0 %v1026_v20  ;;  %v809_v4 = vor.u32 %v1022_v1, %v808_v0  ;;  %v813_v5 = vor.u32 %v1019_v2, %v810_v3  ;;  %v1087_v9 = vld [vmem:[%s1305_s2] ss:$0 sm:$0xff]  ;;  %s789_s23 = sshll.u32 %s1308_s11, 2 }
  0x21   : > { %640 = vmatpush.bf16.msra.mxu1 %v1034_v21  ;;  %s175_s13 = scalar_lea.vmem %s1306_s3, %s789_s23 }
  0x22   : > { %654 = vmatpush.bf16.msra.mxu2 %v1042_v22 }
  0x23   : > { %668 = vmatpush.bf16.msra.mxu3 %v1050_v23 }
  0x24   : > { %627 = vmatpush.bf16.msra.mxu0 %v1025_v24 }
  0x25   : > { %641 = vmatpush.bf16.msra.mxu1 %v1033_v25 }
  0x26   : > { %655 = vmatpush.bf16.msra.mxu2 %v1041_v26 }
  0x27   : > { %669 = vmatpush.bf16.msra.mxu3 %v1049_v27 }
  0x28   : > { %628 = vmatpush.bf16.msra.mxu0 %v1024_v28 }
  0x29   : > { %642 = vmatpush.bf16.msra.mxu1 %v1032_v29 }
  0x2a   : > { %656 = vmatpush.bf16.msra.mxu2 %v1040_v36 }
  0x2b   : > { %670 = vmatpush.bf16.msra.mxu3 %v1048_v37  ;;  %629 = vmatmul.bf16.vlgmr.msra.gmra.mxu0 %v793_v40 }
  0x2c   : > { %677 = vmatpush.bf16.msrb.mxu0 %v1063_v34  ;;  %643 = vmatmul.bf16.vlgmr.msra.gmra.mxu1 %v797_v43 }
  0x2d   : > { %691 = vmatpush.bf16.msrb.mxu1 %v1071_v35  ;;  %657 = vmatmul.bf16.vlgmr.msra.gmra.mxu2 %v801_v47 }
  0x2e   : > { %712 = vmatpush.bf16.msrb.mxu2 %v1072_v44  ;;  %671 = vmatmul.bf16.vlgmr.msra.gmra.mxu3 %v805_v48 }
  0x30   : > { %678 = vmatpush.bf16.msrb.mxu0 %v1062_v45 }
  0x31   : > { %692 = vmatpush.bf16.msrb.mxu1 %v1070_v46 }
  0x34   : > { %679 = vmatpush.bf16.msrb.mxu0 %v1061_v49 }
  0x35   : > { %693 = vmatpush.bf16.msrb.mxu1 %v1069_v50 }
  0x38   : > { %680 = vmatpush.bf16.msrb.mxu0 %v1060_v51 }
  0x39   : > { %694 = vmatpush.bf16.msrb.mxu1 %v1068_v52 }
  0x3c   : > { %681 = vmatpush.bf16.msrb.mxu0 %v1059_v53 }
  0x3d   : > { %695 = vmatpush.bf16.msrb.mxu1 %v1067_v54  ;;  %1014 = vmatmul.msk.bf16.vlgmr.msrb.gmra.mxu2 %vm617_vm0, %v817_v59 }
  0x40   : > { %682 = vmatpush.bf16.msrb.mxu0 %v1058_v57 }
  0x41   : > { %696 = vmatpush.bf16.msrb.mxu1 %v1066_v58 }
  0x44   : > { %683 = vmatpush.bf16.msrb.mxu0 %v1057_v60 }
  0x45   : > { %697 = vmatpush.bf16.msrb.mxu1 %v1065_v61 }
  0x48   : > { %684 = vmatpush.bf16.msrb.mxu0 %v1056_v62 }
  0x49   : > { %698 = vmatpush.bf16.msrb.mxu1 %v1064_v63 }
  0x4b   : > { %685 = vmatmul.bf16.vlgmr.msrb.gmra.mxu0 %v809_v4 }
  0x4c   : > { %699 = vmatmul.bf16.vlgmr.msrb.gmra.mxu1 %v813_v5 }
  0xa8   : > { %v630_v6 = vpop.f32.mrf.mxu0 }
  0xa9   : > { %v644_v7 = vpop.f32.mrf.mxu1  ;;  %v631_v10 = vadd.f32 %v1087_v9, %v630_v6 }
  0xab   : > { %v645_v14 = vadd.f32 %v644_v7, %v631_v10 }
  0xb0   : > { %v658_v8 = vpop.f32.mrf.mxu2  ;;  %v632_v11 = vpop.f32.mrf.mxu0 }
  0xb1   : > { %v646_v12 = vpop.f32.mrf.mxu1  ;;  %v672_v15 = vpop.f32.mrf.mxu3  ;;  %v633_v16 = vadd.f32 %v1087_v9, %v632_v11  ;;  %v659_v17 = vadd.f32 %v658_v8, %v645_v14 }
  0xb3   : > { %v647_v18 = vadd.f32 %v646_v12, %v633_v16  ;;  %v673_v21 = vadd.f32 %v672_v15, %v659_v17 }
  0xb8   : > { %v660_v13 = vpop.f32.mrf.mxu2 }
  0xb9   : > { %v661_v23 = vadd.f32 %v660_v13, %v647_v18  ;;  %v674_v25 = vpop.f32.mrf.mxu3 }
  0xbb   : > { %v675_v26 = vadd.f32 %v674_v25, %v661_v23 }
  0xc0   : > { %v714_v22 = vpop.f32.mrf.mxu2 }
  0xc8   : > { %v686_v19 = vpop.f32.mrf.mxu0  ;;  %v716_v33 = vpop.f32.mrf.mxu2 }
  0xc9   : > { %v700_v20 = vpop.f32.mrf.mxu1  ;;  %v687_v24 = vadd.f32 %v686_v19, %v673_v21 }
  0xcb   : > { %v701_v27 = vadd.f32 %v700_v20, %v687_v24 }
  0xcd   : > { %v715_v31 = vadd.f32 %v714_v22, %v701_v27 }
  0xcf   : > { %v719_v35 = vmax.f32 %v715_v31, 0.0 }
  0xd0   : > { %v688_v28 = vpop.f32.mrf.mxu0 }
  0xd1   : > { %v689_v29 = vadd.f32 %v688_v28, %v675_v26  ;;  %v702_v30 = vpop.f32.mrf.mxu1 }
  0xd3   : > { %v703_v32 = vadd.f32 %v702_v30, %v689_v29 }
  0xd5   : > { %v717_v34 = vadd.f32 %v716_v33, %v703_v32 }
  0xd7   : > { %v720_v36 = vmax.f32 %v717_v34, 0.0 }
  0xd9   : > { %v1076_v37 = vpack.c.bf16 %v720_v36, %v719_v35 }
  0xdb   : > { %1077 = vst [vmem:[%s175_s13] sm:$0xff] %v1076_v37  }
  0xdc PF: > { %s13_s12 = sadd.s32 1, %s1094_s12  }
  0xdd   : > { %p10_p4 = scmp.ge.s32.totalorder %s13_s12, 4  }
  0xdf   :  { %12 = sbr.rel (!%p10_p4) target bundleno = 1 (0x1), region = 62 }

// kernel: mcnn_forward.29
= control target key start
LH: loop header
LB: loop body
LE: loop exit
PB: predicated region body
PF: predicated region fallthrough
CT: control target
= control target key end

     0   :  { %s345_s12 = smov 0   ;;  %s374_s0 = inlined_call_operand.vmem [shape: bf16[32,30], index: 0, kind: input, shape index: {}]   ;;  %s375_s1 = inlined_call_operand.vmem [shape: bf16[30,128], index: 1, kind: input, shape index: {}]   ;;  %s376_s2 = inlined_call_operand.vmem [shape: f32[1,128], index: 2, kind: input, shape index: {}]   ;;  %s377_s3 = inlined_call_operand.vmem [shape: f32[32,128], index: 3, kind: output, shape index: {}]  }
   0x1 LB: > { %s281_s13 = sadd.s32 4294967295, %s323_s12   ;;  %p285_p0 = scmp.ge.s32.totalorder %s323_s12, 1  ;;  %s323_s12 = sphi %s345_s12, %s13_s12  }
   0x2   : > { %p138_p1 = scmp.lt.s32.totalorder %s323_s12, 3 }
   0x4   : > { %p139_p2 = pnand %p285_p0, %p138_p1 }
   0x5   : > { %s286_s18 = sshll.u32 (!%p139_p2), %s281_s13, 1 }
   0x6   : > { %142 = sbr.rel (%p139_p2) target bundleno = 159 (0x9f), region = 32  ;;  %p163_p3 = scmp.lt.s32.totalorder (!%p139_p2), %s286_s18, 3 }
   0xb   : > { %v300_v0 = vld [vmem:[%s375_s1 + $0x8] sm:$0xf]  ;;  %v307_v1 = vld [vmem:[%s375_s1 + $0x8] sm:$0x70]  ;;  %vm205_vm0 = vcmask 1046528   ;;  %v306_v4 = vld [vmem:[%s375_s1] sm:$0xff] }
   0xc   : > { %v301_v2 = vor.u32 %v307_v1, %v300_v0  ;;  %s379_s18 = smov (!%p163_p3, %s286_s18), 3  ;;  %vm201_vm1 = vcmask 244736   ;;  %v316_v6 = vld [vmem:[%s376_s2] ss:$0 sm:$0xff] }
   0xd   : > { %s287_s21 = sshll.u32 %s379_s18, 2  ;;  %s289_s25 = sshll.u32 %s379_s18, 3 }
   0xe   : > { %v207_v3 = vsel %vm205_vm0, %v301_v2, 0  ;;  %s166_s24 = scalar_lea.vmem %s374_s0, %s287_s21  ;;  %s172_s30 = scalar_lea.vmem %s377_s3, %s289_s25 }
   0xf   : > { %215 = vmatpush.bf16.msra.mxu0 %v207_v3  ;;  %v305_v5 = vld [vmem:[%s166_s24] sm:$0xff] }
  0x13   : > { %216 = vmatpush.bf16.msra.mxu0 %v306_v4 }
  0x16   : > { %302 = vmatmul.msk.bf16.vlgmr.msra.gmra.mxu0 %vm201_vm1, %v305_v5 }
  0x93   : > { %v218_v7 = vpop.f32.mrf.mxu0 }
  0x94   : > { %v219_v8 = vadd.f32 %v316_v6, %v218_v7 }
  0x96   : > { %223 = vst [vmem:[%s172_s30] sm:$0xff] %v219_v8 }
  0x9b   : > { %v220_v9 = vpop.f32.mrf.mxu0 }
  0x9c   : > { %v221_v10 = vadd.f32 %v316_v6, %v220_v9 }
  0x9e   : > { %224 = vst [vmem:[%s172_s30 + $0x8] sm:$0xff] %v221_v10 }
  0x9f PF: > { %s13_s12 = sadd.s32 1, %s323_s12  }
  0xa0   : > { %p10_p4 = scmp.ge.s32.totalorder %s13_s12, 4  }
  0xa2   :  { %12 = sbr.rel (!%p10_p4) target bundleno = 1 (0x1), region = 62 }

</bundles_post_ra>
